<compile_context>
chip_gen: v7x
topology: tpu7x:2x2x1
jax: 0.10.0
libtpu: 0.0.40
codegen_flags: <defaults>
</compile_context>

<pallas_src>
import jax
import jax.numpy as jnp
from jax import lax
from jax.experimental import pallas as pl
from jax.experimental.pallas import tpu as pltpu

B_TILE = 8  # images per grid step (sweet spot per review: 8-32, keep grid >= 2)


# ----------------------------------------------------------------------------
# Operand preparation (pure weight transforms, traced inside the same jit)
# ----------------------------------------------------------------------------
def _prepare_operands(params, bt):
    f32, bf16 = jnp.float32, jnp.bfloat16

    # conv1: banded weight slabs, one (28, 144) matrix per kernel row tap i.
    #   W1[i, win, 6*wout + c] = conv1_w[c, 0, i, win - wout]  if 0 <= win-wout < 5
    w1 = params["conv1_w"].astype(f32)                    # (6, 1, 5, 5) OIHW
    w1k = jnp.transpose(w1[:, 0], (1, 2, 0))              # (5, 5, 6)  [i, j, c]
    win = jnp.arange(28)[:, None]
    wout = jnp.arange(24)[None, :]
    j1 = win - wout
    valid1 = (j1 >= 0) & (j1 < 5)
    W1 = jnp.where(valid1[None, :, :, None],
                   w1k[:, jnp.clip(j1, 0, 4), :], 0.0)     # (5, 28, 24, 6)
    W1 = W1.reshape(5, 28, 144).astype(bf16)
    b1 = jnp.tile(params["conv1_b"].astype(f32), 24).reshape(1, 144)

    # pool1 row selectors: block-diagonal over the batch tile; each image's 12
    # pooled rows are emitted into a 16-row (8-aligned) block, padding rows = 0.
    rows = jnp.arange(bt * 16)
    b_i, r_i = rows // 16, rows % 16
    col = b_i * 24 + 2 * r_i
    ok = (r_i < 12)[:, None]
    P1L = jnp.stack(
        [jnp.where(ok, jax.nn.one_hot(col, bt * 24, dtype=f32), 0.0),
         jnp.where(ok, jax.nn.one_hot(col + 1, bt * 24, dtype=f32), 0.0)]
    ).astype(bf16)                                          # (2, bt*16, bt*24)

    # pool1 lane selectors (shared across the batch; batch rides along M).
    m72 = jnp.arange(72)
    s1 = (m72 // 6) * 12 + (m72 % 6)
    P1R = jnp.stack([jax.nn.one_hot(s1, 144, dtype=f32).T,
                     jax.nn.one_hot(s1 + 6, 144, dtype=f32).T]).astype(bf16)  # (2,144,72)

    # conv2: banded weight slabs, one (72, 128) matrix per kernel row tap i.
    #   W2[i, 6*win + cin, 16*wout + cout] = conv2_w[cout, cin, i, win - wout]
    w2 = params["conv2_w"].astype(f32)                     # (16, 6, 5, 5)
    w2k = jnp.transpose(w2, (2, 3, 1, 0))                  # (5, 5, 6, 16) [i,j,cin,cout]
    win2 = jnp.arange(12)[:, None]
    wout2 = jnp.arange(8)[None, :]
    j2 = win2 - wout2
    valid2 = (j2 >= 0) & (j2 < 5)
    W2 = w2k[:, jnp.clip(j2, 0, 4), :, :]                   # (5, 12, 8, 6, 16)
    W2 = jnp.transpose(W2, (0, 1, 3, 2, 4))                 # (5, 12, 6, 8, 16)
    W2 = jnp.where(valid2[None, :, None, :, None], W2, 0.0)
    W2 = W2.reshape(5, 72, 128).astype(bf16)
    b2 = jnp.tile(params["conv2_b"].astype(f32), 8).reshape(1, 128)

    # pool2 row selectors: block-diagonal, output rows grouped by pooled row h
    # (row h*bt + b <- max of conv2 rows b*8+2h, b*8+2h+1).
    rows2 = jnp.arange(4 * bt)
    h_i, b2_i = rows2 // bt, rows2 % bt
    col2 = b2_i * 8 + 2 * h_i
    P2L = jnp.stack([jax.nn.one_hot(col2, bt * 8, dtype=f32),
                     jax.nn.one_hot(col2 + 1, bt * 8, dtype=f32)]).astype(bf16)  # (2,4bt,8bt)

    # pool2 lane selectors.
    m64 = jnp.arange(64)
    s2 = (m64 // 16) * 32 + (m64 % 16)
    P2R = jnp.stack([jax.nn.one_hot(s2, 128, dtype=f32).T,
                     jax.nn.one_hot(s2 + 16, 128, dtype=f32).T]).astype(bf16)    # (2,128,64)

    # fc1: PyTorch's (C,H,W) flatten folded into the weight; one (64,128) slab
    # per pooled row h; widths padded to 128 lanes.
    wf1 = params["fc1_w"].astype(f32).reshape(16, 4, 4, 120)       # [c, h, w, n]
    wf1 = jnp.transpose(wf1, (1, 2, 0, 3)).reshape(4, 64, 120)     # [h, 16*w+c, n]
    WF1 = jnp.pad(wf1, ((0, 0), (0, 0), (0, 8))).astype(bf16)      # (4, 64, 128)
    bf1 = jnp.pad(params["fc1_b"].astype(f32), (0, 8)).reshape(1, 128)

    WF2 = jnp.pad(params["fc2_w"].astype(f32), ((0, 8), (0, 44))).astype(bf16)    # (128,128)
    bf2 = jnp.pad(params["fc2_b"].astype(f32), (0, 44)).reshape(1, 128)
    WF3 = jnp.pad(params["fc3_w"].astype(f32), ((0, 44), (0, 118))).astype(bf16)  # (128,128)
    bf3 = jnp.pad(params["fc3_b"].astype(f32), (0, 118)).reshape(1, 128)

    return (W1, b1, P1L, P1R, W2, b2, P2L, P2R, WF1, bf1, WF2, bf2, WF3, bf3)


# ----------------------------------------------------------------------------
# Fully fused kernel: one batch tile (B_TILE images) per grid step
# ----------------------------------------------------------------------------
def _lenet_kernel(x_ref, w1_ref, b1_ref, p1l_ref, p1r_ref,
                  w2_ref, b2_ref, p2l_ref, p2r_ref,
                  wf1_ref, bf1_ref, wf2_ref, bf2_ref, wf3_ref, bf3_ref,
                  out_ref):
    f32, bf16 = jnp.float32, jnp.bfloat16
    B = x_ref.shape[0]

    def dot(a, b):
        return jnp.dot(a, b, preferred_element_type=f32)

    x = x_ref[...]                                           # (B, 28, 28) f32

    # conv1 + bias + ReLU: 5 banded matmuls (B*24, 28) @ (28, 144)
    acc1 = None
    for i in range(5):  # 5 static taps; fully unrolled at trace time
        lhs = x[:, i:i + 24, :].reshape(B * 24, 28).astype(bf16)
        t = dot(lhs, w1_ref[i])
        acc1 = t if acc1 is None else acc1 + t
    acc1 = jnp.maximum(acc1 + b1_ref[...], 0.0).astype(bf16)  # (B*24, 144)

    # pool1: rows (block-diag selectors, 16-row padded blocks) then lanes
    h1 = jnp.maximum(dot(p1l_ref[0], acc1), dot(p1l_ref[1], acc1)).astype(bf16)  # (B*16,144)
    p1 = jnp.maximum(dot(h1, p1r_ref[0]), dot(h1, p1r_ref[1]))                    # (B*16,72)
    p1 = p1.reshape(B, 16, 72)

    # conv2 + bias + ReLU: 5 banded matmuls (B*8, 72) @ (72, 128)
    acc2 = None
    for i in range(5):
        lhs = p1[:, i:i + 8, :].reshape(B * 8, 72).astype(bf16)
        t = dot(lhs, w2_ref[i])
        acc2 = t if acc2 is None else acc2 + t
    acc2 = jnp.maximum(acc2 + b2_ref[...], 0.0).astype(bf16)   # (B*8, 128)

    # pool2: rows (grouped by pooled row h) then lanes
    h2 = jnp.maximum(dot(p2l_ref[0], acc2), dot(p2l_ref[1], acc2)).astype(bf16)   # (4B,128)
    p2 = jnp.maximum(dot(h2, p2r_ref[0]), dot(h2, p2r_ref[1]))                     # (4B, 64)

    # fc1 (+ReLU): sum over the 4 pooled rows, each an aligned (B, 64) slice
    y = bf1_ref[...]
    for h in range(4):
        y = y + dot(p2[h * B:(h + 1) * B, :].astype(bf16), wf1_ref[h])
    y = jnp.maximum(y, 0.0).astype(bf16)                        # (B, 128)

    # fc2 (+ReLU), fc3 — all 128-lane dense (zero-padded widths)
    y = jnp.maximum(dot(y, wf2_ref[...]) + bf2_ref[...], 0.0).astype(bf16)
    out_ref[...] = dot(y, wf3_ref[...]) + bf3_ref[...]          # (B, 128) f32


def net_forward(x_nchw, params):
    B = x_nchw.shape[0]
    assert x_nchw.shape[1:] == (1, 28, 28), x_nchw.shape
    x = x_nchw.astype(jnp.float32).reshape(B, 28, 28)           # Cin == 1
    Bp = ((B + B_TILE - 1) // B_TILE) * B_TILE
    if Bp != B:
        x = jnp.pad(x, ((0, Bp - B), (0, 0), (0, 0)))
    consts = _prepare_operands(params, B_TILE)

    def _full_spec(arr):
        nd = arr.ndim
        return pl.BlockSpec(arr.shape, lambda b, _nd=nd: (0,) * _nd)

    out = pl.pallas_call(
        _lenet_kernel,
        out_shape=jax.ShapeDtypeStruct((Bp, 128), jnp.float32),
        grid_spec=pltpu.PrefetchScalarGridSpec(
            num_scalar_prefetch=0,
            grid=(Bp // B_TILE,),
            in_specs=[pl.BlockSpec((B_TILE, 28, 28), lambda b: (b, 0, 0))]
                     + [_full_spec(c) for c in consts],
            out_specs=pl.BlockSpec((B_TILE, 128), lambda b: (b, 0)),
        ),
        compiler_params=pltpu.CompilerParams(
            dimension_semantics=("parallel",),
            vmem_limit_bytes=32 * 1024 * 1024,
        ),
    )(x, *consts)
    return out[:B, :10]


# ----------------------------------------------------------------------------
# Pure-JAX (XLA) reference for a correctness cross-check
# ----------------------------------------------------------------------------
def net_forward_reference(x_nchw, params):
    x = lax.conv_general_dilated(x_nchw, params["conv1_w"], (1, 1), "VALID",
                                 dimension_numbers=("NCHW", "OIHW", "NCHW"))
    x = jax.nn.relu(x + params["conv1_b"][None, :, None, None])
    x = lax.reduce_window(x, -jnp.inf, lax.max, (1, 1, 2, 2), (1, 1, 2, 2), "VALID")
    x = lax.conv_general_dilated(x, params["conv2_w"], (1, 1), "VALID",
                                 dimension_numbers=("NCHW", "OIHW", "NCHW"))
    x = jax.nn.relu(x + params["conv2_b"][None, :, None, None])
    x = lax.reduce_window(x, -jnp.inf, lax.max, (1, 1, 2, 2), (1, 1, 2, 2), "VALID")
    x = x.reshape(x.shape[0], -1)                               # CHW flatten
    x = jax.nn.relu(x @ params["fc1_w"] + params["fc1_b"])
    x = jax.nn.relu(x @ params["fc2_w"] + params["fc2_b"])
    return x @ params["fc3_w"] + params["fc3_b"]


# ----------------------------------------------------------------------------
# Deterministic init (PyTorch default: U(-1/sqrt(fan_in), +1/sqrt(fan_in)))
# ----------------------------------------------------------------------------
def init_params(key):
    ks = jax.random.split(key, 10)

    def u(k, shape, fan_in):
        bound = 1.0 / float(fan_in) ** 0.5
        return jax.random.uniform(k, shape, jnp.float32, -bound, bound)

    return {
        "conv1_w": u(ks[0], (6, 1, 5, 5), 1 * 5 * 5),
        "conv1_b": u(ks[1], (6,), 1 * 5 * 5),
        "conv2_w": u(ks[2], (16, 6, 5, 5), 6 * 5 * 5),
        "conv2_b": u(ks[3], (16,), 6 * 5 * 5),
        # Linear weights stored as (in, out) with rows in PyTorch flatten order.
        "fc1_w": u(ks[4], (16 * 4 * 4, 120), 16 * 4 * 4),
        "fc1_b": u(ks[5], (120,), 16 * 4 * 4),
        "fc2_w": u(ks[6], (120, 84), 120),
        "fc2_b": u(ks[7], (84,), 120),
        "fc3_w": u(ks[8], (84, 10), 84),
        "fc3_b": u(ks[9], (10,), 84),
    }


if __name__ == "__main__":
    key = jax.random.PRNGKey(0)
    pkey, xkey = jax.random.split(key)
    params = init_params(pkey)
    # fc1 = 16*4*4 implies a 28x28 single-channel input (MNIST-sized).
    # Batch 16 -> two batch tiles of 8 (keeps the grid >= 2 for v7x megacore).
    x = jax.random.normal(xkey, (16, 1, 28, 28), jnp.float32)

    out = jax.block_until_ready(jax.jit(net_forward)(x, params))
    ref = jax.block_until_ready(jax.jit(net_forward_reference)(x, params))

    assert out.shape == (16, 10), out.shape
    assert bool(jnp.all(jnp.isfinite(out)))
    max_diff = float(jnp.max(jnp.abs(out - ref)))
    assert bool(jnp.allclose(out, ref, rtol=2e-1, atol=6e-2)), (
        "max abs diff vs reference: %e" % max_diff)
    print("KERNEL_OK")
</pallas_src>

<mosaic_0001>
module attributes {stable_mosaic.version = 11 : i64} {
  func.func @_lenet_kernel(%arg0: i32, %arg1: memref<8x28x28xf32, #tpu.memory_space<vmem>>, %arg2: memref<5x28x144xbf16, #tpu.memory_space<vmem>>, %arg3: memref<1x144xf32, #tpu.memory_space<vmem>>, %arg4: memref<2x128x192xbf16, #tpu.memory_space<vmem>>, %arg5: memref<2x144x72xbf16, #tpu.memory_space<vmem>>, %arg6: memref<5x72x128xbf16, #tpu.memory_space<vmem>>, %arg7: memref<1x128xf32, #tpu.memory_space<vmem>>, %arg8: memref<2x32x64xbf16, #tpu.memory_space<vmem>>, %arg9: memref<2x128x64xbf16, #tpu.memory_space<vmem>>, %arg10: memref<4x64x128xbf16, #tpu.memory_space<vmem>>, %arg11: memref<1x128xf32, #tpu.memory_space<vmem>>, %arg12: memref<128x128xbf16, #tpu.memory_space<vmem>>, %arg13: memref<1x128xf32, #tpu.memory_space<vmem>>, %arg14: memref<128x128xbf16, #tpu.memory_space<vmem>>, %arg15: memref<1x128xf32, #tpu.memory_space<vmem>>, %arg16: memref<8x128xf32, #tpu.memory_space<vmem>>) attributes {dimension_semantics = [#tpu.dimension_semantics<parallel>], iteration_bounds = array<i64: 2>, scalar_prefetch = 0 : i64, scratch_operands = 0 : i64, tpu.core_type = #tpu.core_type<tc>, window_params = [{transform_indices = @transform_0, window_bounds = array<i64: 8, 28, 28>}, {pipeline_mode = #tpu.pipeline_mode<synchronous>, transform_indices = @transform_1, window_bounds = array<i64: 5, 28, 144>}, {pipeline_mode = #tpu.pipeline_mode<synchronous>, transform_indices = @transform_2, window_bounds = array<i64: 1, 144>}, {pipeline_mode = #tpu.pipeline_mode<synchronous>, transform_indices = @transform_3, window_bounds = array<i64: 2, 128, 192>}, {pipeline_mode = #tpu.pipeline_mode<synchronous>, transform_indices = @transform_4, window_bounds = array<i64: 2, 144, 72>}, {pipeline_mode = #tpu.pipeline_mode<synchronous>, transform_indices = @transform_5, window_bounds = array<i64: 5, 72, 128>}, {pipeline_mode = #tpu.pipeline_mode<synchronous>, transform_indices = @transform_6, window_bounds = array<i64: 1, 128>}, {pipeline_mode = #tpu.pipeline_mode<synchronous>, transform_indices = @transform_7, window_bounds = array<i64: 2, 32, 64>}, {pipeline_mode = #tpu.pipeline_mode<synchronous>, transform_indices = @transform_8, window_bounds = array<i64: 2, 128, 64>}, {pipeline_mode = #tpu.pipeline_mode<synchronous>, transform_indices = @transform_9, window_bounds = array<i64: 4, 64, 128>}, {pipeline_mode = #tpu.pipeline_mode<synchronous>, transform_indices = @transform_10, window_bounds = array<i64: 1, 128>}, {pipeline_mode = #tpu.pipeline_mode<synchronous>, transform_indices = @transform_11, window_bounds = array<i64: 128, 128>}, {pipeline_mode = #tpu.pipeline_mode<synchronous>, transform_indices = @transform_12, window_bounds = array<i64: 1, 128>}, {pipeline_mode = #tpu.pipeline_mode<synchronous>, transform_indices = @transform_13, window_bounds = array<i64: 128, 128>}, {pipeline_mode = #tpu.pipeline_mode<synchronous>, transform_indices = @transform_14, window_bounds = array<i64: 1, 128>}, {transform_indices = @transform_15, window_bounds = array<i64: 8, 128>}]} {
    %c0 = arith.constant 0 : index
    %c0_0 = arith.constant 0 : index
    %c0_1 = arith.constant 0 : index
    %0 = vector.load %arg1[%c0, %c0_0, %c0_1] : memref<8x28x28xf32, #tpu.memory_space<vmem>>, vector<8x28x28xf32>
    %1 = vector.extract_strided_slice %0 {offsets = [0, 0, 0], sizes = [8, 24, 28], strides = [1, 1, 1]} : vector<8x28x28xf32> to vector<8x24x28xf32>
    %2 = vector.shape_cast %1 : vector<8x24x28xf32> to vector<192x28xf32>
    %3 = arith.truncf %2 : vector<192x28xf32> to vector<192x28xbf16>
    %c0_2 = arith.constant 0 : index
    %c0_3 = arith.constant 0 : index
    %c0_4 = arith.constant 0 : index
    %4 = vector.load %arg2[%c0_2, %c0_3, %c0_4] : memref<5x28x144xbf16, #tpu.memory_space<vmem>>, vector<1x28x144xbf16>
    %5 = vector.shape_cast %4 : vector<1x28x144xbf16> to vector<28x144xbf16>
    %cst = arith.constant dense<0.000000e+00> : vector<192x144xf32>
    %6 = tpu.matmul %3, %5, %cst {dimension_numbers = #tpu.dot_dimension_numbers<[1], [0], [0], [1], [0, 0, 1, 1], [], []>} : vector<192x28xbf16>, vector<28x144xbf16>, vector<192x144xf32> -> vector<192x144xf32>
    %7 = vector.extract_strided_slice %0 {offsets = [0, 1, 0], sizes = [8, 24, 28], strides = [1, 1, 1]} : vector<8x28x28xf32> to vector<8x24x28xf32>
    %8 = vector.shape_cast %7 : vector<8x24x28xf32> to vector<192x28xf32>
    %9 = arith.truncf %8 : vector<192x28xf32> to vector<192x28xbf16>
    %c1 = arith.constant 1 : index
    %c0_5 = arith.constant 0 : index
    %c0_6 = arith.constant 0 : index
    %10 = vector.load %arg2[%c1, %c0_5, %c0_6] : memref<5x28x144xbf16, #tpu.memory_space<vmem>>, vector<1x28x144xbf16>
    %11 = vector.shape_cast %10 : vector<1x28x144xbf16> to vector<28x144xbf16>
    %cst_7 = arith.constant dense<0.000000e+00> : vector<192x144xf32>
    %12 = tpu.matmul %9, %11, %cst_7 {dimension_numbers = #tpu.dot_dimension_numbers<[1], [0], [0], [1], [0, 0, 1, 1], [], []>} : vector<192x28xbf16>, vector<28x144xbf16>, vector<192x144xf32> -> vector<192x144xf32>
    %13 = arith.addf %6, %12 : vector<192x144xf32>
    %14 = vector.extract_strided_slice %0 {offsets = [0, 2, 0], sizes = [8, 24, 28], strides = [1, 1, 1]} : vector<8x28x28xf32> to vector<8x24x28xf32>
    %15 = vector.shape_cast %14 : vector<8x24x28xf32> to vector<192x28xf32>
    %16 = arith.truncf %15 : vector<192x28xf32> to vector<192x28xbf16>
    %c2 = arith.constant 2 : index
    %c0_8 = arith.constant 0 : index
    %c0_9 = arith.constant 0 : index
    %17 = vector.load %arg2[%c2, %c0_8, %c0_9] : memref<5x28x144xbf16, #tpu.memory_space<vmem>>, vector<1x28x144xbf16>
    %18 = vector.shape_cast %17 : vector<1x28x144xbf16> to vector<28x144xbf16>
    %cst_10 = arith.constant dense<0.000000e+00> : vector<192x144xf32>
    %19 = tpu.matmul %16, %18, %cst_10 {dimension_numbers = #tpu.dot_dimension_numbers<[1], [0], [0], [1], [0, 0, 1, 1], [], []>} : vector<192x28xbf16>, vector<28x144xbf16>, vector<192x144xf32> -> vector<192x144xf32>
    %20 = arith.addf %13, %19 : vector<192x144xf32>
    %21 = vector.extract_strided_slice %0 {offsets = [0, 3, 0], sizes = [8, 24, 28], strides = [1, 1, 1]} : vector<8x28x28xf32> to vector<8x24x28xf32>
    %22 = vector.shape_cast %21 : vector<8x24x28xf32> to vector<192x28xf32>
    %23 = arith.truncf %22 : vector<192x28xf32> to vector<192x28xbf16>
    %c3 = arith.constant 3 : index
    %c0_11 = arith.constant 0 : index
    %c0_12 = arith.constant 0 : index
    %24 = vector.load %arg2[%c3, %c0_11, %c0_12] : memref<5x28x144xbf16, #tpu.memory_space<vmem>>, vector<1x28x144xbf16>
    %25 = vector.shape_cast %24 : vector<1x28x144xbf16> to vector<28x144xbf16>
    %cst_13 = arith.constant dense<0.000000e+00> : vector<192x144xf32>
    %26 = tpu.matmul %23, %25, %cst_13 {dimension_numbers = #tpu.dot_dimension_numbers<[1], [0], [0], [1], [0, 0, 1, 1], [], []>} : vector<192x28xbf16>, vector<28x144xbf16>, vector<192x144xf32> -> vector<192x144xf32>
    %27 = arith.addf %20, %26 : vector<192x144xf32>
    %28 = vector.extract_strided_slice %0 {offsets = [0, 4, 0], sizes = [8, 24, 28], strides = [1, 1, 1]} : vector<8x28x28xf32> to vector<8x24x28xf32>
    %29 = vector.shape_cast %28 : vector<8x24x28xf32> to vector<192x28xf32>
    %30 = arith.truncf %29 : vector<192x28xf32> to vector<192x28xbf16>
    %c4 = arith.constant 4 : index
    %c0_14 = arith.constant 0 : index
    %c0_15 = arith.constant 0 : index
    %31 = vector.load %arg2[%c4, %c0_14, %c0_15] : memref<5x28x144xbf16, #tpu.memory_space<vmem>>, vector<1x28x144xbf16>
    %32 = vector.shape_cast %31 : vector<1x28x144xbf16> to vector<28x144xbf16>
    %cst_16 = arith.constant dense<0.000000e+00> : vector<192x144xf32>
    %33 = tpu.matmul %30, %32, %cst_16 {dimension_numbers = #tpu.dot_dimension_numbers<[1], [0], [0], [1], [0, 0, 1, 1], [], []>} : vector<192x28xbf16>, vector<28x144xbf16>, vector<192x144xf32> -> vector<192x144xf32>
    %34 = arith.addf %27, %33 : vector<192x144xf32>
    %c0_17 = arith.constant 0 : index
    %c0_18 = arith.constant 0 : index
    %35 = vector.load %arg3[%c0_17, %c0_18] : memref<1x144xf32, #tpu.memory_space<vmem>>, vector<1x144xf32>
    %36 = vector.broadcast %35 : vector<1x144xf32> to vector<192x144xf32>
    %37 = arith.addf %34, %36 : vector<192x144xf32>
    %cst_19 = arith.constant 0.000000e+00 : f32
    %38 = vector.broadcast %cst_19 : f32 to vector<192x144xf32>
    %39 = arith.maximumf %37, %38 : vector<192x144xf32>
    %40 = arith.truncf %39 : vector<192x144xf32> to vector<192x144xbf16>
    %c0_20 = arith.constant 0 : index
    %c0_21 = arith.constant 0 : index
    %c0_22 = arith.constant 0 : index
    %41 = vector.load %arg4[%c0_20, %c0_21, %c0_22] : memref<2x128x192xbf16, #tpu.memory_space<vmem>>, vector<1x128x192xbf16>
    %42 = vector.shape_cast %41 : vector<1x128x192xbf16> to vector<128x192xbf16>
    %cst_23 = arith.constant dense<0.000000e+00> : vector<128x144xf32>
    %43 = tpu.matmul %42, %40, %cst_23 {dimension_numbers = #tpu.dot_dimension_numbers<[1], [0], [0], [1], [0, 0, 1, 1], [], []>} : vector<128x192xbf16>, vector<192x144xbf16>, vector<128x144xf32> -> vector<128x144xf32>
    %c1_24 = arith.constant 1 : index
    %c0_25 = arith.constant 0 : index
    %c0_26 = arith.constant 0 : index
    %44 = vector.load %arg4[%c1_24, %c0_25, %c0_26] : memref<2x128x192xbf16, #tpu.memory_space<vmem>>, vector<1x128x192xbf16>
    %45 = vector.shape_cast %44 : vector<1x128x192xbf16> to vector<128x192xbf16>
    %cst_27 = arith.constant dense<0.000000e+00> : vector<128x144xf32>
    %46 = tpu.matmul %45, %40, %cst_27 {dimension_numbers = #tpu.dot_dimension_numbers<[1], [0], [0], [1], [0, 0, 1, 1], [], []>} : vector<128x192xbf16>, vector<192x144xbf16>, vector<128x144xf32> -> vector<128x144xf32>
    %47 = arith.maximumf %43, %46 : vector<128x144xf32>
    %48 = arith.truncf %47 : vector<128x144xf32> to vector<128x144xbf16>
    %c0_28 = arith.constant 0 : index
    %c0_29 = arith.constant 0 : index
    %c0_30 = arith.constant 0 : index
    %49 = vector.load %arg5[%c0_28, %c0_29, %c0_30] : memref<2x144x72xbf16, #tpu.memory_space<vmem>>, vector<1x144x72xbf16>
    %50 = vector.shape_cast %49 : vector<1x144x72xbf16> to vector<144x72xbf16>
    %cst_31 = arith.constant dense<0.000000e+00> : vector<128x72xf32>
    %51 = tpu.matmul %48, %50, %cst_31 {dimension_numbers = #tpu.dot_dimension_numbers<[1], [0], [0], [1], [0, 0, 1, 1], [], []>} : vector<128x144xbf16>, vector<144x72xbf16>, vector<128x72xf32> -> vector<128x72xf32>
    %c1_32 = arith.constant 1 : index
    %c0_33 = arith.constant 0 : index
    %c0_34 = arith.constant 0 : index
    %52 = vector.load %arg5[%c1_32, %c0_33, %c0_34] : memref<2x144x72xbf16, #tpu.memory_space<vmem>>, vector<1x144x72xbf16>
    %53 = vector.shape_cast %52 : vector<1x144x72xbf16> to vector<144x72xbf16>
    %cst_35 = arith.constant dense<0.000000e+00> : vector<128x72xf32>
    %54 = tpu.matmul %48, %53, %cst_35 {dimension_numbers = #tpu.dot_dimension_numbers<[1], [0], [0], [1], [0, 0, 1, 1], [], []>} : vector<128x144xbf16>, vector<144x72xbf16>, vector<128x72xf32> -> vector<128x72xf32>
    %55 = arith.maximumf %51, %54 : vector<128x72xf32>
    %56 = vector.shape_cast %55 : vector<128x72xf32> to vector<8x16x72xf32>
    %57 = vector.extract_strided_slice %56 {offsets = [0, 0, 0], sizes = [8, 8, 72], strides = [1, 1, 1]} : vector<8x16x72xf32> to vector<8x8x72xf32>
    %58 = vector.shape_cast %57 : vector<8x8x72xf32> to vector<64x72xf32>
    %59 = arith.truncf %58 : vector<64x72xf32> to vector<64x72xbf16>
    %c0_36 = arith.constant 0 : index
    %c0_37 = arith.constant 0 : index
    %c0_38 = arith.constant 0 : index
    %60 = vector.load %arg6[%c0_36, %c0_37, %c0_38] : memref<5x72x128xbf16, #tpu.memory_space<vmem>>, vector<1x72x128xbf16>
    %61 = vector.shape_cast %60 : vector<1x72x128xbf16> to vector<72x128xbf16>
    %cst_39 = arith.constant dense<0.000000e+00> : vector<64x128xf32>
    %62 = tpu.matmul %59, %61, %cst_39 {dimension_numbers = #tpu.dot_dimension_numbers<[1], [0], [0], [1], [0, 0, 1, 1], [], []>} : vector<64x72xbf16>, vector<72x128xbf16>, vector<64x128xf32> -> vector<64x128xf32>
    %63 = vector.extract_strided_slice %56 {offsets = [0, 1, 0], sizes = [8, 8, 72], strides = [1, 1, 1]} : vector<8x16x72xf32> to vector<8x8x72xf32>
    %64 = vector.shape_cast %63 : vector<8x8x72xf32> to vector<64x72xf32>
    %65 = arith.truncf %64 : vector<64x72xf32> to vector<64x72xbf16>
    %c1_40 = arith.constant 1 : index
    %c0_41 = arith.constant 0 : index
    %c0_42 = arith.constant 0 : index
    %66 = vector.load %arg6[%c1_40, %c0_41, %c0_42] : memref<5x72x128xbf16, #tpu.memory_space<vmem>>, vector<1x72x128xbf16>
    %67 = vector.shape_cast %66 : vector<1x72x128xbf16> to vector<72x128xbf16>
    %cst_43 = arith.constant dense<0.000000e+00> : vector<64x128xf32>
    %68 = tpu.matmul %65, %67, %cst_43 {dimension_numbers = #tpu.dot_dimension_numbers<[1], [0], [0], [1], [0, 0, 1, 1], [], []>} : vector<64x72xbf16>, vector<72x128xbf16>, vector<64x128xf32> -> vector<64x128xf32>
    %69 = arith.addf %62, %68 : vector<64x128xf32>
    %70 = vector.extract_strided_slice %56 {offsets = [0, 2, 0], sizes = [8, 8, 72], strides = [1, 1, 1]} : vector<8x16x72xf32> to vector<8x8x72xf32>
    %71 = vector.shape_cast %70 : vector<8x8x72xf32> to vector<64x72xf32>
    %72 = arith.truncf %71 : vector<64x72xf32> to vector<64x72xbf16>
    %c2_44 = arith.constant 2 : index
    %c0_45 = arith.constant 0 : index
    %c0_46 = arith.constant 0 : index
    %73 = vector.load %arg6[%c2_44, %c0_45, %c0_46] : memref<5x72x128xbf16, #tpu.memory_space<vmem>>, vector<1x72x128xbf16>
    %74 = vector.shape_cast %73 : vector<1x72x128xbf16> to vector<72x128xbf16>
    %cst_47 = arith.constant dense<0.000000e+00> : vector<64x128xf32>
    %75 = tpu.matmul %72, %74, %cst_47 {dimension_numbers = #tpu.dot_dimension_numbers<[1], [0], [0], [1], [0, 0, 1, 1], [], []>} : vector<64x72xbf16>, vector<72x128xbf16>, vector<64x128xf32> -> vector<64x128xf32>
    %76 = arith.addf %69, %75 : vector<64x128xf32>
    %77 = vector.extract_strided_slice %56 {offsets = [0, 3, 0], sizes = [8, 8, 72], strides = [1, 1, 1]} : vector<8x16x72xf32> to vector<8x8x72xf32>
    %78 = vector.shape_cast %77 : vector<8x8x72xf32> to vector<64x72xf32>
    %79 = arith.truncf %78 : vector<64x72xf32> to vector<64x72xbf16>
    %c3_48 = arith.constant 3 : index
    %c0_49 = arith.constant 0 : index
    %c0_50 = arith.constant 0 : index
    %80 = vector.load %arg6[%c3_48, %c0_49, %c0_50] : memref<5x72x128xbf16, #tpu.memory_space<vmem>>, vector<1x72x128xbf16>
    %81 = vector.shape_cast %80 : vector<1x72x128xbf16> to vector<72x128xbf16>
    %cst_51 = arith.constant dense<0.000000e+00> : vector<64x128xf32>
    %82 = tpu.matmul %79, %81, %cst_51 {dimension_numbers = #tpu.dot_dimension_numbers<[1], [0], [0], [1], [0, 0, 1, 1], [], []>} : vector<64x72xbf16>, vector<72x128xbf16>, vector<64x128xf32> -> vector<64x128xf32>
    %83 = arith.addf %76, %82 : vector<64x128xf32>
    %84 = vector.extract_strided_slice %56 {offsets = [0, 4, 0], sizes = [8, 8, 72], strides = [1, 1, 1]} : vector<8x16x72xf32> to vector<8x8x72xf32>
    %85 = vector.shape_cast %84 : vector<8x8x72xf32> to vector<64x72xf32>
    %86 = arith.truncf %85 : vector<64x72xf32> to vector<64x72xbf16>
    %c4_52 = arith.constant 4 : index
    %c0_53 = arith.constant 0 : index
    %c0_54 = arith.constant 0 : index
    %87 = vector.load %arg6[%c4_52, %c0_53, %c0_54] : memref<5x72x128xbf16, #tpu.memory_space<vmem>>, vector<1x72x128xbf16>
    %88 = vector.shape_cast %87 : vector<1x72x128xbf16> to vector<72x128xbf16>
    %cst_55 = arith.constant dense<0.000000e+00> : vector<64x128xf32>
    %89 = tpu.matmul %86, %88, %cst_55 {dimension_numbers = #tpu.dot_dimension_numbers<[1], [0], [0], [1], [0, 0, 1, 1], [], []>} : vector<64x72xbf16>, vector<72x128xbf16>, vector<64x128xf32> -> vector<64x128xf32>
    %90 = arith.addf %83, %89 : vector<64x128xf32>
    %c0_56 = arith.constant 0 : index
    %c0_57 = arith.constant 0 : index
    %91 = vector.load %arg7[%c0_56, %c0_57] : memref<1x128xf32, #tpu.memory_space<vmem>>, vector<1x128xf32>
    %92 = vector.broadcast %91 : vector<1x128xf32> to vector<64x128xf32>
    %93 = arith.addf %90, %92 : vector<64x128xf32>
    %cst_58 = arith.constant 0.000000e+00 : f32
    %94 = vector.broadcast %cst_58 : f32 to vector<64x128xf32>
    %95 = arith.maximumf %93, %94 : vector<64x128xf32>
    %96 = arith.truncf %95 : vector<64x128xf32> to vector<64x128xbf16>
    %c0_59 = arith.constant 0 : index
    %c0_60 = arith.constant 0 : index
    %c0_61 = arith.constant 0 : index
    %97 = vector.load %arg8[%c0_59, %c0_60, %c0_61] : memref<2x32x64xbf16, #tpu.memory_space<vmem>>, vector<1x32x64xbf16>
    %98 = vector.shape_cast %97 : vector<1x32x64xbf16> to vector<32x64xbf16>
    %cst_62 = arith.constant dense<0.000000e+00> : vector<32x128xf32>
    %99 = tpu.matmul %98, %96, %cst_62 {dimension_numbers = #tpu.dot_dimension_numbers<[1], [0], [0], [1], [0, 0, 1, 1], [], []>} : vector<32x64xbf16>, vector<64x128xbf16>, vector<32x128xf32> -> vector<32x128xf32>
    %c1_63 = arith.constant 1 : index
    %c0_64 = arith.constant 0 : index
    %c0_65 = arith.constant 0 : index
    %100 = vector.load %arg8[%c1_63, %c0_64, %c0_65] : memref<2x32x64xbf16, #tpu.memory_space<vmem>>, vector<1x32x64xbf16>
    %101 = vector.shape_cast %100 : vector<1x32x64xbf16> to vector<32x64xbf16>
    %cst_66 = arith.constant dense<0.000000e+00> : vector<32x128xf32>
    %102 = tpu.matmul %101, %96, %cst_66 {dimension_numbers = #tpu.dot_dimension_numbers<[1], [0], [0], [1], [0, 0, 1, 1], [], []>} : vector<32x64xbf16>, vector<64x128xbf16>, vector<32x128xf32> -> vector<32x128xf32>
    %103 = arith.maximumf %99, %102 : vector<32x128xf32>
    %104 = arith.truncf %103 : vector<32x128xf32> to vector<32x128xbf16>
    %c0_67 = arith.constant 0 : index
    %c0_68 = arith.constant 0 : index
    %c0_69 = arith.constant 0 : index
    %105 = vector.load %arg9[%c0_67, %c0_68, %c0_69] : memref<2x128x64xbf16, #tpu.memory_space<vmem>>, vector<1x128x64xbf16>
    %106 = vector.shape_cast %105 : vector<1x128x64xbf16> to vector<128x64xbf16>
    %cst_70 = arith.constant dense<0.000000e+00> : vector<32x64xf32>
    %107 = tpu.matmul %104, %106, %cst_70 {dimension_numbers = #tpu.dot_dimension_numbers<[1], [0], [0], [1], [0, 0, 1, 1], [], []>} : vector<32x128xbf16>, vector<128x64xbf16>, vector<32x64xf32> -> vector<32x64xf32>
    %c1_71 = arith.constant 1 : index
    %c0_72 = arith.constant 0 : index
    %c0_73 = arith.constant 0 : index
    %108 = vector.load %arg9[%c1_71, %c0_72, %c0_73] : memref<2x128x64xbf16, #tpu.memory_space<vmem>>, vector<1x128x64xbf16>
    %109 = vector.shape_cast %108 : vector<1x128x64xbf16> to vector<128x64xbf16>
    %cst_74 = arith.constant dense<0.000000e+00> : vector<32x64xf32>
    %110 = tpu.matmul %104, %109, %cst_74 {dimension_numbers = #tpu.dot_dimension_numbers<[1], [0], [0], [1], [0, 0, 1, 1], [], []>} : vector<32x128xbf16>, vector<128x64xbf16>, vector<32x64xf32> -> vector<32x64xf32>
    %111 = arith.maximumf %107, %110 : vector<32x64xf32>
    %c0_75 = arith.constant 0 : index
    %c0_76 = arith.constant 0 : index
    %112 = vector.load %arg11[%c0_75, %c0_76] : memref<1x128xf32, #tpu.memory_space<vmem>>, vector<1x128xf32>
    %113 = vector.extract_strided_slice %111 {offsets = [0, 0], sizes = [8, 64], strides = [1, 1]} : vector<32x64xf32> to vector<8x64xf32>
    %114 = arith.truncf %113 : vector<8x64xf32> to vector<8x64xbf16>
    %c0_77 = arith.constant 0 : index
    %c0_78 = arith.constant 0 : index
    %c0_79 = arith.constant 0 : index
    %115 = vector.load %arg10[%c0_77, %c0_78, %c0_79] : memref<4x64x128xbf16, #tpu.memory_space<vmem>>, vector<1x64x128xbf16>
    %116 = vector.shape_cast %115 : vector<1x64x128xbf16> to vector<64x128xbf16>
    %cst_80 = arith.constant dense<0.000000e+00> : vector<8x128xf32>
    %117 = tpu.matmul %114, %116, %cst_80 {dimension_numbers = #tpu.dot_dimension_numbers<[1], [0], [0], [1], [0, 0, 1, 1], [], []>} : vector<8x64xbf16>, vector<64x128xbf16>, vector<8x128xf32> -> vector<8x128xf32>
    %118 = vector.broadcast %112 : vector<1x128xf32> to vector<8x128xf32>
    %119 = arith.addf %118, %117 : vector<8x128xf32>
    %120 = vector.extract_strided_slice %111 {offsets = [8, 0], sizes = [8, 64], strides = [1, 1]} : vector<32x64xf32> to vector<8x64xf32>
    %121 = arith.truncf %120 : vector<8x64xf32> to vector<8x64xbf16>
    %c1_81 = arith.constant 1 : index
    %c0_82 = arith.constant 0 : index
    %c0_83 = arith.constant 0 : index
    %122 = vector.load %arg10[%c1_81, %c0_82, %c0_83] : memref<4x64x128xbf16, #tpu.memory_space<vmem>>, vector<1x64x128xbf16>
    %123 = vector.shape_cast %122 : vector<1x64x128xbf16> to vector<64x128xbf16>
    %cst_84 = arith.constant dense<0.000000e+00> : vector<8x128xf32>
    %124 = tpu.matmul %121, %123, %cst_84 {dimension_numbers = #tpu.dot_dimension_numbers<[1], [0], [0], [1], [0, 0, 1, 1], [], []>} : vector<8x64xbf16>, vector<64x128xbf16>, vector<8x128xf32> -> vector<8x128xf32>
    %125 = arith.addf %119, %124 : vector<8x128xf32>
    %126 = vector.extract_strided_slice %111 {offsets = [16, 0], sizes = [8, 64], strides = [1, 1]} : vector<32x64xf32> to vector<8x64xf32>
    %127 = arith.truncf %126 : vector<8x64xf32> to vector<8x64xbf16>
    %c2_85 = arith.constant 2 : index
    %c0_86 = arith.constant 0 : index
    %c0_87 = arith.constant 0 : index
    %128 = vector.load %arg10[%c2_85, %c0_86, %c0_87] : memref<4x64x128xbf16, #tpu.memory_space<vmem>>, vector<1x64x128xbf16>
    %129 = vector.shape_cast %128 : vector<1x64x128xbf16> to vector<64x128xbf16>
    %cst_88 = arith.constant dense<0.000000e+00> : vector<8x128xf32>
    %130 = tpu.matmul %127, %129, %cst_88 {dimension_numbers = #tpu.dot_dimension_numbers<[1], [0], [0], [1], [0, 0, 1, 1], [], []>} : vector<8x64xbf16>, vector<64x128xbf16>, vector<8x128xf32> -> vector<8x128xf32>
    %131 = arith.addf %125, %130 : vector<8x128xf32>
    %132 = vector.extract_strided_slice %111 {offsets = [24, 0], sizes = [8, 64], strides = [1, 1]} : vector<32x64xf32> to vector<8x64xf32>
    %133 = arith.truncf %132 : vector<8x64xf32> to vector<8x64xbf16>
    %c3_89 = arith.constant 3 : index
    %c0_90 = arith.constant 0 : index
    %c0_91 = arith.constant 0 : index
    %134 = vector.load %arg10[%c3_89, %c0_90, %c0_91] : memref<4x64x128xbf16, #tpu.memory_space<vmem>>, vector<1x64x128xbf16>
    %135 = vector.shape_cast %134 : vector<1x64x128xbf16> to vector<64x128xbf16>
    %cst_92 = arith.constant dense<0.000000e+00> : vector<8x128xf32>
    %136 = tpu.matmul %133, %135, %cst_92 {dimension_numbers = #tpu.dot_dimension_numbers<[1], [0], [0], [1], [0, 0, 1, 1], [], []>} : vector<8x64xbf16>, vector<64x128xbf16>, vector<8x128xf32> -> vector<8x128xf32>
    %137 = arith.addf %131, %136 : vector<8x128xf32>
    %cst_93 = arith.constant 0.000000e+00 : f32
    %138 = vector.broadcast %cst_93 : f32 to vector<8x128xf32>
    %139 = arith.maximumf %137, %138 : vector<8x128xf32>
    %140 = arith.truncf %139 : vector<8x128xf32> to vector<8x128xbf16>
    %c0_94 = arith.constant 0 : index
    %c0_95 = arith.constant 0 : index
    %141 = vector.load %arg12[%c0_94, %c0_95] : memref<128x128xbf16, #tpu.memory_space<vmem>>, vector<128x128xbf16>
    %cst_96 = arith.constant dense<0.000000e+00> : vector<8x128xf32>
    %142 = tpu.matmul %140, %141, %cst_96 {dimension_numbers = #tpu.dot_dimension_numbers<[1], [0], [0], [1], [0, 0, 1, 1], [], []>} : vector<8x128xbf16>, vector<128x128xbf16>, vector<8x128xf32> -> vector<8x128xf32>
    %c0_97 = arith.constant 0 : index
    %c0_98 = arith.constant 0 : index
    %143 = vector.load %arg13[%c0_97, %c0_98] : memref<1x128xf32, #tpu.memory_space<vmem>>, vector<1x128xf32>
    %144 = vector.broadcast %143 : vector<1x128xf32> to vector<8x128xf32>
    %145 = arith.addf %142, %144 : vector<8x128xf32>
    %cst_99 = arith.constant 0.000000e+00 : f32
    %146 = vector.broadcast %cst_99 : f32 to vector<8x128xf32>
    %147 = arith.maximumf %145, %146 : vector<8x128xf32>
    %148 = arith.truncf %147 : vector<8x128xf32> to vector<8x128xbf16>
    %c0_100 = arith.constant 0 : index
    %c0_101 = arith.constant 0 : index
    %149 = vector.load %arg14[%c0_100, %c0_101] : memref<128x128xbf16, #tpu.memory_space<vmem>>, vector<128x128xbf16>
    %cst_102 = arith.constant dense<0.000000e+00> : vector<8x128xf32>
    %150 = tpu.matmul %148, %149, %cst_102 {dimension_numbers = #tpu.dot_dimension_numbers<[1], [0], [0], [1], [0, 0, 1, 1], [], []>} : vector<8x128xbf16>, vector<128x128xbf16>, vector<8x128xf32> -> vector<8x128xf32>
    %c0_103 = arith.constant 0 : index
    %c0_104 = arith.constant 0 : index
    %151 = vector.load %arg15[%c0_103, %c0_104] : memref<1x128xf32, #tpu.memory_space<vmem>>, vector<1x128xf32>
    %152 = vector.broadcast %151 : vector<1x128xf32> to vector<8x128xf32>
    %153 = arith.addf %150, %152 : vector<8x128xf32>
    %c0_105 = arith.constant 0 : index
    %c0_106 = arith.constant 0 : index
    %154 = vector.load %arg16[%c0_105, %c0_106] : memref<8x128xf32, #tpu.memory_space<vmem>>, vector<8x128xf32>
    tpu.vector_store %arg16[%c0_105, %c0_106], %153 {strides = array<i32>} : memref<8x128xf32, #tpu.memory_space<vmem>>, vector<8x128xf32>,
    return
  }
  func.func @transform_0(%arg0: i32) -> (i32, i32, i32) {
    %c0_i32 = arith.constant 0 : i32
    %c0_i32_0 = arith.constant 0 : i32
    %c0_i32_1 = arith.constant 0 : i32
    return %arg0, %c0_i32, %c0_i32_0 : i32, i32, i32
  }
  func.func @transform_1(%arg0: i32) -> (i32, i32, i32) {
    %c0_i32 = arith.constant 0 : i32
    %c0_i32_0 = arith.constant 0 : i32
    %c0_i32_1 = arith.constant 0 : i32
    %c0_i32_2 = arith.constant 0 : i32
    return %c0_i32, %c0_i32_0, %c0_i32_1 : i32, i32, i32
  }
  func.func @transform_2(%arg0: i32) -> (i32, i32) {
    %c0_i32 = arith.constant 0 : i32
    %c0_i32_0 = arith.constant 0 : i32
    %c0_i32_1 = arith.constant 0 : i32
    return %c0_i32, %c0_i32_0 : i32, i32
  }
  func.func @transform_3(%arg0: i32) -> (i32, i32, i32) {
    %c0_i32 = arith.constant 0 : i32
    %c0_i32_0 = arith.constant 0 : i32
    %c0_i32_1 = arith.constant 0 : i32
    %c0_i32_2 = arith.constant 0 : i32
    return %c0_i32, %c0_i32_0, %c0_i32_1 : i32, i32, i32
  }
  func.func @transform_4(%arg0: i32) -> (i32, i32, i32) {
    %c0_i32 = arith.constant 0 : i32
    %c0_i32_0 = arith.constant 0 : i32
    %c0_i32_1 = arith.constant 0 : i32
    %c0_i32_2 = arith.constant 0 : i32
    return %c0_i32, %c0_i32_0, %c0_i32_1 : i32, i32, i32
  }
  func.func @transform_5(%arg0: i32) -> (i32, i32, i32) {
    %c0_i32 = arith.constant 0 : i32
    %c0_i32_0 = arith.constant 0 : i32
    %c0_i32_1 = arith.constant 0 : i32
    %c0_i32_2 = arith.constant 0 : i32
    return %c0_i32, %c0_i32_0, %c0_i32_1 : i32, i32, i32
  }
  func.func @transform_6(%arg0: i32) -> (i32, i32) {
    %c0_i32 = arith.constant 0 : i32
    %c0_i32_0 = arith.constant 0 : i32
    %c0_i32_1 = arith.constant 0 : i32
    return %c0_i32, %c0_i32_0 : i32, i32
  }
  func.func @transform_7(%arg0: i32) -> (i32, i32, i32) {
    %c0_i32 = arith.constant 0 : i32
    %c0_i32_0 = arith.constant 0 : i32
    %c0_i32_1 = arith.constant 0 : i32
    %c0_i32_2 = arith.constant 0 : i32
    return %c0_i32, %c0_i32_0, %c0_i32_1 : i32, i32, i32
  }
  func.func @transform_8(%arg0: i32) -> (i32, i32, i32) {
    %c0_i32 = arith.constant 0 : i32
    %c0_i32_0 = arith.constant 0 : i32
    %c0_i32_1 = arith.constant 0 : i32
    %c0_i32_2 = arith.constant 0 : i32
    return %c0_i32, %c0_i32_0, %c0_i32_1 : i32, i32, i32
  }
  func.func @transform_9(%arg0: i32) -> (i32, i32, i32) {
    %c0_i32 = arith.constant 0 : i32
    %c0_i32_0 = arith.constant 0 : i32
    %c0_i32_1 = arith.constant 0 : i32
    %c0_i32_2 = arith.constant 0 : i32
    return %c0_i32, %c0_i32_0, %c0_i32_1 : i32, i32, i32
  }
  func.func @transform_10(%arg0: i32) -> (i32, i32) {
    %c0_i32 = arith.constant 0 : i32
    %c0_i32_0 = arith.constant 0 : i32
    %c0_i32_1 = arith.constant 0 : i32
    return %c0_i32, %c0_i32_0 : i32, i32
  }
  func.func @transform_11(%arg0: i32) -> (i32, i32) {
    %c0_i32 = arith.constant 0 : i32
    %c0_i32_0 = arith.constant 0 : i32
    %c0_i32_1 = arith.constant 0 : i32
    return %c0_i32, %c0_i32_0 : i32, i32
  }
  func.func @transform_12(%arg0: i32) -> (i32, i32) {
    %c0_i32 = arith.constant 0 : i32
    %c0_i32_0 = arith.constant 0 : i32
    %c0_i32_1 = arith.constant 0 : i32
    return %c0_i32, %c0_i32_0 : i32, i32
  }
  func.func @transform_13(%arg0: i32) -> (i32, i32) {
    %c0_i32 = arith.constant 0 : i32
    %c0_i32_0 = arith.constant 0 : i32
    %c0_i32_1 = arith.constant 0 : i32
    return %c0_i32, %c0_i32_0 : i32, i32
  }
  func.func @transform_14(%arg0: i32) -> (i32, i32) {
    %c0_i32 = arith.constant 0 : i32
    %c0_i32_0 = arith.constant 0 : i32
    %c0_i32_1 = arith.constant 0 : i32
    return %c0_i32, %c0_i32_0 : i32, i32
  }
  func.func @transform_15(%arg0: i32) -> (i32, i32) {
    %c0_i32 = arith.constant 0 : i32
    %c0_i32_0 = arith.constant 0 : i32
    return %arg0, %c0_i32 : i32, i32
  }
}

</mosaic_0001>

<bundles_post_ra>
// kernel: tile.13
= control target key start
LH: loop header
LB: loop body
LE: loop exit
PB: predicated region body
PF: predicated region fallthrough
CT: control target
= control target key end

     0   :  { %s34_s0 = inlined_call_operand.vmem [shape: f32[6], index: 0, kind: input, shape index: {}]   ;;  %s35_s1 = inlined_call_operand.vmem [shape: f32[24,6], index: 1, kind: output, shape index: {}]  }
   0x1   :  { %v4_v0 = vld [vmem:[%s34_s0] ss:$0 sm:$0xff] }
   0x2   :  { %5 = vst [vmem:[%s35_s1] sm:$0xff] %v4_v0  ;;  %10 = vst [vmem:[%s35_s1 + $0x8] sm:$0xff] %v4_v0 }
   0x3   :  { %11 = vst [vmem:[%s35_s1 + $0x10] sm:$0xff] %v4_v0 }

// kernel: tile.14
= control target key start
LH: loop header
LB: loop body
LE: loop exit
PB: predicated region body
PF: predicated region fallthrough
CT: control target
= control target key end

     0   :  { %vm9_vm0 = vcmask 15360   ;;  %s211_s12 = smov 126   ;;  %s212_s13 = smov 114   ;;  %vm3_vm1 = vcmask 48128   ;;  %vm13_vm2 = vcmask 31744   ;;  %vm16_vm3 = vcmask 1048560   ;;  %s325_s0 = inlined_call_operand.vmem [shape: f32[24,6], index: 0, kind: input, shape index: {}]   ;;  %s326_s1 = inlined_call_operand.vmem [shape: f32[1,144], index: 1, kind: output, shape index: {}]  }
   0x1   :  { %v163_v0 = vld [vmem:[%s325_s0 + $0x15] sm:$0x1]   ;;  %v166_v3 = vld [vmem:[%s325_s0 + $0x13] sm:$0x1]   ;;  %v165_v4 = vld [vmem:[%s325_s0 + $0x14] sm:$0x1]  }
   0x2   :  { %v164_v1 = vld [vmem:[%s325_s0 + $0x15] sm:$0x1]   ;;  %26 = vrot.lane.b32.xlu1 %v166_v3, %s212_s13  ;;  %v167_v5 = vld [vmem:[%s325_s0 + $0x12] sm:$0x1]   ;;  %s213_s18 = smov 120   ;;  %s214_s19 = smov 108  }
   0x3   :  { %v10_v2 = vsel %vm9_vm0, %v164_v1, %v163_v0  ;;  %v168_v6 = vld [vmem:[%s325_s0 + $0x11] sm:$0x1]   ;;  %v169_v7 = vld [vmem:[%s325_s0 + $0x10] sm:$0x1]   ;;  %s215_s24 = smov 102   ;;  %s216_s25 = smov 96  }
   0x4   :  { %11 = vrot.lane.b32.xlu0 %v10_v2, %s211_s12  ;;  %v170_v8 = vld [vmem:[%s325_s0 + $0xf] sm:$0x1]   ;;  %v171_v9 = vld [vmem:[%s325_s0 + $0xe] sm:$0x1]   ;;  %v2_v10 = vld [vmem:[%s325_s0] sm:$0x1]  }
   0x5   :  { %4 = vst.msk [vmem:[#allocation0] sm:$0x1] %vm3_vm1, %v2_v10   ;;  %s217_s3 = smov 90   ;;  %s218_s4 = smov 84   ;;  %v172_v11 = vld [vmem:[%s325_s0 + $0xd] sm:$0x1]  }
   0x6   :  { %32 = vrot.lane.b32.xlu1 %v167_v5, %s214_s19  ;;  %v173_v12 = vld [vmem:[%s325_s0 + $0xc] sm:$0x1]   ;;  %s219_s9 = smov 78   ;;  %s220_s10 = smov 72   ;;  %v174_v13 = vld [vmem:[%s325_s0 + $0xb] sm:$0x1]  }
   0x7   :  { %v175_v14 = vld [vmem:[%s325_s0 + $0xa] sm:$0x1]   ;;  %s221_s15 = smov 66   ;;  %s222_s16 = smov 60   ;;  %v176_v15 = vld [vmem:[%s325_s0 + $0x9] sm:$0x1]  }
   0x8   :  { %20 = vrot.lane.b32.xlu0 %v165_v4, %s213_s18  ;;  %v177_v16 = vld [vmem:[%s325_s0 + $0x8] sm:$0x1]   ;;  %s223_s21 = smov 54   ;;  %s224_s22 = smov 48   ;;  %v178_v17 = vld [vmem:[%s325_s0 + $0x7] sm:$0x1]  }
   0x9   :  { %v179_v18 = vld [vmem:[%s325_s0 + $0x6] sm:$0x1]   ;;  %s225_s27 = smov 42   ;;  %s226_s28 = smov 36   ;;  %v180_v19 = vld [vmem:[%s325_s0 + $0x5] sm:$0x1]  }
   0xa   :  { %44 = vrot.lane.b32.xlu1 %v169_v7, %s216_s25  ;;  %v181_v20 = vld [vmem:[%s325_s0 + $0x4] sm:$0x1]   ;;  %s228_s5 = smov 24   ;;  %v182_v21 = vld [vmem:[%s325_s0 + $0x3] sm:$0x1]   ;;  %s230_s11 = smov 12  }
   0xb   :  { %v183_v22 = vld [vmem:[%s325_s0 + $0x2] sm:$0x1]   ;;  %v184_v23 = vld [vmem:[%s325_s0 + $0x17] sm:$0x1]   ;;  %v185_v24 = vld [vmem:[%s325_s0 + $0x1] sm:$0x1]  }
   0xc   :  { %38 = vrot.lane.b32.xlu0 %v168_v6, %s215_s24  ;;  %s232_s17 = smov 6   ;;  %v186_v25 = vld [vmem:[%s325_s0 + $0x16] sm:$0x1]   ;;  %s233_s0 = smov 4   ;;  %vm22_vm4 = vcmask 1032128   ;;  %vm28_vm5 = vcmask 982928  }
   0xd   :  { %vm34_vm6 = vcmask 933728   ;;  %vm40_vm7 = vcmask 884528   ;;  %vm46_vm8 = vcmask 835328   ;;  %vm52_vm9 = vcmask 786128  }
   0xe   :  { %56 = vrot.lane.b32.xlu1 %v171_v9, %s218_s4  ;;  %s227_s4 = smov 30   ;;  %vm58_vm10 = vcmask 736928   ;;  %vm64_vm11 = vcmask 687728   ;;  %vm70_vm12 = vcmask 638528   ;;  %vm76_vm13 = vcmask 589328  }
   0xf   :  { %vm82_vm14 = vcmask 540128   ;;  %vm88_vm15 = vcmask 490928   ;;  %vm94_vm0 = vcmask 441728   ;;  %vm100_vm1 = vcmask 392528  }
  0x10   :  { %50 = vrot.lane.b32.xlu0 %v170_v8, %s217_s3 }
  0x12   :  { %68 = vrot.lane.b32.xlu1 %v173_v12, %s220_s10  ;;  %s229_s10 = smov 18  }
  0x14   :  { %62 = vrot.lane.b32.xlu0 %v172_v11, %s219_s9 }
  0x16   :  { %80 = vrot.lane.b32.xlu1 %v175_v14, %s222_s16  ;;  %s231_s16 = smov 10  }
  0x18   :  { %74 = vrot.lane.b32.xlu0 %v174_v13, %s221_s15 }
  0x1a   :  { %92 = vrot.lane.b32.xlu1 %v177_v16, %s224_s22 }
  0x1c   :  { %86 = vrot.lane.b32.xlu0 %v176_v15, %s223_s21 }
  0x1e   :  { %104 = vrot.lane.b32.xlu1 %v179_v18, %s226_s28 }
  0x20   :  { %98 = vrot.lane.b32.xlu0 %v178_v17, %s225_s27 }
  0x22   :  { %116 = vrot.lane.b32.xlu1 %v181_v20, %s228_s5 }
  0x24   :  { %110 = vrot.lane.b32.xlu0 %v180_v19, %s227_s4 }
  0x26   :  { %128 = vrot.lane.b32.xlu1 %v183_v22, %s230_s11 }
  0x28   :  { %122 = vrot.lane.b32.xlu0 %v182_v21, %s229_s10 }
  0x2a   :  { %141 = vrot.lane.b32.xlu1 %v185_v24, %s232_s17 }
  0x2c   :  { %134 = vrot.lane.b32.xlu0 %v184_v23, %s231_s16 }
  0x30   :  { %147 = vrot.lane.b32.xlu0 %v186_v25, %s233_s0 }
  0x74   :  { %v27_v27 = vpop.permute.xlu1 %26  }
  0x76   :  { %v12_v26 = vpop.permute.xlu0 %11  }
  0x77   :  { %15 = vst.msk [vmem:[#allocation0 + $0x8] sm:$0x1] %vm13_vm2, %v12_v26   ;;  %vm106_vm2 = vcmask 343328  }
  0x78   :  { %17 = vst.msk [vmem:[#allocation0] sm:$0x1] %vm16_vm3, %v12_v26   ;;  %v33_v29 = vpop.permute.xlu1 %32   ;;  %vm112_vm3 = vcmask 294128  }
  0x7a   :  { %v21_v28 = vpop.permute.xlu0 %20  }
  0x7b   :  { %23 = vst.msk [vmem:[#allocation0] sm:$0x1] %vm22_vm4, %v21_v28   ;;  %vm118_vm4 = vcmask 244928  }
  0x7c   :  { %29 = vst.msk [vmem:[#allocation0] sm:$0x1] %vm28_vm5, %v27_v27   ;;  %v45_v31 = vpop.permute.xlu1 %44   ;;  %vm124_vm5 = vcmask 195728  }
  0x7d   :  { %35 = vst.msk [vmem:[#allocation0] sm:$0x1] %vm34_vm6, %v33_v29   ;;  %vm130_vm6 = vcmask 146528  }
  0x7e   :  { %v39_v30 = vpop.permute.xlu0 %38  }
  0x7f   :  { %41 = vst.msk [vmem:[#allocation0] sm:$0x1] %vm40_vm7, %v39_v30   ;;  %vm136_vm7 = vcmask 130128  }
  0x80   :  { %47 = vst.msk [vmem:[#allocation0] sm:$0x1] %vm46_vm8, %v45_v31   ;;  %v57_v33 = vpop.permute.xlu1 %56   ;;  %vm143_vm8 = vcmask 97328  }
  0x82   :  { %v51_v32 = vpop.permute.xlu0 %50  }
  0x83   :  { %53 = vst.msk [vmem:[#allocation0] sm:$0x1] %vm52_vm9, %v51_v32   ;;  %vm149_vm9 = vcmask 80928  }
  0x84   :  { %59 = vst.msk [vmem:[#allocation0] sm:$0x1] %vm58_vm10, %v57_v33   ;;  %v69_v35 = vpop.permute.xlu1 %68  }
  0x86   :  { %v63_v34 = vpop.permute.xlu0 %62  }
  0x87   :  { %65 = vst.msk [vmem:[#allocation0] sm:$0x1] %vm64_vm11, %v63_v34  }
  0x88   :  { %71 = vst.msk [vmem:[#allocation0] sm:$0x1] %vm70_vm12, %v69_v35   ;;  %v81_v37 = vpop.permute.xlu1 %80  }
  0x8a   :  { %v75_v36 = vpop.permute.xlu0 %74  }
  0x8b   :  { %77 = vst.msk [vmem:[#allocation0] sm:$0x1] %vm76_vm13, %v75_v36  }
  0x8c   :  { %83 = vst.msk [vmem:[#allocation0] sm:$0x1] %vm82_vm14, %v81_v37   ;;  %v93_v39 = vpop.permute.xlu1 %92  }
  0x8e   :  { %v87_v38 = vpop.permute.xlu0 %86  }
  0x8f   :  { %89 = vst.msk [vmem:[#allocation0] sm:$0x1] %vm88_vm15, %v87_v38  }
  0x90   :  { %95 = vst.msk [vmem:[#allocation0] sm:$0x1] %vm94_vm0, %v93_v39   ;;  %v105_v41 = vpop.permute.xlu1 %104  }
  0x92   :  { %v99_v40 = vpop.permute.xlu0 %98  }
  0x93   :  { %101 = vst.msk [vmem:[#allocation0] sm:$0x1] %vm100_vm1, %v99_v40  }
  0x94   :  { %107 = vst.msk [vmem:[#allocation0] sm:$0x1] %vm106_vm2, %v105_v41   ;;  %v117_v43 = vpop.permute.xlu1 %116  }
  0x96   :  { %v111_v42 = vpop.permute.xlu0 %110  }
  0x97   :  { %113 = vst.msk [vmem:[#allocation0] sm:$0x1] %vm112_vm3, %v111_v42  }
  0x98   :  { %119 = vst.msk [vmem:[#allocation0] sm:$0x1] %vm118_vm4, %v117_v43   ;;  %v129_v45 = vpop.permute.xlu1 %128  }
  0x9a   :  { %v123_v44 = vpop.permute.xlu0 %122  }
  0x9b   :  { %125 = vst.msk [vmem:[#allocation0] sm:$0x1] %vm124_vm5, %v123_v44  }
  0x9c   :  { %131 = vst.msk [vmem:[#allocation0] sm:$0x1] %vm130_vm6, %v129_v45   ;;  %v142_v47 = vpop.permute.xlu1 %141  }
  0x9d   :  { %144 = vst.msk [vmem:[#allocation0] sm:$0x1] %vm143_vm8, %v142_v47  }
  0x9e   :  { %v135_v46 = vpop.permute.xlu0 %134  }
  0x9f   :  { %138 = vst.msk [vmem:[#allocation0 + $0x8] sm:$0x1] %vm136_vm7, %v135_v46  }
  0xa2   :  { %v148_v48 = vpop.permute.xlu0 %147  }
  0xa3   :  { %151 = vst.msk [vmem:[#allocation0 + $0x8] sm:$0x1] %vm149_vm9, %v148_v48  }
  0xa4   :  { %v155_v49 = vld [vmem:[#allocation0] sm:$0x1] }
  0xa5   :  { %157 = vst [vmem:[%s326_s1] sm:$0x1] %v155_v49 }
  0xaa   :  { %v159_v50 = vld [vmem:[#allocation0 + $0x8] sm:$0x1] }
  0xab   :  { %187 = vst [vmem:[%s326_s1 + $0x1] sm:$0x1] %v159_v50 }

// kernel: tile.18
= control target key start
LH: loop header
LB: loop body
LE: loop exit
PB: predicated region body
PF: predicated region fallthrough
CT: control target
= control target key end

     0   :  { %s22_s0 = inlined_call_operand.vmem [shape: f32[16], index: 0, kind: input, shape index: {}]   ;;  %s23_s1 = inlined_call_operand.vmem [shape: f32[8,16], index: 1, kind: output, shape index: {}]  }
   0x1   :  { %v4_v0 = vld [vmem:[%s22_s0] ss:$0 sm:$0xff] }
   0x2   :  { %5 = vst [vmem:[%s23_s1] sm:$0xff] %v4_v0 }

// kernel: tile.19
= control target key start
LH: loop header
LB: loop body
LE: loop exit
PB: predicated region body
PF: predicated region fallthrough
CT: control target
= control target key end

     0   :  { %s67_s10 = smov 112   ;;  %s68_s11 = smov 80   ;;  %vm3_vm0 = vcmask 130048   ;;  %vm9_vm1 = vcmask 1048448   ;;  %vm15_vm2 = vcmask 917248   ;;  %vm21_vm3 = vcmask 786048   ;;  %s111_s0 = inlined_call_operand.vmem [shape: f32[8,16], index: 0, kind: input, shape index: {}]   ;;  %s112_s1 = inlined_call_operand.vmem [shape: f32[1,128], index: 1, kind: output, shape index: {}]  }
   0x1   :  { %v53_v0 = vld [vmem:[%s111_s0 + $0x7] sm:$0x1]   ;;  %v55_v1 = vld [vmem:[%s111_s0 + $0x5] sm:$0x1]   ;;  %v54_v2 = vld [vmem:[%s111_s0 + $0x6] sm:$0x1]  }
   0x2   :  { %7 = vrot.lane.b32.xlu0 %v53_v0, %s67_s10  ;;  %19 = vrot.lane.b32.xlu1 %v55_v1, %s68_s11  ;;  %v56_v3 = vld [vmem:[%s111_s0 + $0x4] sm:$0x1]   ;;  %v2_v4 = vld [vmem:[%s111_s0] sm:$0x1]   ;;  %s69_s18 = smov 96   ;;  %s70_s19 = smov 64  }
   0x3   :  { %4 = vst.msk [vmem:[#allocation0] sm:$0x1] %vm3_vm0, %v2_v4   ;;  %v57_v5 = vld [vmem:[%s111_s0 + $0x3] sm:$0x1]   ;;  %v58_v6 = vld [vmem:[%s111_s0 + $0x2] sm:$0x1]  }
   0x4   :  { %s71_s24 = smov 48   ;;  %s72_s25 = smov 32   ;;  %v59_v7 = vld [vmem:[%s111_s0 + $0x1] sm:$0x1]   ;;  %vm27_vm4 = vcmask 654848   ;;  %vm33_vm5 = vcmask 523648  }
   0x5   :  { %s73_s0 = smov 16   ;;  %vm39_vm6 = vcmask 392448   ;;  %vm45_vm7 = vcmask 261248  }
   0x6   :  { %13 = vrot.lane.b32.xlu0 %v54_v2, %s69_s18  ;;  %25 = vrot.lane.b32.xlu1 %v56_v3, %s70_s19 }
   0xa   :  { %31 = vrot.lane.b32.xlu0 %v57_v5, %s71_s24  ;;  %37 = vrot.lane.b32.xlu1 %v58_v6, %s72_s25 }
   0xe   :  { %43 = vrot.lane.b32.xlu0 %v59_v7, %s73_s0 }
  0x74   :  { %v8_v8 = vpop.permute.xlu0 %7   ;;  %v20_v9 = vpop.permute.xlu1 %19  }
  0x75   :  { %10 = vst.msk [vmem:[#allocation0] sm:$0x1] %vm9_vm1, %v8_v8  }
  0x78   :  { %v14_v10 = vpop.permute.xlu0 %13   ;;  %v26_v11 = vpop.permute.xlu1 %25  }
  0x79   :  { %16 = vst.msk [vmem:[#allocation0] sm:$0x1] %vm15_vm2, %v14_v10  }
  0x7a   :  { %22 = vst.msk [vmem:[#allocation0] sm:$0x1] %vm21_vm3, %v20_v9  }
  0x7b   :  { %28 = vst.msk [vmem:[#allocation0] sm:$0x1] %vm27_vm4, %v26_v11  }
  0x7c   :  { %v32_v12 = vpop.permute.xlu0 %31   ;;  %v38_v13 = vpop.permute.xlu1 %37  }
  0x7d   :  { %34 = vst.msk [vmem:[#allocation0] sm:$0x1] %vm33_vm5, %v32_v12  }
  0x7e   :  { %40 = vst.msk [vmem:[#allocation0] sm:$0x1] %vm39_vm6, %v38_v13  }
  0x80   :  { %v44_v14 = vpop.permute.xlu0 %43  }
  0x81   :  { %46 = vst.msk [vmem:[#allocation0] sm:$0x1] %vm45_vm7, %v44_v14  }
  0x88   :  { %v50_v15 = vld [vmem:[#allocation0] sm:$0x1] }
  0x89   :  { %52 = vst [vmem:[%s112_s1] sm:$0x1] %v50_v15 }

// kernel: net_forward.1
= control target key start
LH: loop header
LB: loop body
LE: loop exit
PB: predicated region body
PF: predicated region fallthrough
CT: control target
= control target key end

     0   :  { %s8012_s0 = inlined_call_operand.vmem [shape: f32[16,28,28], index: 0, kind: input, shape index: {}]   ;;  %s8013_s1 = inlined_call_operand.vmem [shape: bf16[5,28,144], index: 1, kind: input, shape index: {}]   ;;  %s8014_s2 = inlined_call_operand.vmem [shape: f32[1,144], index: 2, kind: input, shape index: {}]   ;;  %s8015_s3 = inlined_call_operand.vmem [shape: bf16[2,128,192], index: 3, kind: input, shape index: {}]   ;;  %s8016_s4 = inlined_call_operand.vmem [shape: bf16[2,144,72], index: 4, kind: input, shape index: {}]   ;;  %s8017_s5 = inlined_call_operand.vmem [shape: bf16[5,72,128], index: 5, kind: input, shape index: {}]   ;;  %s8018_s6 = inlined_call_operand.vmem [shape: f32[1,128], index: 6, kind: input, shape index: {}]   ;;  %s8019_s7 = inlined_call_operand.vmem [shape: bf16[2,32,64], index: 7, kind: input, shape index: {}]   ;;  %s8020_s8 = inlined_call_operand.vmem [shape: bf16[2,128,64], index: 8, kind: input, shape index: {}]   ;;  %s8021_s9 = inlined_call_operand.vmem [shape: bf16[4,64,128], index: 9, kind: input, shape index: {}]   ;;  %s8022_s10 = inlined_call_operand.vmem [shape: f32[1,128], index: 10, kind: input, shape index: {}]   ;;  %s8023_s11 = inlined_call_operand.vmem [shape: bf16[128,128], index: 11, kind: input, shape index: {}]   ;;  %s8024_s12 = inlined_call_operand.vmem [shape: f32[1,128], index: 12, kind: input, shape index: {}]   ;;  %s8025_s13 = inlined_call_operand.vmem [shape: bf16[128,128], index: 13, kind: input, shape index: {}]   ;;  %s8026_s14 = inlined_call_operand.vmem [shape: f32[1,128], index: 14, kind: input, shape index: {}]   ;;  %s8027_s15 = inlined_call_operand.hbm [shape: f32[16,128], index: 15, kind: output, shape index: {}]  }
   0x1   :  { %8031 = sst [smem:[#allocation8_spill]] %s8012_s0 }
   0x2   :  { %20 = vsyncpa [#allocation3], 0 }
   0x3   :  { %22 = vsyncpa [#allocation3 + $0x1], 0  ;;  %s6393_s18 = smov 0   ;;  %s6395_s19 = smov 0  }
   0x4   :  { %s6397_s20 = smov 0   ;;  %s6399_s21 = smov 0  }
   0x5 LB: > { %8032 = sst [smem:[#allocation5_spill]] %s6303_s20  ;;  %s6414_s22 = sadd.s32 4294967295, %s6307_s21   ;;  %s6307_s21 = sphi %s6399_s21, %s8038_s21   ;;  %s6303_s20 = sphi %s6397_s20, %s8040_s20   ;;  %s6299_s19 = sphi %s6395_s19, %s8042_s19   ;;  %s6295_s18 = sphi %s6393_s18, %s8041_s18  }
   0x6   : > { %s4987_s23 = sadd.s32 4294967294, %s6307_s21   ;;  %s6418_s24 = sadd.s32 1, %s6307_s21  }
   0x7   : > { %8033 = sst [smem:[#allocation6_spill]] %s6418_s24  ;;  %s355_s25 = sadd.s32 1, %s6303_s20 }
   0x8   : > { %s352_s26 = ssub.s32 %s6307_s21, %s6418_s24  ;;  %p365_p0 = scmp.ne.s32.totalorder %s6303_s20, %s6299_s19 }
   0x9   : > { %p353_p1 = scmp.eq.s32.totalorder %s352_s26, 0  ;;  %p366_p2 = scmp.eq.s32.totalorder %s6414_s22, 1 }
   0xa   : > { %p371_p3 = scmp.ne.s32.totalorder %s6299_s19, %s6295_s18  ;;  %p372_p4 = scmp.eq.s32.totalorder %s4987_s23, 1 }
   0xb   : > { %s6429_s27 = scalar_select %p353_p1, %s6303_s20, %s355_s25  }
   0xc   : > { %p6431_p5 = por %p366_p2, %p365_p0  ;;  %p6435_p6 = por %p372_p4, %p371_p3 }
   0xd   : > { %8034 = sst [smem:[#allocation7_spill]] %s6429_s27  ;;  %p4990_p7 = scmp.ge.s32.totalorder %s6307_s21, 1 }
   0xe   : > { %p442_p8 = scmp.lt.s32.totalorder %s6307_s21, 3 }
  0x10   : > { %p443_p9 = pnand %p4990_p7, %p442_p8 }
  0x11   : > { %v6047_v0 = vld [vmem:[%s8013_s1 + $0x24] ss:$8 sps:$4 sm:$0xff] (!%p443_p9)   ;;  %vm732_vm0 = vcmask (!%p443_p9), 1045504   ;;  %v6049_v1 = vld [vmem:[%s8013_s1 + $0x20] ss:$8 sps:$4 sm:$0xff] (!%p443_p9)   ;;  %v6309_v2 = vmov (!%p443_p9), 0  }
  0x12   : > { %446 = sbr.rel (%p443_p9) target bundleno = 2858 (0xb2a), region = 80  ;;  %771 = vmatprep.mubr.bf16.mxu0 (!%p443_p9), %v6309_v2  ;;  %s4992_s25 = sshll.u32 (!%p443_p9), %s6414_s22, 3  ;;  %739 = vmatprep.subr.bf16.mxu0 (!%p443_p9), %v6047_v0  ;;  %v6050_v3 = vld [vmem:[%s8013_s1 + $0x34] ss:$8 sps:$4 sm:$0x3f] (!%p443_p9)   ;;  %vm579_vm1 = vcmask (!%p443_p9), 1046528  }
  0x13   : > { %v6052_v4 = vld [vmem:[%s8013_s1 + $0x30] ss:$8 sps:$4 sm:$0x3f] (!%p443_p9)   ;;  %740 = vmatpush1.bf16.msra.mxu0 (!%p443_p9), %v6049_v1  ;;  %p492_p10 = scmp.lt.s32.totalorder (!%p443_p9), %s4992_s25, 15  ;;  %v6055_v6 = vld [vmem:[%s8013_s1 + $0x4] ss:$8 sps:$4 sm:$0xff] (!%p443_p9)  }
  0x14   : > { %5003 = vmatprep.subr.msk.bf16.mxu0 (!%p443_p9), %vm732_vm0, %v6050_v3  ;;  %v734_v5 = vsel (!%p443_p9), %vm732_vm0, %v6052_v4, 0  ;;  %s8037_s0 = sld [smem:[#allocation8_spill]] (!%p443_p9)  ;;  %vm695_vm2 = vcmask (!%p443_p9), 228352   ;;  %v6053_v19 = vld [vmem:[%s8013_s1] ss:$8 sps:$4 sm:$0xff] (!%p443_p9)   ;;  %vm1463_vm3 = vcmask (!%p443_p9), 1044480  }
  0x15   : > { %v6056_v23 = vld [vmem:[%s8013_s1 + $0x14] ss:$8 sps:$4 sm:$0x3f] (!%p443_p9)   ;;  %v6058_v24 = vld [vmem:[%s8013_s1 + $0x10] ss:$8 sps:$4 sm:$0x3f] (!%p443_p9)  }
  0x16   : > { %v947_v29 = vsel (!%p443_p9), %vm732_vm0, %v6058_v24, 0  ;;  %v6061_v30 = vld [vmem:[%s8013_s1 + $0x44] ss:$8 sps:$4 sm:$0xff] (!%p443_p9)   ;;  %vm1822_vm4 = vcmask (!%p443_p9), 1043456   ;;  %vm2401_vm5 = vcmask (!%p443_p9), 523264   ;;  %vm2885_vm6 = vcmask (!%p443_p9), 130048  }
  0x17   : > { %742 = vmatpush1.bf16.msra.mxu0 (!%p443_p9), %v734_v5  ;;  %vm3295_vm7 = vcmask (!%p443_p9), 588800   ;;  %vm6311_vm8 = vmmov (!%p443_p9), 0   ;;  %s488_s16 = sand.u32 (!%p443_p9), 1, %s6299_s19   ;;  %s5402_s23 = sshll.u32 (!%p443_p9), %s6414_s22, 7 }
  0x18   : > { %952 = vmatprep.subr.bf16.mxu0 (!%p443_p9), %v6055_v6  ;;  %s7970_s30 = scalar_lea.hbm (!%p443_p9), %s8027_s15, %s5402_s23 }
  0x19   : > { %s8044_s25 = smov (!%p492_p10, %s4992_s25), 15 }
  0x1a   : > { %s5405_s17 = sshll.u32 %s8044_s25, 5 }
  0x1b   : > { %s6463_s26 = scalar_lea.vmem %s8037_s0, %s5405_s17  ;;  %s4991_s17 = sshll.u32 %s488_s16, 3 }
  0x1c   : > { %v6466_v7 = vld [vmem:[%s6463_s26] sm:$0xff]  ;;  %v6469_v8 = vld [vmem:[%s6463_s26 + $0x8] sm:$0xff]  ;;  %v6472_v9 = vld [vmem:[%s6463_s26 + $0x10] sm:$0xff]  ;;  %s490_s27 = scalar_lea.vmem [#allocation2], %s4991_s17  ;;  %s4915_s0 = scalar_lea.sflag [#allocation3], %s488_s16 }
  0x1d   : > { %v580_v10 = vrot.slane %v6466_v7, 1  ;;  %v581_v11 = vrot.slane %v6469_v8, 1  ;;  %v583_v12 = vrot.slane %v6472_v9, 1  ;;  %v6478_v13 = vld [vmem:[%s6463_s26 + $0x18] sm:$0xf]  ;;  %v6481_v14 = vld [vmem:[%s6463_s26 + $0x20] sm:$0xff] }
  0x1e   : > { %v6484_v15 = vld [vmem:[%s6463_s26 + $0x28] sm:$0xff]  ;;  %v585_v16 = vrot.slane %v6478_v13, 1  ;;  %v587_v20 = vrot.slane %v6481_v14, 1  ;;  %v6505_v27 = vld [vmem:[%s6463_s26 + $0x30] sm:$0xff]  ;;  %v6508_v28 = vld [vmem:[%s6463_s26 + $0x38] sm:$0xf] }
  0x1f   : > { %v582_v17 = vsel %vm579_vm1, %v580_v10, %v581_v11  ;;  %v584_v18 = vsel %vm579_vm1, %v581_v11, %v583_v12  ;;  %v588_v21 = vrot.slane %v6484_v15, 1  ;;  %v590_v32 = vrot.slane %v6505_v27, 1  ;;  %v6518_v34 = vld [vmem:[%s6463_s26 + $0x40] sm:$0xff]  ;;  %v6521_v35 = vld [vmem:[%s6463_s26 + $0x48] sm:$0xff]  ;;  %v6525_v36 = vld [vmem:[%s6463_s26 + $0x50] sm:$0xff]  ;;  %s4928_s20 = sshll.u32 %s490_s27, 4  ;;  %s7972_s20 = int_to_ptr.vmem [resolvable:$true] %s4928_s20 }
  0x20   : > { %v660_v22 = vpack.c.bf16 %v584_v18, %v582_v17  ;;  %v586_v25 = vsel %vm579_vm1, %v583_v12, %v585_v16  ;;  %v592_v33 = vrot.slane %v6508_v28, 1  ;;  %v6531_v39 = vld [vmem:[%s6463_s26 + $0x58] sm:$0xf]  ;;  %v6534_v40 = vld [vmem:[%s6463_s26 + $0x60] sm:$0xff]  ;;  %v6537_v41 = vld [vmem:[%s6463_s26 + $0x68] sm:$0xff]  ;;  %v594_v43 = vrot.slane %v6518_v34, 1 }
  0x21   : > { %v589_v26 = vsel %vm579_vm1, %v587_v20, %v588_v21  ;;  %v591_v37 = vsel %vm579_vm1, %v588_v21, %v590_v32  ;;  %v6540_v42 = vld [vmem:[%s6463_s26 + $0x70] sm:$0xff]  ;;  %v595_v44 = vrot.slane %v6521_v35, 1  ;;  %v6545_v45 = vld [vmem:[%s6463_s26 + $0x78] sm:$0xf]  ;;  %v6548_v46 = vld [vmem:[%s6463_s26 + $0x80] sm:$0xff]  ;;  %v597_v53 = vrot.slane %v6525_v36, 1 }
  0x22   : > { %5004 = vmatmul.mubr.msk.bf16.vlgmr.msra.gmra.mrb[0].mxu0 %vm695_vm2, %v660_v22  ;;  %v661_v31 = vpack.c.bf16 %v589_v26, %v586_v25  ;;  %v593_v38 = vsel %vm579_vm1, %v590_v32, %v592_v33  ;;  %v6551_v47 = vld [vmem:[%s6463_s26 + $0x88] sm:$0xff]  ;;  %v6554_v48 = vld [vmem:[%s6463_s26 + $0x90] sm:$0xff]  ;;  %v6557_v50 = vld [vmem:[%s6463_s26 + $0x98] sm:$0xf]  ;;  %v599_v57 = vrot.slane %v6531_v39, 1  ;;  %v601_v59 = vrot.slane %v6534_v40, 1 }
  0x23   : > { %953 = vmatpush1.bf16.msra.mxu0 %v6053_v19  ;;  %781 = vmatprep.mubr.bf16.mxu0 %v6309_v2  ;;  %v662_v49 = vpack.c.bf16 %v593_v38, %v591_v37  ;;  %v6560_v51 = vld [vmem:[%s6463_s26 + $0xa0] sm:$0xff]  ;;  %v6563_v52 = vld [vmem:[%s6463_s26 + $0xa8] sm:$0xff]  ;;  %v6567_v54 = vld [vmem:[%s6463_s26 + $0xb0] sm:$0xff]  ;;  %v596_v58 = vsel %vm579_vm1, %v594_v43, %v595_v44  ;;  %v602_v60 = vrot.slane %v6537_v41, 1  ;;  %v604_v61 = vrot.slane %v6540_v42, 1  ;;  %s6245_s22 = scalar_lea.vmem %s7972_s20, 128 }
  0x24   : > { %5020 = vmatprep.subr.msk.bf16.mxu0 %vm732_vm0, %v6056_v23  ;;  %v6570_v55 = vld [vmem:[%s6463_s26 + $0xb8] sm:$0xf]  ;;  %v6573_v56 = vld [vmem:[%s6463_s26 + $0xc0] sm:$0xff]  ;;  %v606_v62 = vrot.slane %v6545_v45, 1  ;;  %v608_v63 = vrot.slane %v6548_v46, 1  ;;  %v609_v0 = vrot.slane %v6551_v47, 1  ;;  %v598_v3 = vsel %vm579_vm1, %v595_v44, %v597_v53  ;;  %p6246_p11 = scmp.ne.s32.totalorder %s7972_s20, %s6245_s22 }
  0x25   : > { %v611_v1 = vrot.slane %v6554_v48, 1  ;;  %v613_v4 = vrot.slane %v6557_v50, 1  ;;  %v615_v5 = vrot.slane %v6560_v51, 1  ;;  %v616_v6 = vrot.slane %v6563_v52, 1  ;;  %v6613_v32 = vld [vmem:[%s6463_s26 + $0xd0] sm:$0xff]  ;;  %s6312_s17 = smov [#allocation2]  }
  0x26   : > { %v618_v10 = vrot.slane %v6567_v54, 1  ;;  %v620_v11 = vrot.slane %v6570_v55, 1  ;;  %v622_v12 = vrot.slane %v6573_v56, 1  ;;  %v663_v16 = vpack.c.bf16 %v598_v3, %v596_v58  ;;  %v6622_v44 = vld [vmem:[%s6463_s26 + $0xd8] sm:$0xf]  ;;  %p6247_p12 = pnand %p6246_p11, %p6431_p5 }
  0x27   : > { %955 = vmatpush1.bf16.msra.mxu0 %v947_v29  ;;  %v600_v17 = vsel %vm579_vm1, %v597_v53, %v599_v57  ;;  %v603_v18 = vsel %vm579_vm1, %v601_v59, %v602_v60  ;;  %v605_v20 = vsel %vm579_vm1, %v602_v60, %v604_v61  ;;  %v607_v21 = vsel %vm579_vm1, %v604_v61, %v606_v62  ;;  %v6625_v53 = vld [vmem:[%s6463_s26 + $0xe0] sm:$0xff]  ;;  %v6628_v57 = vld [vmem:[%s6463_s26 + $0xe8] sm:$0xff] }
  0x28   : > { %1262 = vmatprep.subr.bf16.mxu0 %v6061_v30  ;;  %v664_v19 = vpack.c.bf16 %v603_v18, %v600_v17  ;;  %v665_v22 = vpack.c.bf16 %v607_v21, %v605_v20  ;;  %v610_v23 = vsel %vm579_vm1, %v608_v63, %v609_v0  ;;  %v612_v24 = vsel %vm579_vm1, %v609_v0, %v611_v1  ;;  %v6638_v0 = vld [vmem:[%s6463_s26 + $0xf0] sm:$0xff]  ;;  %v6059_v18 = vld [vmem:[%s8013_s1 + $0x40] ss:$8 sps:$4 sm:$0xff]   ;;  %p6248_p13 = pneg %p6247_p12 }
  0x29   : > { %v666_v25 = vpack.c.bf16 %v612_v24, %v610_v23  ;;  %v614_v26 = vsel %vm579_vm1, %v611_v1, %v613_v4  ;;  %v617_v29 = vsel %vm579_vm1, %v615_v5, %v616_v6  ;;  %v619_v33 = vsel %vm579_vm1, %v616_v6, %v618_v10  ;;  %v6641_v1 = vld [vmem:[%s6463_s26 + $0xf8] sm:$0xf] }
  0x2a   : > { %5005 = vmatmul.mubr.msk.bf16.gmra.mrb[4].mxu0 %vm695_vm2, %v661_v31  ;;  %v667_v30 = vpack.c.bf16 %v617_v29, %v614_v26  ;;  %v6610_v31 = vld [vmem:[%s6463_s26 + $0xc8] sm:$0xff]  ;;  %v621_v37 = vsel %vm579_vm1, %v618_v10, %v620_v11  ;;  %v625_v43 = vrot.slane %v6613_v32, 1  ;;  %v627_v58 = vrot.slane %v6622_v44, 1  ;;  %v6064_v20 = vld [vmem:[%s8013_s1 + $0x50] ss:$8 sps:$4 sm:$0x3f]  }
  0x2b   : > { %791 = vmatprep.mubr.bf16.mxu0 %v6309_v2  ;;  %v623_v38 = vrot.slane %v6610_v31, 1  ;;  %v629_v61 = vrot.slane %v6625_v53, 1  ;;  %v630_v62 = vrot.slane %v6628_v57, 1  ;;  %v632_v5 = vrot.slane %v6638_v0, 1 }
  0x2c   : > { %v628_v3 = vsel %vm579_vm1, %v625_v43, %v627_v58  ;;  %v634_v6 = vrot.slane %v6641_v1, 1  ;;  %v531_v17 = vpack.c.bf16 %v6469_v8, %v6466_v7  ;;  %v1257_v21 = vsel %vm732_vm0, %v6064_v20, 0 }
  0x2d   : > { %v624_v59 = vsel %vm579_vm1, %v622_v12, %v623_v38  ;;  %v626_v60 = vsel %vm579_vm1, %v623_v38, %v625_v43  ;;  %v631_v4 = vsel %vm579_vm1, %v629_v61, %v630_v62  ;;  %v633_v11 = vsel %vm579_vm1, %v630_v62, %v632_v5 }
  0x2e   : > { %v669_v63 = vpack.c.bf16 %v626_v60, %v624_v59  ;;  %v670_v10 = vpack.c.bf16 %v631_v4, %v628_v3  ;;  %v635_v12 = vsel %vm579_vm1, %v632_v5, %v634_v6  ;;  %v532_v23 = vpack.c.bf16 %v6481_v14, %v6472_v9  ;;  %v6065_v3 = vld [vmem:[%s8013_s1 + $0x60] ss:$8 sps:$4 sm:$0xff]  }
  0x2f   : > { %v533_v24 = vpack.c.bf16 %v6505_v27, %v6484_v15  ;;  %v535_v26 = vpack.c.bf16 %v6534_v40, %v6525_v36  ;;  %v536_v29 = vpack.c.bf16 %v6540_v42, %v6537_v41  ;;  %v540_v38 = vpack.c.bf16 %v6610_v31, %v6573_v56 }
  0x30   : > { %v541_v43 = vpack.c.bf16 %v6625_v53, %v6613_v32  ;;  %v1105_v58 = vrot.slane %v6466_v7, 2  ;;  %v1106_v59 = vrot.slane %v6469_v8, 2  ;;  %v1108_v60 = vrot.slane %v6472_v9, 2 }
  0x31   : > { %v1110_v4 = vrot.slane %v6478_v13, 2  ;;  %v1112_v5 = vrot.slane %v6481_v14, 2  ;;  %v1113_v6 = vrot.slane %v6484_v15, 2  ;;  %v1115_v20 = vrot.slane %v6505_v27, 2 }
  0x32   : > { %5006 = vmatmul.mubr.msk.bf16.gmra.mrb[8].mxu0 %vm695_vm2, %v662_v49  ;;  %v668_v49 = vpack.c.bf16 %v621_v37, %v619_v33  ;;  %v538_v33 = vpack.c.bf16 %v6560_v51, %v6554_v48  ;;  %v539_v37 = vpack.c.bf16 %v6567_v54, %v6563_v52  ;;  %v1107_v61 = vsel %vm732_vm0, %v1105_v58, %v1106_v59 }
  0x33   : > { %801 = vmatprep.mubr.bf16.mxu0 %v6309_v2  ;;  %v1109_v62 = vsel %vm732_vm0, %v1106_v59, %v1108_v60 }
  0x3a   : > { %5007 = vmatmul.mubr.msk.bf16.gmra.mrb[12].mxu0 %vm695_vm2, %v663_v16  ;;  %v671_v16 = vpack.c.bf16 %v635_v12, %v633_v11  ;;  %v6070_v11 = vld [vmem:[%s8013_s1 + $0x70] ss:$8 sps:$4 sm:$0x3f]   ;;  %v1111_v12 = vsel %vm732_vm0, %v1108_v60, %v1110_v4 }
  0x3b   : > { %811 = vmatprep.mubr.bf16.mxu0 %v6309_v2 }
  0x42   : > { %5008 = vmatmul.mubr.msk.bf16.gmra.mrb[16].mxu0 %vm695_vm2, %v664_v19  ;;  %v6062_v19 = vld [vmem:[%s8013_s1 + $0x54] ss:$8 sps:$4 sm:$0x3f]  }
  0x43   : > { %821 = vmatprep.mubr.bf16.mxu0 %v6309_v2 }
  0x4a   : > { %5009 = vmatmul.mubr.msk.bf16.gmra.mrb[20].mxu0 %vm695_vm2, %v665_v22  ;;  %v6067_v22 = vld [vmem:[%s8013_s1 + $0x64] ss:$8 sps:$4 sm:$0xff]  }
  0x4b   : > { %831 = vmatprep.mubr.bf16.mxu0 %v6309_v2 }
  0x52   : > { %5010 = vmatmul.mubr.msk.bf16.gmra.mrb[24].mxu0 %vm695_vm2, %v666_v25  ;;  %v534_v25 = vpack.c.bf16 %v6521_v35, %v6518_v34 }
  0x53   : > { %841 = vmatprep.mubr.bf16.mxu0 %v6309_v2 }
  0x5a   : > { %5011 = vmatmul.mubr.msk.bf16.gmra.mrb[28].mxu0 %vm695_vm2, %v667_v30  ;;  %v537_v30 = vpack.c.bf16 %v6551_v47, %v6548_v46 }
  0x5b   : > { %851 = vmatprep.mubr.bf16.mxu0 %v6309_v2 }
  0x62   : > { %5012 = vmatmul.mubr.msk.bf16.gmra.mrb[32].mxu0 %vm695_vm2, %v668_v49  ;;  %v542_v49 = vpack.c.bf16 %v6638_v0, %v6628_v57 }
  0x63   : > { %861 = vmatprep.mubr.bf16.mxu0 %v6309_v2 }
  0x6a   : > { %5013 = vmatmul.mubr.msk.bf16.gmra.mrb[36].mxu0 %vm695_vm2, %v669_v63  ;;  %v1185_v63 = vpack.c.bf16 %v1109_v62, %v1107_v61  ;;  %v1129_v61 = vrot.slane %v6540_v42, 2  ;;  %v1131_v62 = vrot.slane %v6545_v45, 2 }
  0x6b   : > { %871 = vmatprep.mubr.bf16.mxu0 %v6309_v2 }
  0x72   : > { %5014 = vmatmul.mubr.msk.bf16.gmra.mrb[40].mxu0 %vm695_vm2, %v670_v10  ;;  %v6068_v10 = vld [vmem:[%s8013_s1 + $0x74] ss:$8 sps:$4 sm:$0x3f]  }
  0x73   : > { %881 = vmatprep.mubr.bf16.mxu0 %v6309_v2 }
  0x7a   : > { %5015 = vmatmul.mubr.msk.bf16.gmra.mrb[44].mxu0 %vm695_vm2, %v671_v16  ;;  %v1114_v16 = vsel %vm732_vm0, %v1112_v5, %v1113_v6  ;;  %v1133_v5 = vrot.slane %v6548_v46, 2 }
  0x7b   : > { %984 = vmatprep.mubr.bf16.mxu0 %v6309_v2 }
  0x82   : > { %5021 = vmatmul.mubr.msk.bf16.vlgmr.msra.gmra.mrb[0].mxu0 %vm695_vm2, %v531_v17  ;;  %v1616_v17 = vsel %vm732_vm0, %v6070_v11, 0 }
  0x83   : > { %1263 = vmatpush1.bf16.msra.mxu0 %v6059_v18  ;;  %994 = vmatprep.mubr.bf16.mxu0 %v6309_v2  ;;  %v6073_v18 = vld [vmem:[%s8013_s1 + $0x84] ss:$8 sps:$4 sm:$0xff]  }
  0x84   : > { %5041 = vmatprep.subr.msk.bf16.mxu0 %vm732_vm0, %v6062_v19  ;;  %v1186_v19 = vpack.c.bf16 %v1114_v16, %v1111_v12 }
  0x87   : > { %1265 = vmatpush1.bf16.msra.mxu0 %v1257_v21  ;;  %v1117_v21 = vrot.slane %v6508_v28, 2 }
  0x88   : > { %1621 = vmatprep.subr.bf16.mxu0 %v6067_v22  ;;  %v1116_v22 = vsel %vm732_vm0, %v1113_v6, %v1115_v20  ;;  %v1134_v6 = vrot.slane %v6551_v47, 2 }
  0x8a   : > { %5022 = vmatmul.mubr.msk.bf16.gmra.mrb[4].mxu0 %vm695_vm2, %v532_v23  ;;  %v1118_v23 = vsel %vm732_vm0, %v1115_v20, %v1117_v21  ;;  %v1135_v11 = vsel %vm732_vm0, %v1133_v5, %v1134_v6 }
  0x8b   : > { %1004 = vmatprep.mubr.bf16.mxu0 %v6309_v2 }
  0x92   : > { %5023 = vmatmul.mubr.msk.bf16.gmra.mrb[8].mxu0 %vm695_vm2, %v533_v24  ;;  %v1187_v24 = vpack.c.bf16 %v1118_v23, %v1116_v22  ;;  %v1143_v23 = vrot.slane %v6567_v54, 2 }
  0x93   : > { %1014 = vmatprep.mubr.bf16.mxu0 %v6309_v2 }
  0x9a   : > { %5024 = vmatmul.mubr.msk.bf16.gmra.mrb[12].mxu0 %vm695_vm2, %v534_v25  ;;  %v1119_v25 = vrot.slane %v6518_v34, 2 }
  0x9b   : > { %1024 = vmatprep.mubr.bf16.mxu0 %v6309_v2 }
  0xa2   : > { %5025 = vmatmul.mubr.msk.bf16.gmra.mrb[16].mxu0 %vm695_vm2, %v535_v26  ;;  %v1120_v26 = vrot.slane %v6521_v35, 2 }
  0xa3   : > { %1034 = vmatprep.mubr.bf16.mxu0 %v6309_v2 }
  0xaa   : > { %5026 = vmatmul.mubr.msk.bf16.gmra.mrb[20].mxu0 %vm695_vm2, %v536_v29  ;;  %v1122_v29 = vrot.slane %v6525_v36, 2 }
  0xab   : > { %1044 = vmatprep.mubr.bf16.mxu0 %v6309_v2 }
  0xb2   : > { %5027 = vmatmul.mubr.msk.bf16.gmra.mrb[24].mxu0 %vm695_vm2, %v537_v30  ;;  %v1121_v30 = vsel %vm732_vm0, %v1119_v25, %v1120_v26 }
  0xb3   : > { %1054 = vmatprep.mubr.bf16.mxu0 %v6309_v2 }
  0xba   : > { %5028 = vmatmul.mubr.msk.bf16.gmra.mrb[28].mxu0 %vm695_vm2, %v538_v33  ;;  %v1123_v33 = vsel %vm732_vm0, %v1120_v26, %v1122_v29 }
  0xbb   : > { %1064 = vmatprep.mubr.bf16.mxu0 %v6309_v2 }
  0xc2   : > { %5029 = vmatmul.mubr.msk.bf16.gmra.mrb[32].mxu0 %vm695_vm2, %v539_v37  ;;  %v1188_v37 = vpack.c.bf16 %v1123_v33, %v1121_v30  ;;  %v1147_v30 = vrot.slane %v6573_v56, 2  ;;  %v1148_v33 = vrot.slane %v6610_v31, 2 }
  0xc3   : > { %1074 = vmatprep.mubr.bf16.mxu0 %v6309_v2 }
  0xca   : > { %5030 = vmatmul.mubr.msk.bf16.gmra.mrb[36].mxu0 %vm695_vm2, %v540_v38  ;;  %v1124_v38 = vrot.slane %v6531_v39, 2 }
  0xcb   : > { %1084 = vmatprep.mubr.bf16.mxu0 %v6309_v2 }
  0xcc   : > { %v1125_v58 = vsel %vm732_vm0, %v1122_v29, %v1124_v38  ;;  %v1149_v38 = vsel %vm732_vm0, %v1147_v30, %v1148_v33 }
  0xd2   : > { %5031 = vmatmul.mubr.msk.bf16.gmra.mrb[40].mxu0 %vm695_vm2, %v541_v43  ;;  %v1126_v43 = vrot.slane %v6534_v40, 2 }
  0xd3   : > { %1094 = vmatprep.mubr.bf16.mxu0 %v6309_v2 }
  0xda   : > { %5032 = vmatmul.mubr.msk.bf16.gmra.mrb[44].mxu0 %vm695_vm2, %v542_v49  ;;  %v1127_v49 = vrot.slane %v6537_v41, 2 }
  0xdb   : > { %1294 = vmatprep.mubr.bf16.mxu0 %v6309_v2 }
  0xdc   : > { %v1128_v59 = vsel %vm732_vm0, %v1126_v43, %v1127_v49 }
  0xdd   : > { %v1189_v60 = vpack.c.bf16 %v1128_v59, %v1125_v58  ;;  %v1152_v58 = vrot.slane %v6622_v44, 2  ;;  %v1154_v59 = vrot.slane %v6625_v53, 2 }
  0xe2   : > { %5042 = vmatmul.mubr.msk.bf16.vlgmr.msra.gmra.mrb[0].mxu0 %vm695_vm2, %v1185_v63  ;;  %v1130_v63 = vsel %vm732_vm0, %v1127_v49, %v1129_v61 }
  0xe3   : > { %1622 = vmatpush1.bf16.msra.mxu0 %v6065_v3  ;;  %1304 = vmatprep.mubr.bf16.mxu0 %v6309_v2  ;;  %v1132_v3 = vsel %vm732_vm0, %v1129_v61, %v1131_v62 }
  0xe4   : > { %5062 = vmatprep.subr.msk.bf16.mxu0 %vm732_vm0, %v6068_v10  ;;  %v1190_v4 = vpack.c.bf16 %v1132_v3, %v1130_v63  ;;  %v1136_v10 = vrot.slane %v6554_v48, 2  ;;  %v1157_v3 = vrot.slane %v6638_v0, 2 }
  0xe6   : > { %v1137_v12 = vsel %vm732_vm0, %v1134_v6, %v1136_v10 }
  0xe7   : > { %1624 = vmatpush1.bf16.msra.mxu0 %v1616_v17  ;;  %v1191_v16 = vpack.c.bf16 %v1137_v12, %v1135_v11  ;;  %v1138_v17 = vrot.slane %v6557_v50, 2  ;;  %v1464_v11 = vrot.slane %v6466_v7, 3  ;;  %v1465_v12 = vrot.slane %v6469_v8, 3 }
  0xe8   : > { %1980 = vmatprep.subr.bf16.mxu0 %v6073_v18  ;;  %v1140_v18 = vrot.slane %v6560_v51, 2  ;;  %v1469_v7 = vrot.slane %v6478_v13, 3  ;;  %v1471_v8 = vrot.slane %v6481_v14, 3 }
  0xe9   : > { %v1139_v20 = vsel %vm732_vm0, %v1136_v10, %v1138_v17  ;;  %v1466_v17 = vsel %vm1463_vm3, %v1464_v11, %v1465_v12  ;;  %v1502_v11 = vrot.slane %v6567_v54, 3 }
  0xea   : > { %5043 = vmatmul.mubr.msk.bf16.gmra.mrb[4].mxu0 %vm695_vm2, %v1186_v19  ;;  %v1141_v19 = vrot.slane %v6563_v52, 2 }
  0xeb   : > { %1314 = vmatprep.mubr.bf16.mxu0 %v6309_v2 }
  0xec   : > { %v1142_v21 = vsel %vm732_vm0, %v1140_v18, %v1141_v19  ;;  %v1144_v25 = vsel %vm732_vm0, %v1141_v19, %v1143_v23 }
  0xed   : > { %v1192_v22 = vpack.c.bf16 %v1142_v21, %v1139_v20  ;;  %v6071_v20 = vld [vmem:[%s8013_s1 + $0x80] ss:$8 sps:$4 sm:$0xff]   ;;  %v6074_v21 = vld [vmem:[%s8013_s1 + $0x94] ss:$8 sps:$4 sm:$0x3f]  }
  0xf2   : > { %5044 = vmatmul.mubr.msk.bf16.gmra.mrb[8].mxu0 %vm695_vm2, %v1187_v24  ;;  %v1145_v24 = vrot.slane %v6570_v55, 2 }
  0xf3   : > { %1324 = vmatprep.mubr.bf16.mxu0 %v6309_v2 }
  0xf4   : > { %v1146_v26 = vsel %vm732_vm0, %v1143_v23, %v1145_v24  ;;  %v1474_v24 = vrot.slane %v6505_v27, 3 }
  0xf5   : > { %v1193_v29 = vpack.c.bf16 %v1146_v26, %v1144_v25  ;;  %v1476_v25 = vrot.slane %v6508_v28, 3 }
  0xfa   : > { %5045 = vmatmul.mubr.msk.bf16.gmra.mrb[12].mxu0 %vm695_vm2, %v1188_v37  ;;  %v1150_v37 = vrot.slane %v6613_v32, 2 }
  0xfb   : > { %1334 = vmatprep.mubr.bf16.mxu0 %v6309_v2 }
  0xfc   : > { %v1151_v43 = vsel %vm732_vm0, %v1148_v33, %v1150_v37  ;;  %v1153_v61 = vsel %vm732_vm0, %v1150_v37, %v1152_v58  ;;  %v1478_v33 = vrot.slane %v6518_v34, 3  ;;  %v1479_v37 = vrot.slane %v6521_v35, 3 }
  0xfd   : > { %v1194_v49 = vpack.c.bf16 %v1151_v43, %v1149_v38  ;;  %v1481_v38 = vrot.slane %v6525_v36, 3  ;;  %v1485_v58 = vrot.slane %v6534_v40, 3 }
  0xfe   : > { %v1480_v27 = vsel %vm1463_vm3, %v1478_v33, %v1479_v37 }
  0xff   : > { %v1482_v28 = vsel %vm1463_vm3, %v1479_v37, %v1481_v38 }
 0x100   : > { %v1547_v43 = vpack.c.bf16 %v1482_v28, %v1480_v27  ;;  %v6223_v28 = vld [vmem:[%s6463_s26 + $0x18] sm:$0xf] }
 0x102   : > { %5046 = vmatmul.mubr.msk.bf16.gmra.mrb[16].mxu0 %vm695_vm2, %v1189_v60  ;;  %v1155_v60 = vrot.slane %v6628_v57, 2 }
 0x103   : > { %1344 = vmatprep.mubr.bf16.mxu0 %v6309_v2 }
 0x104   : > { %v1156_v62 = vsel %vm732_vm0, %v1154_v59, %v1155_v60  ;;  %v1158_v5 = vsel %vm732_vm0, %v1155_v60, %v1157_v3  ;;  %v1486_v59 = vrot.slane %v6537_v41, 3  ;;  %v1488_v60 = vrot.slane %v6540_v42, 3 }
 0x105   : > { %v1195_v63 = vpack.c.bf16 %v1156_v62, %v1153_v61  ;;  %v1490_v61 = vrot.slane %v6545_v45, 3  ;;  %v1492_v62 = vrot.slane %v6548_v46, 3 }
 0x106   : > { %v1487_v35 = vsel %vm1463_vm3, %v1485_v58, %v1486_v59 }
 0x107   : > { %v1491_v40 = vsel %vm1463_vm3, %v1488_v60, %v1490_v61  ;;  %v6226_v61 = vld [vmem:[%s6463_s26 + $0x30] sm:$0xff] }
 0x10a   : > { %5047 = vmatmul.mubr.msk.bf16.gmra.mrb[20].mxu0 %vm695_vm2, %v1190_v4  ;;  %v1159_v4 = vrot.slane %v6641_v1, 2 }
 0x10b   : > { %1354 = vmatprep.mubr.bf16.mxu0 %v6309_v2 }
 0x10c   : > { %v1160_v6 = vsel %vm732_vm0, %v1157_v3, %v1159_v4  ;;  %v1495_v3 = vrot.slane %v6554_v48, 3 }
 0x10d   : > { %v1196_v10 = vpack.c.bf16 %v1160_v6, %v1158_v5  ;;  %v1497_v5 = vrot.slane %v6557_v50, 3  ;;  %v1499_v6 = vrot.slane %v6560_v51, 3 }
 0x10f   : > { %v1498_v46 = vsel %vm1463_vm3, %v1495_v3, %v1497_v5 }
 0x112   : > { %5048 = vmatmul.mubr.msk.bf16.gmra.mrb[24].mxu0 %vm695_vm2, %v1191_v16  ;;  %v1467_v16 = vrot.slane %v6472_v9, 3  ;;  %v1472_v9 = vrot.slane %v6484_v15, 3 }
 0x113   : > { %1364 = vmatprep.mubr.bf16.mxu0 %v6309_v2 }
 0x114   : > { %v1468_v18 = vsel %vm1463_vm3, %v1465_v12, %v1467_v16  ;;  %v1470_v23 = vsel %vm1463_vm3, %v1467_v16, %v1469_v7  ;;  %v1473_v13 = vsel %vm1463_vm3, %v1471_v8, %v1472_v9  ;;  %v1475_v26 = vsel %vm1463_vm3, %v1472_v9, %v1474_v24 }
 0x115   : > { %v1544_v19 = vpack.c.bf16 %v1468_v18, %v1466_v17  ;;  %v1545_v15 = vpack.c.bf16 %v1473_v13, %v1470_v23  ;;  %v1504_v12 = vrot.slane %v6570_v55, 3  ;;  %v1506_v16 = vrot.slane %v6573_v56, 3 }
 0x116   : > { %v1507_v17 = vrot.slane %v6610_v31, 3  ;;  %v1509_v18 = vrot.slane %v6613_v32, 3  ;;  %v1513_v7 = vrot.slane %v6625_v53, 3  ;;  %v1514_v56 = vrot.slane %v6628_v57, 3 }
 0x117   : > { %v1505_v51 = vsel %vm1463_vm3, %v1502_v11, %v1504_v12  ;;  %v1518_v23 = vrot.slane %v6641_v1, 3 }
 0x118   : > { %v1508_v54 = vsel %vm1463_vm3, %v1506_v16, %v1507_v17  ;;  %v1510_v55 = vsel %vm1463_vm3, %v1507_v17, %v1509_v18  ;;  %v1515_v9 = vsel %vm1463_vm3, %v1513_v7, %v1514_v56 }
 0x11a   : > { %5049 = vmatmul.mubr.msk.bf16.gmra.mrb[28].mxu0 %vm695_vm2, %v1192_v22  ;;  %v6076_v22 = vld [vmem:[%s8013_s1 + $0x90] ss:$8 sps:$4 sm:$0x3f]  }
 0x11b   : > { %1374 = vmatprep.mubr.bf16.mxu0 %v6309_v2  ;;  %v1975_v14 = vsel %vm732_vm0, %v6076_v22, 0  ;;  %v1516_v22 = vrot.slane %v6638_v0, 3 }
 0x11d   : > { %v1517_v13 = vsel %vm1463_vm3, %v1514_v56, %v1516_v22 }
 0x122   : > { %5050 = vmatmul.mubr.msk.bf16.gmra.mrb[32].mxu0 %vm695_vm2, %v1193_v29  ;;  %v1477_v29 = vsel %vm1463_vm3, %v1474_v24, %v1476_v25  ;;  %v6220_v24 = vld [vmem:[%s6463_s26] sm:$0xff] }
 0x123   : > { %1384 = vmatprep.mubr.bf16.mxu0 %v6309_v2  ;;  %v1546_v30 = vpack.c.bf16 %v1477_v29, %v1475_v26  ;;  %v1823_v25 = vrot.slane %v6220_v24, 4  ;;  %v6221_v26 = vld [vmem:[%s6463_s26 + $0x8] sm:$0xff] }
 0x124   : > { %v1824_v29 = vrot.slane %v6221_v26, 4 }
 0x126   : > { %v1825_v37 = vsel %vm1822_vm4, %v1823_v25, %v1824_v29 }
 0x12a   : > { %5051 = vmatmul.mubr.msk.bf16.gmra.mrb[36].mxu0 %vm695_vm2, %v1194_v49  ;;  %v1483_v49 = vrot.slane %v6531_v39, 3  ;;  %v1489_v39 = vsel %vm1463_vm3, %v1486_v59, %v1488_v60  ;;  %v6225_v59 = vld [vmem:[%s6463_s26 + $0x28] sm:$0xff] }
 0x12b   : > { %1394 = vmatprep.mubr.bf16.mxu0 %v6309_v2  ;;  %v1549_v41 = vpack.c.bf16 %v1491_v40, %v1489_v39  ;;  %v1833_v39 = vrot.slane %v6226_v61, 4  ;;  %v6227_v40 = vld [vmem:[%s6463_s26 + $0x38] sm:$0xf] }
 0x12c   : > { %v1484_v34 = vsel %vm1463_vm3, %v1481_v38, %v1483_v49  ;;  %v6224_v49 = vld [vmem:[%s6463_s26 + $0x20] sm:$0xff] }
 0x12d   : > { %v1548_v36 = vpack.c.bf16 %v1487_v35, %v1484_v34  ;;  %v1830_v58 = vrot.slane %v6224_v49, 4  ;;  %v1831_v34 = vrot.slane %v6225_v59, 4 }
 0x132   : > { %5052 = vmatmul.mubr.msk.bf16.gmra.mrb[40].mxu0 %vm695_vm2, %v1195_v63  ;;  %v1493_v63 = vrot.slane %v6551_v47, 3 }
 0x133   : > { %1404 = vmatprep.mubr.bf16.mxu0 %v6309_v2 }
 0x134   : > { %v1494_v42 = vsel %vm1463_vm3, %v1492_v62, %v1493_v63  ;;  %v1496_v45 = vsel %vm1463_vm3, %v1493_v63, %v1495_v3  ;;  %v1834_v62 = vsel %vm1822_vm4, %v1831_v34, %v1833_v39 }
 0x135   : > { %v1550_v4 = vpack.c.bf16 %v1496_v45, %v1494_v42  ;;  %v6228_v42 = vld [vmem:[%s6463_s26 + $0x40] sm:$0xff] }
 0x136   : > { %v1837_v45 = vrot.slane %v6228_v42, 4 }
 0x13a   : > { %5053 = vmatmul.mubr.msk.bf16.gmra.mrb[44].mxu0 %vm695_vm2, %v1196_v10  ;;  %v1500_v10 = vrot.slane %v6563_v52, 3 }
 0x13b   : > { %1653 = vmatprep.mubr.bf16.mxu0 %v6309_v2 }
 0x13c   : > { %v1501_v47 = vsel %vm1463_vm3, %v1499_v6, %v1500_v10  ;;  %v1503_v50 = vsel %vm1463_vm3, %v1500_v10, %v1502_v11  ;;  %v6230_v6 = vld [vmem:[%s6463_s26 + $0x50] sm:$0xff]  ;;  %v6231_v11 = vld [vmem:[%s6463_s26 + $0x58] sm:$0xf] }
 0x13d   : > { %v1551_v48 = vpack.c.bf16 %v1501_v47, %v1498_v46  ;;  %v1552_v52 = vpack.c.bf16 %v1505_v51, %v1503_v50  ;;  %v1840_v10 = vrot.slane %v6230_v6, 4  ;;  %v1842_v12 = vrot.slane %v6231_v11, 4  ;;  %v6232_v50 = vld [vmem:[%s6463_s26 + $0x60] sm:$0xff] }
 0x13e   : > { %v1844_v51 = vrot.slane %v6232_v50, 4  ;;  %v2181_v11 = vld [vmem:[%s8014_s2] sm:$0x3] }
 0x13f   : > { %v1843_v17 = vsel %vm1822_vm4, %v1840_v10, %v1842_v12 }
 0x142   : > { %5063 = vmatmul.mubr.msk.bf16.vlgmr.msra.gmra.mrb[0].mxu0 %vm695_vm2, %v1544_v19  ;;  %v1553_v19 = vpack.c.bf16 %v1510_v55, %v1508_v54  ;;  %v6234_v55 = vld [vmem:[%s6463_s26 + $0x70] sm:$0xff] }
 0x143   : > { %1981 = vmatpush1.bf16.msra.mxu0 %v6071_v20  ;;  %1663 = vmatprep.mubr.bf16.mxu0 %v6309_v2  ;;  %v1511_v20 = vrot.slane %v6622_v44, 3 }
 0x144   : > { %5083 = vmatprep.subr.msk.bf16.mxu0 %vm732_vm0, %v6074_v21 }
 0x145   : > { %v1512_v8 = vsel %vm1463_vm3, %v1509_v18, %v1511_v20  ;;  %v6235_v20 = vld [vmem:[%s6463_s26 + $0x78] sm:$0xf] }
 0x146   : > { %v1554_v21 = vpack.c.bf16 %v1515_v9, %v1512_v8  ;;  %v1849_v7 = vrot.slane %v6235_v20, 4 }
 0x147   : > { %1983 = vmatpush1.bf16.msra.mxu0 %v1975_v14  ;;  %v1519_v14 = vsel %vm1463_vm3, %v1516_v22, %v1518_v23  ;;  %v6237_v23 = vld [vmem:[%s6463_s26 + $0x88] sm:$0xff] }
 0x14a   : > { %5064 = vmatmul.mubr.msk.bf16.gmra.mrb[4].mxu0 %vm695_vm2, %v1545_v15  ;;  %v1555_v15 = vpack.c.bf16 %v1519_v14, %v1517_v13  ;;  %v1852_v13 = vrot.slane %v6237_v23, 4  ;;  %v6238_v14 = vld [vmem:[%s6463_s26 + $0x90] sm:$0xff] }
 0x14b   : > { %1673 = vmatprep.mubr.bf16.mxu0 %v6309_v2 }
 0x152   : > { %5065 = vmatmul.mubr.msk.bf16.gmra.mrb[8].mxu0 %vm695_vm2, %v1546_v30  ;;  %v6222_v30 = vld [vmem:[%s6463_s26 + $0x10] sm:$0xff] }
 0x153   : > { %1683 = vmatprep.mubr.bf16.mxu0 %v6309_v2  ;;  %v1826_v33 = vrot.slane %v6222_v30, 4 }
 0x155   : > { %v1827_v38 = vsel %vm1822_vm4, %v1824_v29, %v1826_v33  ;;  %v6239_v29 = vld [vmem:[%s6463_s26 + $0x98] sm:$0xf] }
 0x156   : > { %v1903_v27 = vpack.c.bf16 %v1827_v38, %v1825_v37  ;;  %v1856_v30 = vrot.slane %v6239_v29, 4  ;;  %v6241_v38 = vld [vmem:[%s6463_s26 + $0xa8] sm:$0xff] }
 0x15a   : > { %5066 = vmatmul.mubr.msk.bf16.gmra.mrb[12].mxu0 %vm695_vm2, %v1547_v43  ;;  %v1828_v43 = vrot.slane %v6223_v28, 4 }
 0x15b   : > { %1693 = vmatprep.mubr.bf16.mxu0 %v6309_v2 }
 0x15c   : > { %v1829_v35 = vsel %vm1822_vm4, %v1826_v33, %v1828_v43  ;;  %v6240_v33 = vld [vmem:[%s6463_s26 + $0xa0] sm:$0xff] }
 0x15d   : > { %v1858_v37 = vrot.slane %v6240_v33, 4 }
 0x162   : > { %5067 = vmatmul.mubr.msk.bf16.gmra.mrb[16].mxu0 %vm695_vm2, %v1548_v36  ;;  %v1832_v36 = vsel %vm1822_vm4, %v1830_v58, %v1831_v34  ;;  %v6242_v58 = vld [vmem:[%s6463_s26 + $0xb0] sm:$0xff]  ;;  %v6243_v34 = vld [vmem:[%s6463_s26 + $0xb8] sm:$0xf] }
 0x163   : > { %1703 = vmatprep.mubr.bf16.mxu0 %v6309_v2  ;;  %v1904_v60 = vpack.c.bf16 %v1832_v36, %v1829_v35  ;;  %v1861_v59 = vrot.slane %v6242_v58, 4  ;;  %v1863_v35 = vrot.slane %v6243_v34, 4 }
 0x16a   : > { %5068 = vmatmul.mubr.msk.bf16.gmra.mrb[20].mxu0 %vm695_vm2, %v1549_v41  ;;  %v1835_v41 = vrot.slane %v6227_v40, 4 }
 0x16b   : > { %1713 = vmatprep.mubr.bf16.mxu0 %v6309_v2 }
 0x16c   : > { %v1836_v63 = vsel %vm1822_vm4, %v1833_v39, %v1835_v41  ;;  %v6244_v39 = vld [vmem:[%s6463_s26 + $0xc0] sm:$0xff]  ;;  %v1866_v41 = vrot.slane %v6610_v31, 4 }
 0x16d   : > { %v1905_v3 = vpack.c.bf16 %v1836_v63, %v1834_v62  ;;  %v1865_v40 = vrot.slane %v6244_v39, 4  ;;  %v1868_v62 = vrot.slane %v6613_v32, 4 }
 0x16f   : > { %v1867_v63 = vsel %vm1822_vm4, %v1865_v40, %v1866_v41 }
 0x172   : > { %5069 = vmatmul.mubr.msk.bf16.gmra.mrb[24].mxu0 %vm695_vm2, %v1550_v4  ;;  %v6229_v4 = vld [vmem:[%s6463_s26 + $0x48] sm:$0xff] }
 0x173   : > { %1723 = vmatprep.mubr.bf16.mxu0 %v6309_v2  ;;  %v1838_v5 = vrot.slane %v6229_v4, 4  ;;  %v1872_v4 = vrot.slane %v6625_v53, 4 }
 0x175   : > { %v1839_v46 = vsel %vm1822_vm4, %v1837_v45, %v1838_v5  ;;  %v1841_v47 = vsel %vm1822_vm4, %v1838_v5, %v1840_v10  ;;  %v1870_v45 = vrot.slane %v6622_v44, 4  ;;  %v1873_v5 = vrot.slane %v6628_v57, 4 }
 0x176   : > { %v1875_v10 = vrot.slane %v6638_v0, 4  ;;  %v2183_v0 = vlaneseq }
 0x177   : > { %v1871_v31 = vsel %vm1822_vm4, %v1868_v62, %v1870_v45  ;;  %v1874_v32 = vsel %vm1822_vm4, %v1872_v4, %v1873_v5 }
 0x178   : > { %v1913_v6 = vpack.c.bf16 %v1874_v32, %v1871_v31  ;;  %v1876_v44 = vsel %vm1822_vm4, %v1873_v5, %v1875_v10 }
 0x17a   : > { %5070 = vmatmul.mubr.msk.bf16.gmra.mrb[28].mxu0 %vm695_vm2, %v1551_v48  ;;  %v1906_v48 = vpack.c.bf16 %v1841_v47, %v1839_v46  ;;  %v1877_v46 = vrot.slane %v6641_v1, 4  ;;  %v6079_v47 = vld [vmem:[%s8015_s3 + $0x4] ss:$8 sps:$4 sm:$0xff]   ;;  %v2184_v1 = vshrl.u32 %v2183_v0, 7 }
 0x17b   : > { %1733 = vmatprep.mubr.bf16.mxu0 %v6309_v2  ;;  %5112 = vmatprep.mubr.msk.bf16.mxu1 %vm2401_vm5, %v6079_v47 }
 0x17c   : > { %v1878_v53 = vsel %vm1822_vm4, %v1875_v10, %v1877_v46  ;;  %v2189_v12 = vsub.s32 1, %v2184_v1 }
 0x17d   : > { %v1914_v57 = vpack.c.bf16 %v1878_v53, %v1876_v44 }
 0x182   : > { %5071 = vmatmul.mubr.msk.bf16.gmra.mrb[32].mxu0 %vm695_vm2, %v1552_v52  ;;  %v6233_v52 = vld [vmem:[%s6463_s26 + $0x68] sm:$0xff] }
 0x183   : > { %1743 = vmatprep.mubr.bf16.mxu0 %v6309_v2  ;;  %v1845_v16 = vrot.slane %v6233_v52, 4 }
 0x185   : > { %v1846_v18 = vsel %vm1822_vm4, %v1844_v51, %v1845_v16  ;;  %v6990_v51 = vrot.slane %v2181_v11, %v2189_v12 }
 0x186   : > { %v1907_v54 = vpack.c.bf16 %v1846_v18, %v1843_v17 }
 0x18a   : > { %5072 = vmatmul.mubr.msk.bf16.gmra.mrb[36].mxu0 %vm695_vm2, %v1553_v19  ;;  %v1847_v19 = vrot.slane %v6234_v55, 4 }
 0x18b   : > { %1753 = vmatprep.mubr.bf16.mxu0 %v6309_v2 }
 0x18c   : > { %v1848_v56 = vsel %vm1822_vm4, %v1845_v16, %v1847_v19  ;;  %v1850_v8 = vsel %vm1822_vm4, %v1847_v19, %v1849_v7 }
 0x18d   : > { %v1908_v9 = vpack.c.bf16 %v1850_v8, %v1848_v56 }
 0x192   : > { %5073 = vmatmul.mubr.msk.bf16.gmra.mrb[40].mxu0 %vm695_vm2, %v1554_v21  ;;  %v6236_v21 = vld [vmem:[%s6463_s26 + $0x80] sm:$0xff]  ;;  %s6249_s26 = sshll.u32 %s6312_s17, 4  ;;  %s6250_s26 = int_to_ptr.vmem [resolvable:$false] %s6249_s26 }
 0x193   : > { %1763 = vmatprep.mubr.bf16.mxu0 %v6309_v2  ;;  %v1851_v22 = vrot.slane %v6236_v21, 4  ;;  %s6251_s24 = scalar_lea.vmem %s6250_s26, 256  ;;  %p6252_p0 = scmp.lt.s32.totalorder %s7972_s20, %s6250_s26 }
 0x194   : > { %p6253_p1 = scmp.lt.s32.totalorder %s6251_s24, %s6245_s22 }
 0x195   : > { %v1853_v24 = vsel %vm1822_vm4, %v1851_v22, %v1852_v13 }
 0x196   : > { %p6254_p2 = por %p6253_p1, %p6252_p0 }
 0x198   : > { %p6255_p3 = pnand %p6254_p2, %p6248_p13 }
 0x19a   : > { %5074 = vmatmul.mubr.msk.bf16.gmra.mrb[44].mxu0 %vm695_vm2, %v1555_v15  ;;  %v1854_v15 = vrot.slane %v6238_v14, 4 }
 0x19b   : > { %2012 = vmatprep.mubr.bf16.mxu0 %v6309_v2 }
 0x19c   : > { %v1855_v25 = vsel %vm1822_vm4, %v1852_v13, %v1854_v15  ;;  %v1857_v28 = vsel %vm1822_vm4, %v1854_v15, %v1856_v30 }
 0x19d   : > { %v1909_v26 = vpack.c.bf16 %v1855_v25, %v1853_v24 }
 0x1a2   : > { %5084 = vmatmul.mubr.msk.bf16.vlgmr.msra.gmra.mrb[0].mxu0 %vm695_vm2, %v1903_v27  ;;  %v1859_v27 = vrot.slane %v6241_v38, 4 }
 0x1a3   : > { %2022 = vmatprep.mubr.bf16.mxu0 %v6309_v2 }
 0x1a4   : > { %v1860_v43 = vsel %vm1822_vm4, %v1858_v37, %v1859_v27  ;;  %v1862_v36 = vsel %vm1822_vm4, %v1859_v27, %v1861_v59 }
 0x1a5   : > { %v1910_v49 = vpack.c.bf16 %v1860_v43, %v1857_v28 }
 0x1aa   : > { %5085 = vmatmul.mubr.msk.bf16.gmra.mrb[4].mxu0 %vm695_vm2, %v1904_v60  ;;  %v1864_v60 = vsel %vm1822_vm4, %v1861_v59, %v1863_v35 }
 0x1ab   : > { %2032 = vmatprep.mubr.bf16.mxu0 %v6309_v2  ;;  %v1911_v61 = vpack.c.bf16 %v1864_v60, %v1862_v36 }
 0x1b2   : > { %5086 = vmatmul.mubr.msk.bf16.gmra.mrb[8].mxu0 %vm695_vm2, %v1905_v3  ;;  %v1869_v3 = vsel %vm1822_vm4, %v1866_v41, %v1868_v62 }
 0x1b3   : > { %2042 = vmatprep.mubr.bf16.mxu0 %v6309_v2  ;;  %v1912_v42 = vpack.c.bf16 %v1869_v3, %v1867_v63 }
 0x1ba   : > { %5087 = vmatmul.mubr.msk.bf16.gmra.mrb[12].mxu0 %vm695_vm2, %v1906_v48  ;;  %v2185_v48 = vsub.s32 0, %v2184_v1 }
 0x1bb   : > { %2052 = vmatprep.mubr.bf16.mxu0 %v6309_v2 }
 0x1bc   : > { %v6988_v50 = vrot.slane %v2181_v11, %v2185_v48 }
 0x1c2   : > { %5088 = vmatmul.mubr.msk.bf16.gmra.mrb[16].mxu0 %vm695_vm2, %v1907_v54 }
 0x1c3   : > { %2062 = vmatprep.mubr.bf16.mxu0 %v6309_v2 }
 0x1ca   : > { %5089 = vmatmul.mubr.msk.bf16.gmra.mrb[20].mxu0 %vm695_vm2, %v1908_v9 }
 0x1cb   : > { %2072 = vmatprep.mubr.bf16.mxu0 %v6309_v2 }
 0x1d2   : > { %5090 = vmatmul.mubr.msk.bf16.gmra.mrb[24].mxu0 %vm695_vm2, %v1909_v26 }
 0x1d3   : > { %2082 = vmatprep.mubr.bf16.mxu0 %v6309_v2 }
 0x1da   : > { %5091 = vmatmul.mubr.msk.bf16.gmra.mrb[28].mxu0 %vm695_vm2, %v1910_v49 }
 0x1db   : > { %2092 = vmatprep.mubr.bf16.mxu0 %v6309_v2 }
 0x1e2   : > { %5092 = vmatmul.mubr.msk.bf16.gmra.mrb[32].mxu0 %vm695_vm2, %v1911_v61 }
 0x1e3   : > { %2102 = vmatprep.mubr.bf16.mxu0 %v6309_v2 }
 0x1ea   : > { %5093 = vmatmul.mubr.msk.bf16.gmra.mrb[36].mxu0 %vm695_vm2, %v1912_v42 }
 0x1eb   : > { %2112 = vmatprep.mubr.bf16.mxu0 %v6309_v2 }
 0x1f2   : > { %5094 = vmatmul.mubr.msk.bf16.gmra.mrb[40].mxu0 %vm695_vm2, %v1913_v6 }
 0x1f3   : > { %2122 = vmatprep.mubr.bf16.mxu0 %v6309_v2 }
 0x1fa   : > { %5095 = vmatmul.mubr.msk.bf16.gmra.mrb[44].mxu0 %vm695_vm2, %v1914_v57 }
 0x275   : > { %v2014_v52 = vpop.f32.mrb[0].mxu0 }
 0x276   : > { %v2193_v16 = vadd.f32 %v6988_v50, %v2014_v52  ;;  %v2016_v17 = vpop.f32.mrb[1].mxu0 }
 0x277   : > { %v2194_v18 = vadd.f32 %v6990_v51, %v2016_v17  ;;  %v2018_v54 = vpop.f32.mrb[2].mxu0 }
 0x278   : > { %v2195_v55 = vadd.f32 %v6988_v50, %v2018_v54  ;;  %v2020_v19 = vpop.f32.mrb[3].mxu0  ;;  %v2241_v7 = vmax.f32 %v2193_v16, 0.0 }
 0x279   : > { %v2196_v20 = vadd.f32 %v6990_v51, %v2020_v19  ;;  %v2242_v8 = vmax.f32 %v2194_v18, 0.0 }
 0x27a   : > { %v2243_v56 = vmax.f32 %v2195_v55, 0.0 }
 0x27b   : > { %v2244_v9 = vmax.f32 %v2196_v20, 0.0 }
 0x27c   : > { %v6996_v21 = vpack.c.bf16 %v2243_v56, %v2241_v7 }
 0x27d   : > { %v2024_v22 = vpop.f32.mrb[4].mxu0  ;;  %v6998_v23 = vpack.c.bf16 %v2244_v9, %v2242_v8 }
 0x27e   : > { %v2197_v13 = vadd.f32 %v6988_v50, %v2024_v22  ;;  %v2026_v14 = vpop.f32.mrb[5].mxu0 }
 0x27f   : > { %v2198_v15 = vadd.f32 %v6990_v51, %v2026_v14  ;;  %v2028_v24 = vpop.f32.mrb[6].mxu0  ;;  %2426 = vmatprep.subr.bf16.mxu1 %v6998_v23 }
 0x280   : > { %v2199_v25 = vadd.f32 %v6988_v50, %v2028_v24  ;;  %v2030_v26 = vpop.f32.mrb[7].mxu0  ;;  %2427 = vmatpush1.bf16.msra.mxu1 %v6996_v21  ;;  %v2245_v30 = vmax.f32 %v2197_v13, 0.0 }
 0x281   : > { %v2200_v29 = vadd.f32 %v6990_v51, %v2030_v26  ;;  %v2246_v37 = vmax.f32 %v2198_v15, 0.0 }
 0x282   : > { %v2247_v33 = vmax.f32 %v2199_v25, 0.0 }
 0x283   : > { %v2248_v38 = vmax.f32 %v2200_v29, 0.0 }
 0x284   : > { %v7006_v27 = vpack.c.bf16 %v2247_v33, %v2245_v30 }
 0x285   : > { %v7008_v28 = vpack.c.bf16 %v2248_v38, %v2246_v37  ;;  %v2034_v43 = vpop.f32.mrb[8].mxu0 }
 0x286   : > { %v2201_v49 = vadd.f32 %v6988_v50, %v2034_v43  ;;  %v2036_v58 = vpop.f32.mrb[9].mxu0 }
 0x287   : > { %v2202_v59 = vadd.f32 %v6990_v51, %v2036_v58  ;;  %v2038_v34 = vpop.f32.mrb[10].mxu0  ;;  %2428 = vmatprep.subr.bf16.mxu1 %v7008_v28 }
 0x288   : > { %v2203_v35 = vadd.f32 %v6988_v50, %v2038_v34  ;;  %v2040_v36 = vpop.f32.mrb[11].mxu0  ;;  %2429 = vmatpush1.bf16.msra.mxu1 %v7006_v27  ;;  %v2249_v61 = vmax.f32 %v2201_v49, 0.0 }
 0x289   : > { %v2204_v60 = vadd.f32 %v6990_v51, %v2040_v36  ;;  %v2250_v40 = vmax.f32 %v2202_v59, 0.0 }
 0x28a   : > { %v2251_v39 = vmax.f32 %v2203_v35, 0.0 }
 0x28b   : > { %v2252_v41 = vmax.f32 %v2204_v60, 0.0 }
 0x28c   : > { %v7016_v62 = vpack.c.bf16 %v2251_v39, %v2249_v61 }
 0x28d   : > { %v7018_v63 = vpack.c.bf16 %v2252_v41, %v2250_v40  ;;  %v2044_v3 = vpop.f32.mrb[12].mxu0 }
 0x28e   : > { %v2205_v42 = vadd.f32 %v6988_v50, %v2044_v3  ;;  %v2046_v45 = vpop.f32.mrb[13].mxu0 }
 0x28f   : > { %v2206_v4 = vadd.f32 %v6990_v51, %v2046_v45  ;;  %v2048_v5 = vpop.f32.mrb[14].mxu0  ;;  %2430 = vmatprep.subr.bf16.mxu1 %v7018_v63 }
 0x290   : > { %v2207_v31 = vadd.f32 %v6988_v50, %v2048_v5  ;;  %v2050_v32 = vpop.f32.mrb[15].mxu0  ;;  %2431 = vmatpush1.bf16.msra.mxu1 %v7016_v62  ;;  %v2253_v10 = vmax.f32 %v2205_v42, 0.0 }
 0x291   : > { %v2208_v6 = vadd.f32 %v6990_v51, %v2050_v32  ;;  %v2254_v44 = vmax.f32 %v2206_v4, 0.0 }
 0x292   : > { %v2255_v46 = vmax.f32 %v2207_v31, 0.0 }
 0x293   : > { %v2256_v53 = vmax.f32 %v2208_v6, 0.0 }
 0x294   : > { %v7026_v57 = vpack.c.bf16 %v2255_v46, %v2253_v10 }
 0x295   : > { %v7028_v47 = vpack.c.bf16 %v2256_v53, %v2254_v44  ;;  %v2054_v0 = vpop.f32.mrb[16].mxu0 }
 0x296   : > { %v2209_v1 = vadd.f32 %v6988_v50, %v2054_v0  ;;  %v2056_v48 = vpop.f32.mrb[17].mxu0 }
 0x297   : > { %v2210_v11 = vadd.f32 %v6990_v51, %v2056_v48  ;;  %v2058_v12 = vpop.f32.mrb[18].mxu0  ;;  %2432 = vmatprep.subr.bf16.mxu1 %v7028_v47 }
 0x298   : > { %v2211_v52 = vadd.f32 %v6988_v50, %v2058_v12  ;;  %v2060_v16 = vpop.f32.mrb[19].mxu0  ;;  %2433 = vmatpush1.bf16.msra.mxu1 %v7026_v57  ;;  %v2257_v18 = vmax.f32 %v2209_v1, 0.0 }
 0x299   : > { %v2212_v17 = vadd.f32 %v6990_v51, %v2060_v16  ;;  %v2258_v55 = vmax.f32 %v2210_v11, 0.0 }
 0x29a   : > { %v2259_v54 = vmax.f32 %v2211_v52, 0.0 }
 0x29b   : > { %v2260_v19 = vmax.f32 %v2212_v17, 0.0 }
 0x29c   : > { %v7036_v20 = vpack.c.bf16 %v2259_v54, %v2257_v18 }
 0x29d   : > { %v7038_v7 = vpack.c.bf16 %v2260_v19, %v2258_v55  ;;  %v2064_v56 = vpop.f32.mrb[20].mxu0 }
 0x29e   : > { %v2213_v8 = vadd.f32 %v6988_v50, %v2064_v56  ;;  %v2066_v9 = vpop.f32.mrb[21].mxu0 }
 0x29f   : > { %v2214_v22 = vadd.f32 %v6990_v51, %v2066_v9  ;;  %v2068_v13 = vpop.f32.mrb[22].mxu0  ;;  %2434 = vmatprep.subr.bf16.mxu1 %v7038_v7 }
 0x2a0   : > { %v2215_v14 = vadd.f32 %v6988_v50, %v2068_v13  ;;  %v2070_v15 = vpop.f32.mrb[23].mxu0  ;;  %2435 = vmatpush1.bf16.msra.mxu1 %v7036_v20  ;;  %v2261_v25 = vmax.f32 %v2213_v8, 0.0 }
 0x2a1   : > { %v2216_v24 = vadd.f32 %v6990_v51, %v2070_v15  ;;  %v2262_v29 = vmax.f32 %v2214_v22, 0.0 }
 0x2a2   : > { %v2263_v26 = vmax.f32 %v2215_v14, 0.0 }
 0x2a3   : > { %v2264_v30 = vmax.f32 %v2216_v24, 0.0 }
 0x2a4   : > { %v7046_v33 = vpack.c.bf16 %v2263_v26, %v2261_v25 }
 0x2a5   : > { %v7048_v37 = vpack.c.bf16 %v2264_v30, %v2262_v29  ;;  %v2074_v38 = vpop.f32.mrb[24].mxu0 }
 0x2a6   : > { %v2217_v43 = vadd.f32 %v6988_v50, %v2074_v38  ;;  %v2076_v49 = vpop.f32.mrb[25].mxu0 }
 0x2a7   : > { %v2218_v58 = vadd.f32 %v6990_v51, %v2076_v49  ;;  %v2078_v59 = vpop.f32.mrb[26].mxu0  ;;  %2436 = vmatprep.subr.bf16.mxu1 %v7048_v37 }
 0x2a8   : > { %v2219_v34 = vadd.f32 %v6988_v50, %v2078_v59  ;;  %v2080_v35 = vpop.f32.mrb[27].mxu0  ;;  %2437 = vmatpush1.bf16.msra.mxu1 %v7046_v33  ;;  %v2265_v60 = vmax.f32 %v2217_v43, 0.0 }
 0x2a9   : > { %v2220_v36 = vadd.f32 %v6990_v51, %v2080_v35  ;;  %v2266_v39 = vmax.f32 %v2218_v58, 0.0 }
 0x2aa   : > { %v2267_v61 = vmax.f32 %v2219_v34, 0.0 }
 0x2ab   : > { %v2268_v40 = vmax.f32 %v2220_v36, 0.0 }
 0x2ac   : > { %v7056_v41 = vpack.c.bf16 %v2267_v61, %v2265_v60 }
 0x2ad   : > { %v7058_v3 = vpack.c.bf16 %v2268_v40, %v2266_v39  ;;  %v2084_v42 = vpop.f32.mrb[28].mxu0 }
 0x2ae   : > { %v2221_v45 = vadd.f32 %v6988_v50, %v2084_v42  ;;  %v2086_v4 = vpop.f32.mrb[29].mxu0 }
 0x2af   : > { %v2222_v5 = vadd.f32 %v6990_v51, %v2086_v4  ;;  %v2088_v31 = vpop.f32.mrb[30].mxu0  ;;  %2438 = vmatprep.subr.bf16.mxu1 %v7058_v3 }
 0x2b0   : > { %v2223_v32 = vadd.f32 %v6988_v50, %v2088_v31  ;;  %v2090_v6 = vpop.f32.mrb[31].mxu0  ;;  %2439 = vmatpush1.bf16.msra.mxu1 %v7056_v41  ;;  %v2269_v46 = vmax.f32 %v2221_v45, 0.0 }
 0x2b1   : > { %v2224_v10 = vadd.f32 %v6990_v51, %v2090_v6  ;;  %v2270_v53 = vmax.f32 %v2222_v5, 0.0 }
 0x2b2   : > { %v2271_v44 = vmax.f32 %v2223_v32, 0.0 }
 0x2b3   : > { %v2272_v0 = vmax.f32 %v2224_v10, 0.0 }
 0x2b4   : > { %v7066_v1 = vpack.c.bf16 %v2271_v44, %v2269_v46 }
 0x2b5   : > { %v7068_v48 = vpack.c.bf16 %v2272_v0, %v2270_v53  ;;  %v2094_v11 = vpop.f32.mrb[32].mxu0 }
 0x2b6   : > { %v2225_v12 = vadd.f32 %v6988_v50, %v2094_v11  ;;  %v2096_v52 = vpop.f32.mrb[33].mxu0 }
 0x2b7   : > { %v2226_v16 = vadd.f32 %v6990_v51, %v2096_v52  ;;  %v2098_v17 = vpop.f32.mrb[34].mxu0  ;;  %2440 = vmatprep.subr.bf16.mxu1 %v7068_v48 }
 0x2b8   : > { %v2227_v18 = vadd.f32 %v6988_v50, %v2098_v17  ;;  %v2100_v54 = vpop.f32.mrb[35].mxu0  ;;  %2441 = vmatpush1.bf16.msra.mxu1 %v7066_v1  ;;  %v2273_v19 = vmax.f32 %v2225_v12, 0.0 }
 0x2b9   : > { %v2228_v55 = vadd.f32 %v6990_v51, %v2100_v54  ;;  %v2274_v8 = vmax.f32 %v2226_v16, 0.0 }
 0x2ba   : > { %v2275_v56 = vmax.f32 %v2227_v18, 0.0 }
 0x2bb   : > { %v2276_v9 = vmax.f32 %v2228_v55, 0.0 }
 0x2bc   : > { %v7076_v22 = vpack.c.bf16 %v2275_v56, %v2273_v19 }
 0x2bd   : > { %v7078_v13 = vpack.c.bf16 %v2276_v9, %v2274_v8  ;;  %v2104_v14 = vpop.f32.mrb[36].mxu0  ;;  %v6077_v9 = vld [vmem:[%s8015_s3] ss:$8 sps:$4 sm:$0xff]  }
 0x2be   : > { %v2229_v15 = vadd.f32 %v6988_v50, %v2104_v14  ;;  %v2106_v24 = vpop.f32.mrb[37].mxu0  ;;  %v6083_v14 = vld [vmem:[%s8015_s3 + $0x24] ss:$8 sps:$4 sm:$0xff]  }
 0x2bf   : > { %v2230_v25 = vadd.f32 %v6990_v51, %v2106_v24  ;;  %v2108_v26 = vpop.f32.mrb[38].mxu0  ;;  %2442 = vmatprep.subr.bf16.mxu1 %v7078_v13  ;;  %v6113_v24 = vld [vmem:[%s8015_s3 + $0xc4] ss:$8 sps:$4 sm:$0xff]  }
 0x2c0   : > { %v2231_v29 = vadd.f32 %v6988_v50, %v2108_v26  ;;  %v2110_v30 = vpop.f32.mrb[39].mxu0  ;;  %2443 = vmatpush1.bf16.msra.mxu1 %v7076_v22  ;;  %v2277_v43 = vmax.f32 %v2229_v15, 0.0  ;;  %v6112_v15 = vld [vmem:[%s8015_s3 + $0xb0] ss:$8 sps:$4 sm:$0xff]   ;;  %v6116_v26 = vld [vmem:[%s8015_s3 + $0xd4] ss:$8 sps:$4 sm:$0xff]  }
 0x2c1   : > { %v2232_v38 = vadd.f32 %v6990_v51, %v2110_v30  ;;  %v2278_v58 = vmax.f32 %v2230_v25, 0.0  ;;  %v6115_v25 = vld [vmem:[%s8015_s3 + $0xc0] ss:$8 sps:$4 sm:$0xff]   ;;  %v6118_v30 = vld [vmem:[%s8015_s3 + $0xd0] ss:$8 sps:$4 sm:$0xff]  }
 0x2c2   : > { %v2279_v49 = vmax.f32 %v2231_v29, 0.0  ;;  %v6125_v29 = vld [vmem:[%s8016_s4] sm:$0xff]  }
 0x2c3   : > { %v2280_v59 = vmax.f32 %v2232_v38, 0.0  ;;  %v6119_v38 = vld [vmem:[%s8015_s3 + $0xe4] ss:$8 sps:$4 sm:$0xff]  }
 0x2c4   : > { %v7086_v34 = vpack.c.bf16 %v2279_v49, %v2277_v43  ;;  %v6126_v43 = vld [vmem:[%s8016_s4 + $0x8] sm:$0xff]  }
 0x2c5   : > { %v7088_v35 = vpack.c.bf16 %v2280_v59, %v2278_v58  ;;  %v2114_v36 = vpop.f32.mrb[40].mxu0  ;;  %v6121_v49 = vld [vmem:[%s8015_s3 + $0xe0] ss:$8 sps:$4 sm:$0xff]   ;;  %v6127_v58 = vld [vmem:[%s8016_s4 + $0x10] sm:$0xff]  }
 0x2c6   : > { %v2233_v60 = vadd.f32 %v6988_v50, %v2114_v36  ;;  %v2116_v61 = vpop.f32.mrb[41].mxu0  ;;  %v6122_v59 = vld [vmem:[%s8015_s3 + $0xf4] ss:$8 sps:$4 sm:$0xff]   ;;  %v6129_v36 = vld [vmem:[%s8016_s4 + $0x20] sm:$0xff]  }
 0x2c7   : > { %v2234_v39 = vadd.f32 %v6990_v51, %v2116_v61  ;;  %v2118_v40 = vpop.f32.mrb[42].mxu0  ;;  %2444 = vmatprep.subr.bf16.mxu1 %v7088_v35  ;;  %v6131_v61 = vld [vmem:[%s8016_s4 + $0x30] sm:$0xff]  }
 0x2c8   : > { %v2235_v42 = vadd.f32 %v6988_v50, %v2118_v40  ;;  %v2120_v45 = vpop.f32.mrb[43].mxu0  ;;  %2445 = vmatpush1.bf16.msra.mxu1 %v7086_v34  ;;  %v2281_v5 = vmax.f32 %v2233_v60, 0.0  ;;  %v6130_v60 = vld [vmem:[%s8016_s4 + $0x28] sm:$0xff]   ;;  %v6133_v40 = vld [vmem:[%s8016_s4 + $0x40] sm:$0xff]  }
 0x2c9   : > { %v2236_v4 = vadd.f32 %v6990_v51, %v2120_v45  ;;  %v2282_v32 = vmax.f32 %v2234_v39, 0.0  ;;  %v6132_v39 = vld [vmem:[%s8016_s4 + $0x38] sm:$0xff]  }
 0x2ca   : > { %v2283_v31 = vmax.f32 %v2235_v42, 0.0 }
 0x2cb   : > { %v2284_v6 = vmax.f32 %v2236_v4, 0.0 }
 0x2cc   : > { %v7096_v10 = vpack.c.bf16 %v2283_v31, %v2281_v5 }
 0x2cd   : > { %v2310_v46 = vpack.c.bf16 %v2284_v6, %v2282_v32  ;;  %v2124_v44 = vpop.f32.mrb[44].mxu0 }
 0x2ce   : > { %v2237_v53 = vadd.f32 %v6988_v50, %v2124_v44  ;;  %v2126_v0 = vpop.f32.mrb[45].mxu0 }
 0x2cf   : > { %v2238_v11 = vadd.f32 %v6990_v51, %v2126_v0  ;;  %v2128_v12 = vpop.f32.mrb[46].mxu0  ;;  %2446 = vmatprep.subr.bf16.mxu1 %v2310_v46 }
 0x2d0   : > { %v2239_v52 = vadd.f32 %v6988_v50, %v2128_v12  ;;  %v2130_v16 = vpop.f32.mrb[47].mxu0  ;;  %2447 = vmatpush1.bf16.msra.mxu1 %v7096_v10  ;;  %v2285_v18 = vmax.f32 %v2237_v53, 0.0  ;;  %v6080_v50 = vld [vmem:[%s8015_s3 + $0x14] ss:$8 sps:$4 sm:$0xff]  }
 0x2d1   : > { %v2240_v17 = vadd.f32 %v6990_v51, %v2130_v16  ;;  %v2286_v55 = vmax.f32 %v2238_v11, 0.0  ;;  %v6082_v51 = vld [vmem:[%s8015_s3 + $0x10] ss:$8 sps:$4 sm:$0xff]  }
 0x2d2   : > { %v2287_v54 = vmax.f32 %v2239_v52, 0.0 }
 0x2d3   : > { %v2288_v19 = vmax.f32 %v2240_v17, 0.0 }
 0x2d4   : > { %v2311_v56 = vpack.c.bf16 %v2287_v54, %v2285_v18 }
 0x2d5   : > { %v2312_v8 = vpack.c.bf16 %v2288_v19, %v2286_v55 }
 0x2d7   : > { %2448 = vmatprep.subr.bf16.mxu1 %v2312_v8 }
 0x2d8   : > { %2449 = vmatpush1.bf16.msra.mxu1 %v2311_v56 }
 0x2d9   : > { %2652 = vmatprep.subr.bf16.mxu1 %v6998_v23  ;;  %v6086_v23 = vld [vmem:[%s8015_s3 + $0x34] ss:$8 sps:$4 sm:$0xff]  }
 0x2db   : > { %2459 = vmatmul.mubr.bf16.vlgmr.msra.gmra.mrb[0].mxu1 %v6077_v9 }
 0x2dc   : > { %2653 = vmatpush1.bf16.msra.mxu1 %v6996_v21  ;;  %5113 = vmatprep.mubr.msk.bf16.mxu1 %vm2401_vm5, %v6080_v50  ;;  %v6085_v21 = vld [vmem:[%s8015_s3 + $0x20] ss:$8 sps:$4 sm:$0xff]  }
 0x2dd   : > { %2654 = vmatprep.subr.bf16.mxu1 %v7008_v28  ;;  %v6089_v28 = vld [vmem:[%s8015_s3 + $0x44] ss:$8 sps:$4 sm:$0xff]  }
 0x2e0   : > { %2655 = vmatpush1.bf16.msra.mxu1 %v7006_v27  ;;  %v6088_v27 = vld [vmem:[%s8015_s3 + $0x30] ss:$8 sps:$4 sm:$0xff]  }
 0x2e1   : > { %2656 = vmatprep.subr.bf16.mxu1 %v7018_v63  ;;  %v6092_v63 = vld [vmem:[%s8015_s3 + $0x54] ss:$8 sps:$4 sm:$0xff]  }
 0x2e3   : > { %2469 = vmatmul.mubr.bf16.gmra.mrb[4].mxu1 %v6082_v51 }
 0x2e4   : > { %2657 = vmatpush1.bf16.msra.mxu1 %v7016_v62  ;;  %5114 = vmatprep.mubr.msk.bf16.mxu1 %vm2401_vm5, %v6083_v14  ;;  %v6091_v62 = vld [vmem:[%s8015_s3 + $0x40] ss:$8 sps:$4 sm:$0xff]  }
 0x2e5   : > { %2658 = vmatprep.subr.bf16.mxu1 %v7028_v47  ;;  %v6095_v47 = vld [vmem:[%s8015_s3 + $0x64] ss:$8 sps:$4 sm:$0xff]  }
 0x2e8   : > { %2659 = vmatpush1.bf16.msra.mxu1 %v7026_v57  ;;  %v6094_v57 = vld [vmem:[%s8015_s3 + $0x50] ss:$8 sps:$4 sm:$0xff]  }
 0x2e9   : > { %2660 = vmatprep.subr.bf16.mxu1 %v7038_v7  ;;  %v6098_v7 = vld [vmem:[%s8015_s3 + $0x74] ss:$8 sps:$4 sm:$0xff]  }
 0x2eb   : > { %2479 = vmatmul.mubr.bf16.gmra.mrb[8].mxu1 %v6085_v21 }
 0x2ec   : > { %2661 = vmatpush1.bf16.msra.mxu1 %v7036_v20  ;;  %5115 = vmatprep.mubr.msk.bf16.mxu1 %vm2401_vm5, %v6086_v23  ;;  %v6097_v20 = vld [vmem:[%s8015_s3 + $0x60] ss:$8 sps:$4 sm:$0xff]  }
 0x2ed   : > { %2662 = vmatprep.subr.bf16.mxu1 %v7048_v37  ;;  %v6103_v37 = vld [vmem:[%s8015_s3 + $0x84] ss:$8 sps:$4 sm:$0xff]  }
 0x2f0   : > { %2663 = vmatpush1.bf16.msra.mxu1 %v7046_v33  ;;  %v6100_v33 = vld [vmem:[%s8015_s3 + $0x70] ss:$8 sps:$4 sm:$0xff]  }
 0x2f1   : > { %2664 = vmatprep.subr.bf16.mxu1 %v7058_v3  ;;  %v6104_v3 = vld [vmem:[%s8015_s3 + $0x94] ss:$8 sps:$4 sm:$0xff]  }
 0x2f3   : > { %2489 = vmatmul.mubr.bf16.gmra.mrb[12].mxu1 %v6088_v27 }
 0x2f4   : > { %2665 = vmatpush1.bf16.msra.mxu1 %v7056_v41  ;;  %5116 = vmatprep.mubr.msk.bf16.mxu1 %vm2401_vm5, %v6089_v28  ;;  %v6101_v41 = vld [vmem:[%s8015_s3 + $0x80] ss:$8 sps:$4 sm:$0xff]  }
 0x2f5   : > { %2666 = vmatprep.subr.bf16.mxu1 %v7068_v48  ;;  %v6107_v48 = vld [vmem:[%s8015_s3 + $0xa4] ss:$8 sps:$4 sm:$0xff]  }
 0x2f8   : > { %2667 = vmatpush1.bf16.msra.mxu1 %v7066_v1  ;;  %v6106_v1 = vld [vmem:[%s8015_s3 + $0x90] ss:$8 sps:$4 sm:$0xff]  }
 0x2f9   : > { %2668 = vmatprep.subr.bf16.mxu1 %v7078_v13  ;;  %v6110_v13 = vld [vmem:[%s8015_s3 + $0xb4] ss:$8 sps:$4 sm:$0xff]  }
 0x2fb   : > { %2499 = vmatmul.mubr.bf16.gmra.mrb[16].mxu1 %v6091_v62 }
 0x2fc   : > { %2669 = vmatpush1.bf16.msra.mxu1 %v7076_v22  ;;  %5117 = vmatprep.mubr.msk.bf16.mxu1 %vm2401_vm5, %v6092_v63  ;;  %v6109_v22 = vld [vmem:[%s8015_s3 + $0xa0] ss:$8 sps:$4 sm:$0xff]  }
 0x2fd   : > { %2670 = vmatprep.subr.bf16.mxu1 %v7088_v35  ;;  %v6124_v35 = vld [vmem:[%s8015_s3 + $0xf0] ss:$8 sps:$4 sm:$0xff]  }
 0x300   : > { %2671 = vmatpush1.bf16.msra.mxu1 %v7086_v34  ;;  %v6128_v34 = vld [vmem:[%s8016_s4 + $0x18] sm:$0xff]  }
 0x301   : > { %2672 = vmatprep.subr.bf16.mxu1 %v2310_v46 }
 0x303   : > { %2509 = vmatmul.mubr.bf16.gmra.mrb[20].mxu1 %v6094_v57 }
 0x304   : > { %2673 = vmatpush1.bf16.msra.mxu1 %v7096_v10  ;;  %5118 = vmatprep.mubr.msk.bf16.mxu1 %vm2401_vm5, %v6095_v47 }
 0x305   : > { %2674 = vmatprep.subr.bf16.mxu1 %v2312_v8 }
 0x308   : > { %2675 = vmatpush1.bf16.msra.mxu1 %v2311_v56 }
 0x309   : > { %2910 = vmatprep.subr.bf16.mxu1 %v6309_v2 }
 0x30b   : > { %2519 = vmatmul.mubr.bf16.gmra.mrb[24].mxu1 %v6097_v20 }
 0x30c   : > { %5119 = vmatprep.mubr.msk.bf16.mxu1 %vm2401_vm5, %v6098_v7 }
 0x313   : > { %2529 = vmatmul.mubr.bf16.gmra.mrb[28].mxu1 %v6100_v33 }
 0x314   : > { %5152 = vmatprep.mubr.msk.bf16.mxu1 %vm2401_vm5, %v6103_v37 }
 0x31b   : > { %2685 = vmatmul.mubr.bf16.vlgmr.msra.gmra.mrb[32].mxu1 %v6101_v41 }
 0x31c   : > { %5153 = vmatprep.mubr.msk.bf16.mxu1 %vm2401_vm5, %v6104_v3  ;;  %2911 = vmatpush1.bf16.msra.mxu1 %v6125_v29 }
 0x31d   : > { %2912 = vmatprep.subr.bf16.mxu1 %v6309_v2 }
 0x320   : > { %2913 = vmatpush1.bf16.msra.mxu1 %v6126_v43 }
 0x321   : > { %2914 = vmatprep.subr.bf16.mxu1 %v6309_v2 }
 0x323   : > { %2695 = vmatmul.mubr.bf16.gmra.mrb[36].mxu1 %v6106_v1 }
 0x324   : > { %5154 = vmatprep.mubr.msk.bf16.mxu1 %vm2401_vm5, %v6107_v48  ;;  %2915 = vmatpush1.bf16.msra.mxu1 %v6127_v58  ;;  %v6134_v48 = vld [vmem:[%s8016_s4 + $0x48] sm:$0xff]   ;;  %v6136_v58 = vld [vmem:[%s8016_s4 + $0x58] sm:$0xff]  }
 0x325   : > { %2916 = vmatprep.subr.bf16.mxu1 %v6309_v2 }
 0x328   : > { %2917 = vmatpush1.bf16.msra.mxu1 %v6128_v34 }
 0x329   : > { %2918 = vmatprep.subr.bf16.mxu1 %v6309_v2 }
 0x32b   : > { %2705 = vmatmul.mubr.bf16.gmra.mrb[40].mxu1 %v6109_v22 }
 0x32c   : > { %5155 = vmatprep.mubr.msk.bf16.mxu1 %vm2401_vm5, %v6110_v13  ;;  %2919 = vmatpush1.bf16.msra.mxu1 %v6129_v36 }
 0x32d   : > { %2920 = vmatprep.subr.bf16.mxu1 %v6309_v2 }
 0x330   : > { %2921 = vmatpush1.bf16.msra.mxu1 %v6130_v60 }
 0x331   : > { %2922 = vmatprep.subr.bf16.mxu1 %v6309_v2 }
 0x333   : > { %2715 = vmatmul.mubr.bf16.gmra.mrb[44].mxu1 %v6112_v15 }
 0x334   : > { %5156 = vmatprep.mubr.msk.bf16.mxu1 %vm2401_vm5, %v6113_v24  ;;  %2923 = vmatpush1.bf16.msra.mxu1 %v6131_v61  ;;  %v6137_v61 = vld [vmem:[%s8016_s4 + $0x60] sm:$0xff]  }
 0x335   : > { %2924 = vmatprep.subr.bf16.mxu1 %v6309_v2 }
 0x338   : > { %2925 = vmatpush1.bf16.msra.mxu1 %v6132_v39 }
 0x339   : > { %2926 = vmatprep.subr.bf16.mxu1 %v6309_v2 }
 0x33b   : > { %2725 = vmatmul.mubr.bf16.gmra.mrb[48].mxu1 %v6115_v25 }
 0x33c   : > { %5157 = vmatprep.mubr.msk.bf16.mxu1 %vm2401_vm5, %v6116_v26  ;;  %2927 = vmatpush1.bf16.msra.mxu1 %v6133_v40  ;;  %v6135_v26 = vld [vmem:[%s8016_s4 + $0x50] sm:$0xff]  }
 0x33d   : > { %3080 = vmatprep.subr.bf16.mxu1 %v6309_v2 }
 0x343   : > { %2735 = vmatmul.mubr.bf16.gmra.mrb[52].mxu1 %v6118_v30 }
 0x344   : > { %5158 = vmatprep.mubr.msk.bf16.mxu1 %vm2401_vm5, %v6119_v38 }
 0x34b   : > { %2745 = vmatmul.mubr.bf16.gmra.mrb[56].mxu1 %v6121_v49 }
 0x34c   : > { %5159 = vmatprep.mubr.msk.bf16.mxu1 %vm2401_vm5, %v6122_v59 }
 0x353   : > { %2755 = vmatmul.mubr.bf16.gmra.mrb[60].mxu1 %v6124_v35 }
 0x3ae   : > { %v2460_v42 = vpop.f32.mrb[0].mxu1 }
 0x3af   : > { %v2462_v45 = vpop.f32.mrb[1].mxu1 }
 0x3b0   : > { %v2464_v4 = vpop.f32.mrb[2].mxu1 }
 0x3b1   : > { %v2466_v5 = vpop.f32.mrb[3].mxu1 }
 0x3b6   : > { %v2470_v31 = vpop.f32.mrb[4].mxu1 }
 0x3b7   : > { %v2472_v32 = vpop.f32.mrb[5].mxu1 }
 0x3b8   : > { %v2474_v6 = vpop.f32.mrb[6].mxu1 }
 0x3b9   : > { %v2476_v10 = vpop.f32.mrb[7].mxu1 }
 0x3be   : > { %v7269_v46 = vpop.f32.mrb[8].mxu1 }
 0x3bf   : > { %v7271_v44 = vpop.f32.mrb[9].mxu1 }
 0x3c0   : > { %v7273_v53 = vpop.f32.mrb[10].mxu1 }
 0x3c1   : > { %v7275_v0 = vpop.f32.mrb[11].mxu1 }
 0x3c6   : > { %v7277_v11 = vpop.f32.mrb[12].mxu1 }
 0x3c7   : > { %v7279_v12 = vpop.f32.mrb[13].mxu1 }
 0x3c8   : > { %v7281_v52 = vpop.f32.mrb[14].mxu1 }
 0x3c9   : > { %v7283_v16 = vpop.f32.mrb[15].mxu1 }
 0x3ce   : > { %v7285_v17 = vpop.f32.mrb[16].mxu1 }
 0x3cf   : > { %v7287_v18 = vpop.f32.mrb[17].mxu1 }
 0x3d0   : > { %v7289_v54 = vpop.f32.mrb[18].mxu1 }
 0x3d1   : > { %v7291_v55 = vpop.f32.mrb[19].mxu1 }
 0x3d6   : > { %v7293_v19 = vpop.f32.mrb[20].mxu1 }
 0x3d7   : > { %v7295_v56 = vpop.f32.mrb[21].mxu1 }
 0x3d8   : > { %v7297_v8 = vpop.f32.mrb[22].mxu1 }
 0x3d9   : > { %v7299_v9 = vpop.f32.mrb[23].mxu1 }
 0x3de   : > { %v7301_v50 = vpop.f32.mrb[24].mxu1 }
 0x3df   : > { %v7303_v51 = vpop.f32.mrb[25].mxu1 }
 0x3e0   : > { %v7305_v14 = vpop.f32.mrb[26].mxu1 }
 0x3e1   : > { %v7307_v21 = vpop.f32.mrb[27].mxu1 }
 0x3e6   : > { %v7309_v23 = vpop.f32.mrb[28].mxu1 }
 0x3e7   : > { %v7311_v27 = vpop.f32.mrb[29].mxu1 }
 0x3e8   : > { %v7313_v28 = vpop.f32.mrb[30].mxu1 }
 0x3e9   : > { %v7315_v62 = vpop.f32.mrb[31].mxu1 }
 0x3ee   : > { %v2686_v63 = vpop.f32.mrb[32].mxu1 }
 0x3ef   : > { %v2765_v57 = vmax.f32 %v2460_v42, %v2686_v63  ;;  %v2688_v47 = vpop.f32.mrb[33].mxu1 }
 0x3f0   : > { %v2766_v20 = vmax.f32 %v2462_v45, %v2688_v47  ;;  %v2690_v7 = vpop.f32.mrb[34].mxu1 }
 0x3f1   : > { %v2767_v33 = vmax.f32 %v2464_v4, %v2690_v7  ;;  %v2692_v37 = vpop.f32.mrb[35].mxu1 }
 0x3f2   : > { %v2768_v41 = vmax.f32 %v2466_v5, %v2692_v37  ;;  %v6138_v5 = vld [vmem:[%s8016_s4 + $0x68] sm:$0xff]  }
 0x3f3   : > { %v7317_v3 = vpack.c.bf16 %v2767_v33, %v2765_v57  ;;  %v6141_v33 = vld [vmem:[%s8016_s4 + $0x80] sm:$0xff]  }
 0x3f4   : > { %v7319_v1 = vpack.c.bf16 %v2768_v41, %v2766_v20 }
 0x3f6   : > { %v2696_v22 = vpop.f32.mrb[36].mxu1  ;;  %5169 = vmatprep.mubr.msk.bf16.mxu1 %vm2885_vm6, %v7319_v1 }
 0x3f7   : > { %v2769_v13 = vmax.f32 %v2470_v31, %v2696_v22  ;;  %v2698_v15 = vpop.f32.mrb[37].mxu1  ;;  %2943 = vmatmul.mubr.bf16.vlgmr.msra.gmra.mrb[64].mxu1 %v7317_v3 }
 0x3f8   : > { %v2770_v24 = vmax.f32 %v2472_v32, %v2698_v15  ;;  %v2700_v25 = vpop.f32.mrb[38].mxu1  ;;  %3081 = vmatpush1.bf16.msra.mxu1 %v6134_v48 }
 0x3f9   : > { %v2771_v29 = vmax.f32 %v2474_v6, %v2700_v25  ;;  %v2702_v30 = vpop.f32.mrb[39].mxu1  ;;  %3082 = vmatprep.subr.bf16.mxu1 %v6309_v2 }
 0x3fa   : > { %v2772_v38 = vmax.f32 %v2476_v10, %v2702_v30 }
 0x3fb   : > { %v7331_v43 = vpack.c.bf16 %v2771_v29, %v2769_v13 }
 0x3fc   : > { %v7333_v49 = vpack.c.bf16 %v2772_v38, %v2770_v24  ;;  %3083 = vmatpush1.bf16.msra.mxu1 %v6135_v26 }
 0x3fd   : > { %3084 = vmatprep.subr.bf16.mxu1 %v6309_v2 }
 0x3fe   : > { %v2706_v59 = vpop.f32.mrb[40].mxu1  ;;  %5170 = vmatprep.mubr.msk.bf16.mxu1 %vm2885_vm6, %v7333_v49 }
 0x3ff   : > { %v2773_v34 = vmax.f32 %v7269_v46, %v2706_v59  ;;  %v2708_v35 = vpop.f32.mrb[41].mxu1  ;;  %2951 = vmatmul.mubr.bf16.gmra.mrb[68].mxu1 %v7331_v43 }
 0x400   : > { %v2774_v36 = vmax.f32 %v7271_v44, %v2708_v35  ;;  %v2710_v60 = vpop.f32.mrb[42].mxu1  ;;  %3085 = vmatpush1.bf16.msra.mxu1 %v6136_v58  ;;  %v6139_v44 = vld [vmem:[%s8016_s4 + $0x70] sm:$0xff]  }
 0x401   : > { %v2775_v39 = vmax.f32 %v7273_v53, %v2710_v60  ;;  %v2712_v40 = vpop.f32.mrb[43].mxu1  ;;  %3086 = vmatprep.subr.bf16.mxu1 %v6309_v2 }
 0x402   : > { %v2776_v42 = vmax.f32 %v7275_v0, %v2712_v40 }
 0x403   : > { %v7350_v45 = vpack.c.bf16 %v2775_v39, %v2773_v34 }
 0x404   : > { %v7352_v4 = vpack.c.bf16 %v2776_v42, %v2774_v36  ;;  %3087 = vmatpush1.bf16.msra.mxu1 %v6137_v61 }
 0x405   : > { %3088 = vmatprep.subr.bf16.mxu1 %v6309_v2 }
 0x406   : > { %v2716_v31 = vpop.f32.mrb[44].mxu1  ;;  %5171 = vmatprep.mubr.msk.bf16.mxu1 %vm2885_vm6, %v7352_v4 }
 0x407   : > { %v2777_v32 = vmax.f32 %v7277_v11, %v2716_v31  ;;  %v2718_v6 = vpop.f32.mrb[45].mxu1  ;;  %2959 = vmatmul.mubr.bf16.gmra.mrb[72].mxu1 %v7350_v45 }
 0x408   : > { %v2778_v10 = vmax.f32 %v7279_v12, %v2718_v6  ;;  %v2720_v46 = vpop.f32.mrb[46].mxu1  ;;  %3089 = vmatpush1.bf16.msra.mxu1 %v6138_v5  ;;  %v6140_v12 = vld [vmem:[%s8016_s4 + $0x78] sm:$0xff]  }
 0x409   : > { %v2779_v53 = vmax.f32 %v7281_v52, %v2720_v46  ;;  %v2722_v0 = vpop.f32.mrb[47].mxu1  ;;  %3090 = vmatprep.subr.bf16.mxu1 %v6309_v2 }
 0x40a   : > { %v2780_v63 = vmax.f32 %v7283_v16, %v2722_v0 }
 0x40b   : > { %v7369_v57 = vpack.c.bf16 %v2779_v53, %v2777_v32 }
 0x40c   : > { %v7371_v11 = vpack.c.bf16 %v2780_v63, %v2778_v10  ;;  %3091 = vmatpush1.bf16.msra.mxu1 %v6139_v44 }
 0x40d   : > { %3092 = vmatprep.subr.bf16.mxu1 %v6309_v2 }
 0x40e   : > { %v2726_v47 = vpop.f32.mrb[48].mxu1  ;;  %5172 = vmatprep.mubr.msk.bf16.mxu1 %vm2885_vm6, %v7371_v11 }
 0x40f   : > { %v2781_v52 = vmax.f32 %v7285_v17, %v2726_v47  ;;  %v2728_v20 = vpop.f32.mrb[49].mxu1  ;;  %2967 = vmatmul.mubr.bf16.gmra.mrb[76].mxu1 %v7369_v57 }
 0x410   : > { %v2782_v16 = vmax.f32 %v7287_v18, %v2728_v20  ;;  %v2730_v7 = vpop.f32.mrb[50].mxu1  ;;  %3093 = vmatpush1.bf16.msra.mxu1 %v6140_v12  ;;  %v6142_v18 = vld [vmem:[%s8016_s4 + $0x88] sm:$0xff]  }
 0x411   : > { %v2783_v37 = vmax.f32 %v7289_v54, %v2730_v7  ;;  %v2732_v41 = vpop.f32.mrb[51].mxu1  ;;  %3094 = vmatprep.subr.bf16.mxu1 %v6309_v2 }
 0x412   : > { %v2784_v48 = vmax.f32 %v7291_v55, %v2732_v41 }
 0x413   : > { %v2805_v22 = vpack.c.bf16 %v2783_v37, %v2781_v52 }
 0x414   : > { %v2806_v17 = vpack.c.bf16 %v2784_v48, %v2782_v16  ;;  %3095 = vmatpush1.bf16.msra.mxu1 %v6141_v33 }
 0x415   : > { %3096 = vmatprep.subr.bf16.mxu1 %v6309_v2 }
 0x416   : > { %v2736_v13 = vpop.f32.mrb[52].mxu1  ;;  %5173 = vmatprep.mubr.msk.bf16.mxu1 %vm2885_vm6, %v2806_v17 }
 0x417   : > { %v2785_v15 = vmax.f32 %v7293_v19, %v2736_v13  ;;  %v2738_v54 = vpop.f32.mrb[53].mxu1  ;;  %2975 = vmatmul.mubr.bf16.gmra.mrb[80].mxu1 %v2805_v22 }
 0x418   : > { %v2786_v24 = vmax.f32 %v7295_v56, %v2738_v54  ;;  %v2740_v25 = vpop.f32.mrb[54].mxu1  ;;  %3097 = vmatpush1.bf16.msra.mxu1 %v6142_v18 }
 0x419   : > { %v2787_v55 = vmax.f32 %v7297_v8, %v2740_v25  ;;  %v2742_v26 = vpop.f32.mrb[55].mxu1 }
 0x41a   : > { %v2788_v29 = vmax.f32 %v7299_v9, %v2742_v26 }
 0x41b   : > { %v2807_v30 = vpack.c.bf16 %v2787_v55, %v2785_v15 }
 0x41c   : > { %v2808_v38 = vpack.c.bf16 %v2788_v29, %v2786_v24 }
 0x41e   : > { %v2746_v58 = vpop.f32.mrb[56].mxu1  ;;  %5174 = vmatprep.mubr.msk.bf16.mxu1 %vm2885_vm6, %v2808_v38 }
 0x41f   : > { %v2789_v2 = vmax.f32 %v7301_v50, %v2746_v58  ;;  %v2748_v59 = vpop.f32.mrb[57].mxu1  ;;  %2983 = vmatmul.mubr.bf16.gmra.mrb[84].mxu1 %v2807_v30 }
 0x420   : > { %v2790_v19 = vmax.f32 %v7303_v51, %v2748_v59  ;;  %v2750_v34 = vpop.f32.mrb[58].mxu1 }
 0x421   : > { %v2791_v56 = vmax.f32 %v7305_v14, %v2750_v34  ;;  %v2752_v35 = vpop.f32.mrb[59].mxu1 }
 0x422   : > { %v2792_v8 = vmax.f32 %v7307_v21, %v2752_v35  ;;  %v6143_v21 = vld [vmem:[%s8017_s5 + $0x24] sm:$0xff]  }
 0x423   : > { %v2809_v36 = vpack.c.bf16 %v2791_v56, %v2789_v2  ;;  %5521 = vmatprep.subr.bf16.mxu1 %v6143_v21 }
 0x424   : > { %v2810_v60 = vpack.c.bf16 %v2792_v8, %v2790_v19 }
 0x426   : > { %v2756_v9 = vpop.f32.mrb[60].mxu1  ;;  %5175 = vmatprep.mubr.msk.bf16.mxu1 %vm2885_vm6, %v2810_v60 }
 0x427   : > { %v2793_v61 = vmax.f32 %v7309_v23, %v2756_v9  ;;  %v2758_v39 = vpop.f32.mrb[61].mxu1  ;;  %2991 = vmatmul.mubr.bf16.gmra.mrb[88].mxu1 %v2809_v36  ;;  %v6144_v23 = vld [vmem:[%s8017_s5 + $0x2c] sm:$0xff]  }
 0x428   : > { %v2794_v50 = vmax.f32 %v7311_v27, %v2758_v39  ;;  %v2760_v40 = vpop.f32.mrb[62].mxu1  ;;  %v6145_v27 = vld [vmem:[%s8017_s5 + $0x34] sm:$0xff]  }
 0x429   : > { %v2795_v51 = vmax.f32 %v7313_v28, %v2760_v40  ;;  %v2762_v42 = vpop.f32.mrb[63].mxu1  ;;  %v6146_v28 = vld [vmem:[%s8017_s5 + $0x3c] sm:$0xff]  }
 0x42a   : > { %v2796_v14 = vmax.f32 %v7315_v62, %v2762_v42  ;;  %v6147_v62 = vld [vmem:[%s8017_s5 + $0x44] ss:$0 sps:$4 sm:$0xff]  }
 0x42b   : > { %v2811_v5 = vpack.c.bf16 %v2795_v51, %v2793_v61 }
 0x42c   : > { %v2812_v31 = vpack.c.bf16 %v2796_v14, %v2794_v50 }
 0x42e   : > { %5176 = vmatprep.mubr.msk.bf16.mxu1 %vm2885_vm6, %v2812_v31 }
 0x42f   : > { %2999 = vmatmul.mubr.bf16.gmra.mrb[92].mxu1 %v2811_v5 }
 0x430   : > { %5204 = vmatprep.mubr.msk.bf16.mxu1 %vm2885_vm6, %v7319_v1  ;;  %v7444_v1 = vld [vmem:[%s8017_s5] sm:$0xff]  }
 0x437   : > { %3113 = vmatmul.mubr.bf16.vlgmr.msra.gmra.mrb[96].mxu1 %v7317_v3  ;;  %v3309_v3 = vsel %vm1822_vm4, %v6147_v62, 0 }
 0x438   : > { %5205 = vmatprep.mubr.msk.bf16.mxu1 %vm2885_vm6, %v7333_v49  ;;  %5522 = vmatpush3.bf16.msra.mxu1 %v6143_v21 }
 0x439   : > { %5523 = vmatprep.subr.bf16.mxu1 %v6144_v23 }
 0x43c   : > { %5524 = vmatpush3.bf16.msra.mxu1 %v6144_v23 }
 0x43d   : > { %5525 = vmatprep.subr.bf16.mxu1 %v6145_v27 }
 0x43f   : > { %3121 = vmatmul.mubr.bf16.gmra.mrb[100].mxu1 %v7331_v43 }
 0x440   : > { %5206 = vmatprep.mubr.msk.bf16.mxu1 %vm2885_vm6, %v7352_v4  ;;  %5526 = vmatpush3.bf16.msra.mxu1 %v6145_v27 }
 0x441   : > { %5527 = vmatprep.subr.bf16.mxu1 %v6146_v28 }
 0x444   : > { %5528 = vmatpush3.bf16.msra.mxu1 %v6146_v28 }
 0x445   : > { %6000 = vmatprep.subr.msk.bf16.mxu1 %vm1822_vm4, %v6147_v62 }
 0x447   : > { %3129 = vmatmul.mubr.bf16.gmra.mrb[104].mxu1 %v7350_v45 }
 0x448   : > { %5207 = vmatprep.mubr.msk.bf16.mxu1 %vm2885_vm6, %v7371_v11  ;;  %5530 = vmatpush3.bf16.msra.mxu1 %v3309_v3 }
 0x449   : > { %5539 = vmatprep.subr.bf16.mxu1 %v7444_v1 }
 0x44f   : > { %3137 = vmatmul.mubr.bf16.gmra.mrb[108].mxu1 %v7369_v57 }
 0x450   : > { %5208 = vmatprep.mubr.msk.bf16.mxu1 %vm2885_vm6, %v2806_v17 }
 0x457   : > { %3145 = vmatmul.mubr.bf16.gmra.mrb[112].mxu1 %v2805_v22 }
 0x458   : > { %5209 = vmatprep.mubr.msk.bf16.mxu1 %vm2885_vm6, %v2808_v38 }
 0x45f   : > { %3153 = vmatmul.mubr.bf16.gmra.mrb[116].mxu1 %v2807_v30 }
 0x460   : > { %5210 = vmatprep.mubr.msk.bf16.mxu1 %vm2885_vm6, %v2810_v60 }
 0x467   : > { %3161 = vmatmul.mubr.bf16.gmra.mrb[120].mxu1 %v2809_v36 }
 0x468   : > { %5211 = vmatprep.mubr.msk.bf16.mxu1 %vm2885_vm6, %v2812_v31 }
 0x46f   : > { %3169 = vmatmul.mubr.bf16.gmra.mrb[124].mxu1 %v2811_v5 }
 0x4ca   : > { %v2944_v43 = vpop.f32.mrb[64].mxu1 }
 0x4cb   : > { %v2946_v49 = vpop.f32.mrb[65].mxu1 }
 0x4cc   : > { %v2947_v45 = vpop.f32.mrb[66].mxu1 }
 0x4cd   : > { %v2949_v4 = vpop.f32.mrb[67].mxu1 }
 0x4d2   : > { %v2952_v32 = vpop.f32.mrb[68].mxu1 }
 0x4d3   : > { %v2954_v6 = vpop.f32.mrb[69].mxu1 }
 0x4d4   : > { %v2955_v10 = vpop.f32.mrb[70].mxu1 }
 0x4d5   : > { %v2957_v46 = vpop.f32.mrb[71].mxu1 }
 0x4da   : > { %v7447_v44 = vpop.f32.mrb[72].mxu1 }
 0x4db   : > { %v2962_v53 = vpop.f32.mrb[73].mxu1 }
 0x4dc   : > { %v7449_v0 = vpop.f32.mrb[74].mxu1 }
 0x4dd   : > { %v2965_v63 = vpop.f32.mrb[75].mxu1 }
 0x4e2   : > { %v7451_v57 = vpop.f32.mrb[76].mxu1 }
 0x4e3   : > { %v2970_v11 = vpop.f32.mrb[77].mxu1 }
 0x4e4   : > { %v7453_v12 = vpop.f32.mrb[78].mxu1 }
 0x4e5   : > { %v2973_v47 = vpop.f32.mrb[79].mxu1 }
 0x4ea   : > { %v7455_v52 = vpop.f32.mrb[80].mxu1 }
 0x4eb   : > { %v2978_v20 = vpop.f32.mrb[81].mxu1 }
 0x4ec   : > { %v7457_v16 = vpop.f32.mrb[82].mxu1 }
 0x4ed   : > { %v2981_v7 = vpop.f32.mrb[83].mxu1 }
 0x4f2   : > { %v7459_v33 = vpop.f32.mrb[84].mxu1 }
 0x4f3   : > { %v2986_v37 = vpop.f32.mrb[85].mxu1 }
 0x4f4   : > { %v7461_v41 = vpop.f32.mrb[86].mxu1 }
 0x4f5   : > { %v2989_v48 = vpop.f32.mrb[87].mxu1 }
 0x4fa   : > { %v7463_v22 = vpop.f32.mrb[88].mxu1 }
 0x4fb   : > { %v2994_v17 = vpop.f32.mrb[89].mxu1 }
 0x4fc   : > { %v7465_v18 = vpop.f32.mrb[90].mxu1 }
 0x4fd   : > { %v2997_v13 = vpop.f32.mrb[91].mxu1 }
 0x502   : > { %v7467_v15 = vpop.f32.mrb[92].mxu1 }
 0x503   : > { %v3002_v54 = vpop.f32.mrb[93].mxu1 }
 0x504   : > { %v7469_v24 = vpop.f32.mrb[94].mxu1 }
 0x505   : > { %v3005_v25 = vpop.f32.mrb[95].mxu1 }
 0x50a   : > { %v3114_v55 = vpop.f32.mrb[96].mxu1 }
 0x50b   : > { %v7471_v26 = vmax.f32 %v2944_v43, %v3114_v55  ;;  %v3116_v29 = vpop.f32.mrb[97].mxu1 }
 0x50c   : > { %v3117_v30 = vpop.f32.mrb[98].mxu1 }
 0x50d   : > { %v3178_v38 = vmax.f32 %v2947_v45, %v3117_v30  ;;  %v3119_v58 = vpop.f32.mrb[99].mxu1  ;;  %v3222_v2 = vrot.slane %v7471_v26, 1  ;;  %v3483_v59 = vrot.slane %v7471_v26, 2  ;;  %v3644_v19 = vrot.slane %v7471_v26, 3 }
 0x50e   : > { %v3805_v34 = vrot.slane %v7471_v26, 4 }
 0x50f   : > { %v3223_v56 = vrot.slane %v3178_v38, 1  ;;  %v3484_v35 = vrot.slane %v3178_v38, 2  ;;  %v3645_v8 = vrot.slane %v3178_v38, 3  ;;  %v3806_v36 = vrot.slane %v3178_v38, 4 }
 0x511   : > { %v3224_v60 = vsel %vm579_vm1, %v3222_v2, %v3223_v56  ;;  %v7479_v9 = vsel %vm732_vm0, %v3483_v59, %v3484_v35  ;;  %v7482_v61 = vsel %vm1463_vm3, %v3644_v19, %v3645_v8  ;;  %v7485_v39 = vsel %vm1822_vm4, %v3805_v34, %v3806_v36 }
 0x512   : > { %v3122_v50 = vpop.f32.mrb[100].mxu1 }
 0x513   : > { %v7487_v40 = vmax.f32 %v2952_v32, %v3122_v50  ;;  %v3124_v51 = vpop.f32.mrb[101].mxu1 }
 0x514   : > { %v3125_v42 = vpop.f32.mrb[102].mxu1 }
 0x515   : > { %v3180_v14 = vmax.f32 %v2955_v10, %v3125_v42  ;;  %v3127_v5 = vpop.f32.mrb[103].mxu1  ;;  %v3193_v31 = vpack.c.bf16 %v7487_v40, %v7471_v26  ;;  %v3225_v21 = vrot.slane %v7487_v40, 1  ;;  %v3486_v23 = vrot.slane %v7487_v40, 2  ;;  %v6155_v26 = vld [vmem:[%s8017_s5 + $0x58] sm:$0xff]  }
 0x516   : > { %v3647_v27 = vrot.slane %v7487_v40, 3  ;;  %v3808_v28 = vrot.slane %v7487_v40, 4  ;;  %v6156_v40 = vld [vmem:[%s8017_s5 + $0x60] sm:$0xff]  }
 0x517   : > { %v3226_v62 = vrot.slane %v3180_v14, 1  ;;  %v3487_v3 = vrot.slane %v3180_v14, 2  ;;  %v3648_v43 = vrot.slane %v3180_v14, 3  ;;  %v3809_v49 = vrot.slane %v3180_v14, 4 }
 0x519   : > { %v3227_v45 = vsel %vm579_vm1, %v3225_v21, %v3226_v62  ;;  %v7497_v4 = vsel %vm732_vm0, %v3486_v23, %v3487_v3  ;;  %v7500_v32 = vsel %vm1463_vm3, %v3647_v27, %v3648_v43  ;;  %v7503_v6 = vsel %vm1822_vm4, %v3808_v28, %v3809_v49 }
 0x51a   : > { %v3130_v10 = vpop.f32.mrb[104].mxu1  ;;  %v3254_v46 = vpack.c.bf16 %v3227_v45, %v3224_v60  ;;  %v3515_v53 = vpack.c.bf16 %v7497_v4, %v7479_v9  ;;  %v3676_v63 = vpack.c.bf16 %v7500_v32, %v7482_v61  ;;  %v3837_v11 = vpack.c.bf16 %v7503_v6, %v7485_v39  ;;  %v6159_v9 = vld [vmem:[%s8017_s5 + $0x74] sm:$0xff]   ;;  %v6160_v4 = vld [vmem:[%s8017_s5 + $0x7c] sm:$0xff]  }
 0x51b   : > { %v7512_v47 = vmax.f32 %v7447_v44, %v3130_v10  ;;  %v3132_v20 = vpop.f32.mrb[105].mxu1  ;;  %v6164_v61 = vld [vmem:[%s8017_s5 + $0x98] sm:$0xff]   ;;  %v6165_v32 = vld [vmem:[%s8017_s5 + $0xa0] sm:$0xff]  }
 0x51c   : > { %v3133_v7 = vpop.f32.mrb[106].mxu1  ;;  %5531 = vmatprep.mubr.msk.bf16.mxu1 %vm3295_vm7, %v3254_v46  ;;  %v6149_v46 = vld [vmem:[%s8017_s5 + $0x8] sm:$0xff]   ;;  %v6168_v39 = vld [vmem:[%s8019_s7] sm:$0xff]  }
 0x51d   : > { %v3135_v37 = vpop.f32.mrb[107].mxu1  ;;  %v3182_v48 = vmax.f32 %v7449_v0, %v3133_v7  ;;  %v3228_v17 = vrot.slane %v7512_v47, 1  ;;  %v3489_v13 = vrot.slane %v7512_v47, 2  ;;  %v3650_v54 = vrot.slane %v7512_v47, 3  ;;  %v5293_v6 = vld [vmem:[%s8018_s6] ss:$0 sm:$0xff] }
 0x51e   : > { %v3811_v25 = vrot.slane %v7512_v47, 4 }
 0x51f   : > { %v3229_v55 = vrot.slane %v3182_v48, 1  ;;  %v3490_v29 = vrot.slane %v3182_v48, 2  ;;  %v3651_v30 = vrot.slane %v3182_v48, 3  ;;  %v3812_v44 = vrot.slane %v3182_v48, 4 }
 0x521   : > { %v3230_v38 = vsel %vm579_vm1, %v3228_v17, %v3229_v55  ;;  %v7522_v58 = vsel %vm732_vm0, %v3489_v13, %v3490_v29  ;;  %v7525_v2 = vsel %vm1463_vm3, %v3650_v54, %v3651_v30  ;;  %v7528_v0 = vsel %vm1822_vm4, %v3811_v25, %v3812_v44 }
 0x522   : > { %v3138_v59 = vpop.f32.mrb[108].mxu1 }
 0x523   : > { %v7531_v19 = vmax.f32 %v7451_v57, %v3138_v59  ;;  %v3140_v34 = vpop.f32.mrb[109].mxu1 }
 0x524   : > { %v3141_v56 = vpop.f32.mrb[110].mxu1 }
 0x525   : > { %v3194_v35 = vpack.c.bf16 %v7531_v19, %v7512_v47  ;;  %v3143_v8 = vpop.f32.mrb[111].mxu1  ;;  %v3184_v36 = vmax.f32 %v7453_v12, %v3141_v56  ;;  %v3231_v60 = vrot.slane %v7531_v19, 1  ;;  %v3492_v50 = vrot.slane %v7531_v19, 2 }
 0x526   : > { %v3653_v51 = vrot.slane %v7531_v19, 3  ;;  %v3814_v42 = vrot.slane %v7531_v19, 4  ;;  %v6158_v19 = vld [vmem:[%s8017_s5 + $0x6c] sm:$0xff]  }
 0x527   : > { %v3232_v14 = vrot.slane %v3184_v36, 1  ;;  %v3493_v5 = vrot.slane %v3184_v36, 2  ;;  %v3654_v57 = vrot.slane %v3184_v36, 3  ;;  %v3815_v21 = vrot.slane %v3184_v36, 4  ;;  %v6151_v36 = vld [vmem:[%s8017_s5 + $0x18] sm:$0xff]  }
 0x529   : > { %v3233_v23 = vsel %vm579_vm1, %v3231_v60, %v3232_v14  ;;  %v7542_v27 = vsel %vm732_vm0, %v3492_v50, %v3493_v5  ;;  %v7545_v28 = vsel %vm1463_vm3, %v3653_v51, %v3654_v57  ;;  %v7548_v12 = vsel %vm1822_vm4, %v3814_v42, %v3815_v21 }
 0x52a   : > { %v3146_v62 = vpop.f32.mrb[112].mxu1  ;;  %v3255_v3 = vpack.c.bf16 %v3233_v23, %v3230_v38  ;;  %v3516_v43 = vpack.c.bf16 %v7542_v27, %v7522_v58  ;;  %v3677_v49 = vpack.c.bf16 %v7545_v28, %v7525_v2  ;;  %v3838_v45 = vpack.c.bf16 %v7548_v12, %v7528_v0  ;;  %v6162_v58 = vld [vmem:[%s8017_s5 + $0x8c] ss:$0 sps:$4 sm:$0xff]   ;;  %v6163_v27 = vld [vmem:[%s8017_s5 + $0x90] sm:$0xff]  }
 0x52b   : > { %v3148_v10 = vpop.f32.mrb[113].mxu1  ;;  %v7560_v20 = vmax.f32 %v7455_v52, %v3146_v62  ;;  %v6167_v2 = vld [vmem:[%s8017_s5 + $0xb0] ss:$0 sps:$4 sm:$0xff]  }
 0x52c   : > { %v3149_v7 = vpop.f32.mrb[114].mxu1  ;;  %5532 = vmatmul.mubr.msk.bf16.vlgmr.msra.gmra.mrb[128].mxu1 %vm3295_vm7, %v3255_v3  ;;  %v3891_v28 = vsel %vm1822_vm4, %v6167_v2, 0 }
 0x52d   : > { %v3186_v37 = vmax.f32 %v7457_v16, %v3149_v7  ;;  %v3151_v48 = vpop.f32.mrb[115].mxu1  ;;  %v3234_v17 = vrot.slane %v7560_v20, 1  ;;  %5540 = vmatpush3.bf16.msra.mxu1 %v7444_v1  ;;  %v3495_v13 = vrot.slane %v7560_v20, 2  ;;  %v3656_v54 = vrot.slane %v7560_v20, 3  ;;  %v6150_v16 = vld [vmem:[%s8017_s5 + $0x10] sm:$0xff]  }
 0x52e   : > { %v3817_v25 = vrot.slane %v7560_v20, 4  ;;  %5541 = vmatprep.subr.bf16.mxu1 %v6149_v46 }
 0x52f   : > { %v3235_v55 = vrot.slane %v3186_v37, 1  ;;  %v3496_v29 = vrot.slane %v3186_v37, 2  ;;  %v3657_v52 = vrot.slane %v3186_v37, 3  ;;  %v3818_v30 = vrot.slane %v3186_v37, 4 }
 0x531   : > { %v3236_v44 = vsel %vm579_vm1, %v3234_v17, %v3235_v55  ;;  %v7574_v38 = vsel %vm732_vm0, %v3495_v13, %v3496_v29  ;;  %v7577_v1 = vsel %vm1463_vm3, %v3656_v54, %v3657_v52  ;;  %v7580_v59 = vsel %vm1822_vm4, %v3817_v25, %v3818_v30  ;;  %5542 = vmatpush3.bf16.msra.mxu1 %v6149_v46  ;;  %v6153_v30 = vld [vmem:[%s8017_s5 + $0x48] sm:$0xff]  }
 0x532   : > { %v3154_v34 = vpop.f32.mrb[116].mxu1  ;;  %5543 = vmatprep.subr.bf16.mxu1 %v6150_v16 }
 0x533   : > { %v7583_v56 = vmax.f32 %v7459_v33, %v3154_v34  ;;  %v3156_v8 = vpop.f32.mrb[117].mxu1 }
 0x534   : > { %v3157_v60 = vpop.f32.mrb[118].mxu1 }
 0x535   : > { %v3188_v50 = vmax.f32 %v7461_v41, %v3157_v60  ;;  %v3159_v51 = vpop.f32.mrb[119].mxu1  ;;  %v3195_v42 = vpack.c.bf16 %v7583_v56, %v7560_v20  ;;  %v3237_v14 = vrot.slane %v7583_v56, 1  ;;  %5544 = vmatpush3.bf16.msra.mxu1 %v6150_v16  ;;  %v3498_v5 = vrot.slane %v7583_v56, 2  ;;  %v6152_v41 = vld [vmem:[%s8017_s5 + $0x20] ss:$0 sps:$4 sm:$0xff]  }
 0x536   : > { %v3659_v33 = vrot.slane %v7583_v56, 3  ;;  %v3820_v57 = vrot.slane %v7583_v56, 4  ;;  %5545 = vmatprep.subr.bf16.mxu1 %v6151_v36  ;;  %v3416_v52 = vsel %vm1822_vm4, %v6152_v41, 0 }
 0x537   : > { %v3238_v21 = vrot.slane %v3188_v50, 1  ;;  %v3499_v23 = vrot.slane %v3188_v50, 2  ;;  %v3660_v62 = vrot.slane %v3188_v50, 3  ;;  %v3821_v3 = vrot.slane %v3188_v50, 4 }
 0x539   : > { %v3239_v10 = vsel %vm579_vm1, %v3237_v14, %v3238_v21  ;;  %v7600_v46 = vsel %vm732_vm0, %v3498_v5, %v3499_v23  ;;  %v7603_v7 = vsel %vm1463_vm3, %v3659_v33, %v3660_v62  ;;  %v7606_v37 = vsel %vm1822_vm4, %v3820_v57, %v3821_v3  ;;  %5546 = vmatpush3.bf16.msra.mxu1 %v6151_v36 }
 0x53a   : > { %v3162_v48 = vpop.f32.mrb[120].mxu1  ;;  %v3256_v17 = vpack.c.bf16 %v3239_v10, %v3236_v44  ;;  %v3517_v13 = vpack.c.bf16 %v7600_v46, %v7574_v38  ;;  %v3678_v54 = vpack.c.bf16 %v7603_v7, %v7577_v1  ;;  %v3839_v25 = vpack.c.bf16 %v7606_v37, %v7580_v59  ;;  %6001 = vmatprep.subr.msk.bf16.mxu1 %vm1822_vm4, %v6152_v41 }
 0x53b   : > { %v3189_v55 = vmax.f32 %v7463_v22, %v3162_v48  ;;  %v3164_v29 = vpop.f32.mrb[121].mxu1 }
 0x53c   : > { %v3165_v16 = vpop.f32.mrb[122].mxu1  ;;  %5535 = vmatprep.mubr.msk.bf16.mxu1 %vm3295_vm7, %v3256_v17 }
 0x53d   : > { %v3190_v44 = vmax.f32 %v7465_v18, %v3165_v16  ;;  %v3167_v34 = vpop.f32.mrb[123].mxu1  ;;  %v3240_v8 = vrot.slane %v3189_v55, 1  ;;  %5548 = vmatpush3.bf16.msra.mxu1 %v3416_v52  ;;  %v3501_v36 = vrot.slane %v3189_v55, 2  ;;  %v3662_v60 = vrot.slane %v3189_v55, 3 }
 0x53e   : > { %v3823_v22 = vrot.slane %v3189_v55, 4  ;;  %5557 = vmatprep.subr.bf16.mxu1 %v6153_v30 }
 0x53f   : > { %v3241_v50 = vrot.slane %v3190_v44, 1  ;;  %v3502_v51 = vrot.slane %v3190_v44, 2  ;;  %v3663_v14 = vrot.slane %v3190_v44, 3  ;;  %v3824_v5 = vrot.slane %v3190_v44, 4 }
 0x541   : > { %v3242_v33 = vsel %vm579_vm1, %v3240_v8, %v3241_v50  ;;  %v3503_v57 = vsel %vm732_vm0, %v3501_v36, %v3502_v51  ;;  %v7625_v21 = vsel %vm1463_vm3, %v3662_v60, %v3663_v14  ;;  %v7628_v18 = vsel %vm1822_vm4, %v3823_v22, %v3824_v5 }
 0x542   : > { %v3170_v23 = vpop.f32.mrb[124].mxu1 }
 0x543   : > { %v3191_v62 = vmax.f32 %v7467_v15, %v3170_v23  ;;  %v3172_v3 = vpop.f32.mrb[125].mxu1  ;;  %v6154_v23 = vld [vmem:[%s8017_s5 + $0x50] sm:$0xff]  }
 0x544   : > { %v3173_v41 = vpop.f32.mrb[126].mxu1 }
 0x545   : > { %v3192_v10 = vmax.f32 %v7469_v24, %v3173_v41  ;;  %v3175_v48 = vpop.f32.mrb[127].mxu1  ;;  %v3196_v17 = vpack.c.bf16 %v3191_v62, %v3189_v55  ;;  %v3243_v29 = vrot.slane %v3191_v62, 1  ;;  %v3504_v52 = vrot.slane %v3191_v62, 2 }
 0x546   : > { %v3665_v16 = vrot.slane %v3191_v62, 3  ;;  %v3826_v44 = vrot.slane %v3191_v62, 4 }
 0x547   : > { %v3244_v34 = vrot.slane %v3192_v10, 1  ;;  %v3505_v8 = vrot.slane %v3192_v10, 2  ;;  %v3666_v36 = vrot.slane %v3192_v10, 3  ;;  %v3827_v60 = vrot.slane %v3192_v10, 4 }
 0x549   : > { %v3245_v22 = vsel %vm579_vm1, %v3243_v29, %v3244_v34  ;;  %v3506_v50 = vsel %vm732_vm0, %v3504_v52, %v3505_v8  ;;  %v3667_v15 = vsel %vm1463_vm3, %v3665_v16, %v3666_v36  ;;  %v7636_v51 = vsel %vm1822_vm4, %v3826_v44, %v3827_v60  ;;  %v6170_v29 = vld [vmem:[%s8019_s7 + $0x10] sm:$0xff]   ;;  %v6172_v52 = vld [vmem:[%s8020_s8] sm:$0xff]   ;;  %v6171_v16 = vld [vmem:[%s8019_s7 + $0x18] sm:$0xff]  }
 0x54a   : > { %v3257_v24 = vpack.c.bf16 %v3245_v22, %v3242_v33  ;;  %v3518_v14 = vpack.c.bf16 %v3506_v50, %v3503_v57  ;;  %v3679_v55 = vpack.c.bf16 %v3667_v15, %v7625_v21  ;;  %v3840_v5 = vpack.c.bf16 %v7636_v51, %v7628_v18  ;;  %v6173_v44 = vld [vmem:[%s8020_s8 + $0x8] sm:$0xff]   ;;  %v6174_v34 = vld [vmem:[%s8020_s8 + $0x10] sm:$0xff]   ;;  %v6175_v8 = vld [vmem:[%s8020_s8 + $0x18] sm:$0xff]  }
 0x54b   : > { %v6176_v36 = vld [vmem:[%s8020_s8 + $0x20] sm:$0xff]   ;;  %v6177_v60 = vld [vmem:[%s8020_s8 + $0x28] sm:$0xff]   ;;  %v6178_v22 = vld [vmem:[%s8020_s8 + $0x30] sm:$0xff]  }
 0x54c   : > { %5536 = vmatmul.mubr.msk.bf16.gmra.mrb[132].mxu1 %vm3295_vm7, %v3257_v24  ;;  %v6179_v50 = vld [vmem:[%s8020_s8 + $0x38] sm:$0xff]   ;;  %v6180_v15 = vld [vmem:[%s8020_s8 + $0x40] sm:$0xff]   ;;  %v6310_v24 = vmov 0.0  }
 0x54d   : > { %5549 = vmatprep.mubr.msk.bf16.mxu1 %vm3295_vm7, %v3193_v31  ;;  %v6157_v31 = vld [vmem:[%s8017_s5 + $0x68] ss:$0 sps:$4 sm:$0xff]   ;;  %v6188_v51 = vld [vmem:[%s8021_s9] sm:$0xff]   ;;  %5675 = vmatprep.subr.bf16.mxu0 %v6310_v24 }
 0x54e   : > { %v3569_v47 = vsel %vm1822_vm4, %v6157_v31, 0  ;;  %5676 = vmatpush3.bf16.msra.mxu0 %v6188_v51  ;;  %5683 = vmatprep.mubr.msk.bf16.mxu0 %vm6311_vm8, %v6310_v24 }
 0x54f   : > { %5677 = vmatprep.subr.bf16.mxu0 %v6310_v24 }
 0x554   : > { %5550 = vmatmul.mubr.msk.bf16.vlgmr.msra.gmra.mrb[128].mxu1 %vm3295_vm7, %v3194_v35  ;;  %v3730_v35 = vsel %vm1822_vm4, %v6162_v58, 0 }
 0x555   : > { %5558 = vmatpush3.bf16.msra.mxu1 %v6153_v30  ;;  %5553 = vmatprep.mubr.msk.bf16.mxu1 %vm3295_vm7, %v3195_v42 }
 0x556   : > { %5559 = vmatprep.subr.bf16.mxu1 %v6154_v23 }
 0x559   : > { %5560 = vmatpush3.bf16.msra.mxu1 %v6154_v23 }
 0x55a   : > { %5561 = vmatprep.subr.bf16.mxu1 %v6155_v26 }
 0x55c   : > { %5554 = vmatmul.mubr.msk.bf16.gmra.mrb[132].mxu1 %vm3295_vm7, %v3196_v17  ;;  %v6169_v17 = vld [vmem:[%s8019_s7 + $0x8] sm:$0xff]  }
 0x55d   : > { %5562 = vmatpush3.bf16.msra.mxu1 %v6155_v26  ;;  %5567 = vmatprep.mubr.msk.bf16.mxu1 %vm3295_vm7, %v3515_v53  ;;  %v6161_v53 = vld [vmem:[%s8017_s5 + $0x84] sm:$0xff]  }
 0x55e   : > { %5563 = vmatprep.subr.bf16.mxu1 %v6156_v40 }
 0x561   : > { %5564 = vmatpush3.bf16.msra.mxu1 %v6156_v40 }
 0x562   : > { %6002 = vmatprep.subr.msk.bf16.mxu1 %vm1822_vm4, %v6157_v31 }
 0x565   : > { %5566 = vmatpush3.bf16.msra.mxu1 %v3569_v47 }
 0x566   : > { %5575 = vmatprep.subr.bf16.mxu1 %v6158_v19 }
 0x568   : > { %5568 = vmatmul.mubr.msk.bf16.vlgmr.msra.gmra.mrb[128].mxu1 %vm3295_vm7, %v3516_v43 }
 0x569   : > { %5571 = vmatprep.mubr.msk.bf16.mxu1 %vm3295_vm7, %v3517_v13  ;;  %5576 = vmatpush3.bf16.msra.mxu1 %v6158_v19 }
 0x56a   : > { %5577 = vmatprep.subr.bf16.mxu1 %v6159_v9 }
 0x56d   : > { %5578 = vmatpush3.bf16.msra.mxu1 %v6159_v9 }
 0x56e   : > { %5579 = vmatprep.subr.bf16.mxu1 %v6160_v4 }
 0x570   : > { %5572 = vmatmul.mubr.msk.bf16.gmra.mrb[132].mxu1 %vm3295_vm7, %v3518_v14  ;;  %v6189_v14 = vld [vmem:[%s8021_s9 + $0x8] sm:$0xff]  }
 0x571   : > { %5580 = vmatpush3.bf16.msra.mxu1 %v6160_v4  ;;  %5585 = vmatprep.mubr.msk.bf16.mxu1 %vm3295_vm7, %v3676_v63  ;;  %v6166_v63 = vld [vmem:[%s8017_s5 + $0xa8] sm:$0xff]  }
 0x572   : > { %5581 = vmatprep.subr.bf16.mxu1 %v6161_v53  ;;  %5678 = vmatpush3.bf16.msra.mxu0 %v6189_v14 }
 0x573   : > { %5679 = vmatprep.subr.bf16.mxu0 %v6310_v24 }
 0x575   : > { %5582 = vmatpush3.bf16.msra.mxu1 %v6161_v53 }
 0x576   : > { %6003 = vmatprep.subr.msk.bf16.mxu1 %vm1822_vm4, %v6162_v58 }
 0x579   : > { %5584 = vmatpush3.bf16.msra.mxu1 %v3730_v35 }
 0x57a   : > { %5593 = vmatprep.subr.bf16.mxu1 %v6163_v27 }
 0x57c   : > { %5586 = vmatmul.mubr.msk.bf16.vlgmr.msra.gmra.mrb[128].mxu1 %vm3295_vm7, %v3677_v49 }
 0x57d   : > { %5589 = vmatprep.mubr.msk.bf16.mxu1 %vm3295_vm7, %v3678_v54  ;;  %5594 = vmatpush3.bf16.msra.mxu1 %v6163_v27 }
 0x57e   : > { %5595 = vmatprep.subr.bf16.mxu1 %v6164_v61 }
 0x581   : > { %5596 = vmatpush3.bf16.msra.mxu1 %v6164_v61 }
 0x582   : > { %5597 = vmatprep.subr.bf16.mxu1 %v6165_v32 }
 0x584   : > { %5590 = vmatmul.mubr.msk.bf16.gmra.mrb[132].mxu1 %vm3295_vm7, %v3679_v55  ;;  %v6190_v55 = vld [vmem:[%s8021_s9 + $0x10] sm:$0xff]  }
 0x585   : > { %5598 = vmatpush3.bf16.msra.mxu1 %v6165_v32  ;;  %5603 = vmatprep.mubr.msk.bf16.mxu1 %vm3295_vm7, %v3837_v11  ;;  %v6181_v32 = vld [vmem:[%s8020_s8 + $0x48] sm:$0xff]  }
 0x586   : > { %5599 = vmatprep.subr.bf16.mxu1 %v6166_v63  ;;  %5680 = vmatpush3.bf16.msra.mxu0 %v6190_v55 }
 0x587   : > { %5681 = vmatprep.subr.bf16.mxu0 %v6310_v24 }
 0x589   : > { %5600 = vmatpush3.bf16.msra.mxu1 %v6166_v63  ;;  %v6182_v63 = vld [vmem:[%s8020_s8 + $0x50] sm:$0xff]  }
 0x58a   : > { %6004 = vmatprep.subr.msk.bf16.mxu1 %vm1822_vm4, %v6167_v2  ;;  %v6183_v2 = vld [vmem:[%s8020_s8 + $0x58] sm:$0xff]  }
 0x58d   : > { %5602 = vmatpush3.bf16.msra.mxu1 %v3891_v28  ;;  %v6184_v28 = vld [vmem:[%s8020_s8 + $0x60] sm:$0xff]  }
 0x590   : > { %5604 = vmatmul.mubr.msk.bf16.vlgmr.msra.gmra.mrb[128].mxu1 %vm3295_vm7, %v3838_v45 }
 0x591   : > { %5607 = vmatprep.mubr.msk.bf16.mxu1 %vm3295_vm7, %v3839_v25 }
 0x598   : > { %5608 = vmatmul.mubr.msk.bf16.gmra.mrb[132].mxu1 %vm3295_vm7, %v3840_v5 }
 0x599   : > { %5619 = vmatprep.mubr.msk.bf16.mxu1 %vm2401_vm5, %v6168_v39  ;;  %v6185_v39 = vld [vmem:[%s8020_s8 + $0x68] sm:$0xff]  }
 0x663   : > { %v5605_v11 = vpop.f32.mrb[128].mxu1 }
 0x664   : > { %v3975_v0 = vadd.f32 %v5605_v11, %v5293_v6  ;;  %v3927_v12 = vpop.f32.mrb[129].mxu1  ;;  %v6187_v11 = vld [vmem:[%s8020_s8 + $0x78] sm:$0xff]  }
 0x665   : > { %v3973_v43 = vadd.f32 %v5293_v6, %v3927_v12  ;;  %v5606_v49 = vpop.f32.mrb[130].mxu1  ;;  %v6204_v12 = vld [vmem:[%s8023_s11] sm:$0xff]  }
 0x666   : > { %v3976_v45 = vadd.f32 %v5606_v49, %v5293_v6  ;;  %v3930_v20 = vpop.f32.mrb[131].mxu1  ;;  %v3983_v1 = vmax.f32 %v3975_v0, 0.0  ;;  %v6191_v0 = vld [vmem:[%s8021_s9 + $0x18] sm:$0xff]   ;;  %v6206_v49 = vld [vmem:[%s8023_s11 + $0x10] sm:$0xff]  }
 0x667   : > { %v3974_v38 = vadd.f32 %v5293_v6, %v3930_v20  ;;  %v3981_v56 = vmax.f32 %v3973_v43, 0.0  ;;  %5682 = vmatpush3.bf16.msra.mxu0 %v6191_v0  ;;  %v6205_v43 = vld [vmem:[%s8023_s11 + $0x8] sm:$0xff]   ;;  %v6208_v20 = vld [vmem:[%s8023_s11 + $0x20] sm:$0xff]  }
 0x668   : > { %v3984_v59 = vmax.f32 %v3976_v45, 0.0  ;;  %5687 = vmatprep.subr.bf16.mxu0 %v6310_v24  ;;  %v6207_v45 = vld [vmem:[%s8023_s11 + $0x18] sm:$0xff]  }
 0x669   : > { %v3982_v42 = vmax.f32 %v3974_v38, 0.0  ;;  %v6209_v38 = vld [vmem:[%s8023_s11 + $0x28] sm:$0xff]  }
 0x66a   : > { %v3990_v46 = vpack.c.bf16 %v3984_v59, %v3983_v1 }
 0x66b   : > { %v3989_v7 = vpack.c.bf16 %v3982_v42, %v3981_v56  ;;  %v5609_v37 = vpop.f32.mrb[132].mxu1 }
 0x66c   : > { %v3979_v13 = vadd.f32 %v5609_v37, %v5293_v6  ;;  %v3943_v54 = vpop.f32.mrb[133].mxu1 }
 0x66d   : > { %v3977_v25 = vadd.f32 %v5293_v6, %v3943_v54  ;;  %v5610_v30 = vpop.f32.mrb[134].mxu1  ;;  %5611 = vmatprep.subr.bf16.mxu1 %v3989_v7 }
 0x66e   : > { %v3980_v33 = vadd.f32 %v5610_v30, %v5293_v6  ;;  %v3946_v57 = vpop.f32.mrb[135].mxu1  ;;  %5612 = vmatpush3.bf16.msra.mxu1 %v3989_v7  ;;  %v3987_v18 = vmax.f32 %v3979_v13, 0.0 }
 0x66f   : > { %v3978_v21 = vadd.f32 %v5293_v6, %v3946_v57  ;;  %5613 = vmatprep.subr.bf16.mxu1 %v3990_v46  ;;  %v3985_v3 = vmax.f32 %v3977_v25, 0.0  ;;  %v6186_v6 = vld [vmem:[%s8020_s8 + $0x70] sm:$0xff]  }
 0x670   : > { %v3988_v62 = vmax.f32 %v3980_v33, 0.0  ;;  %v6192_v33 = vld [vmem:[%s8021_s9 + $0x20] sm:$0xff]  }
 0x671   : > { %v3986_v41 = vmax.f32 %v3978_v21, 0.0 }
 0x672   : > { %v3992_v10 = vpack.c.bf16 %v3988_v62, %v3987_v18  ;;  %5614 = vmatpush3.bf16.msra.mxu1 %v3990_v46  ;;  %v6193_v18 = vld [vmem:[%s8021_s9 + $0x28] sm:$0xff]   ;;  %v6194_v62 = vld [vmem:[%s8021_s9 + $0x30] sm:$0xff]  }
 0x673   : > { %v3991_v48 = vpack.c.bf16 %v3986_v41, %v3985_v3  ;;  %v6195_v3 = vld [vmem:[%s8021_s9 + $0x38] sm:$0xff]   ;;  %v6196_v41 = vld [vmem:[%s8021_s9 + $0x40] sm:$0xff]  }
 0x675   : > { %5615 = vmatprep.subr.bf16.mxu1 %v3991_v48 }
 0x676   : > { %5616 = vmatpush3.bf16.msra.mxu1 %v3991_v48 }
 0x677   : > { %5617 = vmatprep.subr.bf16.mxu1 %v3992_v10 }
 0x67a   : > { %5618 = vmatpush3.bf16.msra.mxu1 %v3992_v10 }
 0x67b   : > { %5623 = vmatprep.subr.bf16.mxu1 %v3989_v7 }
 0x67d   : > { %5620 = vmatmul.mubr.msk.bf16.vlgmr.msra.gmra.mrb[136].mxu1 %vm2401_vm5, %v6169_v17  ;;  %v6198_v17 = vld [vmem:[%s8021_s9 + $0x50] sm:$0xff]  }
 0x67e   : > { %5624 = vmatpush3.bf16.msra.mxu1 %v3989_v7  ;;  %5631 = vmatprep.mubr.msk.bf16.mxu1 %vm2401_vm5, %v6170_v29  ;;  %v6199_v29 = vld [vmem:[%s8021_s9 + $0x58] sm:$0xff]  }
 0x67f   : > { %5625 = vmatprep.subr.bf16.mxu1 %v3990_v46 }
 0x682   : > { %5626 = vmatpush3.bf16.msra.mxu1 %v3990_v46 }
 0x683   : > { %5627 = vmatprep.subr.bf16.mxu1 %v3991_v48 }
 0x686   : > { %5628 = vmatpush3.bf16.msra.mxu1 %v3991_v48  ;;  %v6197_v48 = vld [vmem:[%s8021_s9 + $0x48] sm:$0xff]  }
 0x687   : > { %5629 = vmatprep.subr.bf16.mxu1 %v3992_v10 }
 0x68a   : > { %5630 = vmatpush3.bf16.msra.mxu1 %v3992_v10 }
 0x68b   : > { %5635 = vmatprep.subr.bf16.mxu1 %v6172_v52 }
 0x68d   : > { %5632 = vmatmul.mubr.msk.bf16.vlgmr.msra.gmra.mrb[140].mxu1 %vm2401_vm5, %v6171_v16 }
 0x68e   : > { %5636 = vmatpush3.bf16.msra.mxu1 %v6172_v52  ;;  %v6200_v52 = vld [vmem:[%s8021_s9 + $0x60] sm:$0xff]  }
 0x68f   : > { %5637 = vmatprep.subr.bf16.mxu1 %v6173_v44 }
 0x692   : > { %5638 = vmatpush3.bf16.msra.mxu1 %v6173_v44  ;;  %v6201_v44 = vld [vmem:[%s8021_s9 + $0x68] sm:$0xff]  }
 0x693   : > { %5639 = vmatprep.subr.bf16.mxu1 %v6174_v34 }
 0x696   : > { %5640 = vmatpush3.bf16.msra.mxu1 %v6174_v34  ;;  %v6202_v34 = vld [vmem:[%s8021_s9 + $0x70] sm:$0xff]  }
 0x697   : > { %5641 = vmatprep.subr.bf16.mxu1 %v6175_v8 }
 0x69a   : > { %5642 = vmatpush3.bf16.msra.mxu1 %v6175_v8  ;;  %v6203_v8 = vld [vmem:[%s8021_s9 + $0x78] sm:$0xff]  }
 0x69b   : > { %5643 = vmatprep.subr.bf16.mxu1 %v6176_v36 }
 0x69e   : > { %5644 = vmatpush3.bf16.msra.mxu1 %v6176_v36 }
 0x69f   : > { %5645 = vmatprep.subr.bf16.mxu1 %v6177_v60 }
 0x6a2   : > { %5646 = vmatpush3.bf16.msra.mxu1 %v6177_v60  ;;  %v6210_v60 = vld [vmem:[%s8023_s11 + $0x30] sm:$0xff]  }
 0x6a3   : > { %5647 = vmatprep.subr.bf16.mxu1 %v6178_v22 }
 0x6a6   : > { %5648 = vmatpush3.bf16.msra.mxu1 %v6178_v22  ;;  %v6211_v22 = vld [vmem:[%s8023_s11 + $0x38] sm:$0xff]  }
 0x6a7   : > { %5649 = vmatprep.subr.bf16.mxu1 %v6179_v50 }
 0x6aa   : > { %5650 = vmatpush3.bf16.msra.mxu1 %v6179_v50  ;;  %v5343_v50 = vld [vmem:[%s8022_s10] ss:$0 sm:$0xff] }
 0x6ab   : > { %5655 = vmatprep.subr.bf16.mxu1 %v6180_v15 }
 0x750   : > { %v5621_v5 = vpop.f32.mrb[136].mxu1 }
 0x751   : > { %v4047_v23 = vpop.f32.mrb[137].mxu1 }
 0x752   : > { %v5622_v26 = vpop.f32.mrb[138].mxu1 }
 0x753   : > { %v4050_v40 = vpop.f32.mrb[139].mxu1 }
 0x760   : > { %v5633_v31 = vpop.f32.mrb[140].mxu1 }
 0x761   : > { %v4134_v47 = vmax.f32 %v5621_v5, %v5633_v31  ;;  %v4117_v19 = vpop.f32.mrb[141].mxu1  ;;  %v6213_v31 = vld [vmem:[%s8025_s13 + $0x8] sm:$0xff]  }
 0x762   : > { %v4132_v9 = vmax.f32 %v4047_v23, %v4117_v19  ;;  %v5634_v4 = vpop.f32.mrb[142].mxu1  ;;  %v6215_v19 = vld [vmem:[%s8025_s13 + $0x18] sm:$0xff]  }
 0x763   : > { %v4135_v53 = vmax.f32 %v5622_v26, %v5634_v4  ;;  %v4120_v58 = vpop.f32.mrb[143].mxu1  ;;  %v6212_v26 = vld [vmem:[%s8025_s13] sm:$0xff]   ;;  %v6217_v4 = vld [vmem:[%s8025_s13 + $0x28] sm:$0xff]  }
 0x764   : > { %v4133_v35 = vmax.f32 %v4050_v40, %v4120_v58  ;;  %v6219_v58 = vld [vmem:[%s8025_s13 + $0x38] sm:$0xff]  }
 0x765   : > { %v4137_v27 = vpack.c.bf16 %v4135_v53, %v4134_v47  ;;  %v6214_v47 = vld [vmem:[%s8025_s13 + $0x10] sm:$0xff]  }
 0x766   : > { %v4136_v61 = vpack.c.bf16 %v4133_v35, %v4132_v9  ;;  %v6216_v9 = vld [vmem:[%s8025_s13 + $0x20] sm:$0xff]   ;;  %v6218_v53 = vld [vmem:[%s8025_s13 + $0x30] sm:$0xff]  }
 0x767   : > { %v5383_v35 = vld [vmem:[%s8024_s12] ss:$0 sm:$0xff] }
 0x768   : > { %5651 = vmatprep.mubr.bf16.mxu1 %v4136_v61 }
 0x769   : > { %5652 = vmatmul.mubr.bf16.vlgmr.msra.gmra.mrb[144].mxu1 %v4137_v27 }
 0x76a   : > { %5656 = vmatpush3.bf16.msra.mxu1 %v6180_v15  ;;  %5671 = vmatprep.mubr.bf16.mxu1 %v4136_v61 }
 0x76b   : > { %5657 = vmatprep.subr.bf16.mxu1 %v6181_v32 }
 0x76e   : > { %5658 = vmatpush3.bf16.msra.mxu1 %v6181_v32 }
 0x76f   : > { %5659 = vmatprep.subr.bf16.mxu1 %v6182_v63 }
 0x772   : > { %5660 = vmatpush3.bf16.msra.mxu1 %v6182_v63 }
 0x773   : > { %5661 = vmatprep.subr.bf16.mxu1 %v6183_v2 }
 0x776   : > { %5662 = vmatpush3.bf16.msra.mxu1 %v6183_v2 }
 0x777   : > { %5663 = vmatprep.subr.bf16.mxu1 %v6184_v28 }
 0x77a   : > { %5664 = vmatpush3.bf16.msra.mxu1 %v6184_v28 }
 0x77b   : > { %5665 = vmatprep.subr.bf16.mxu1 %v6185_v39 }
 0x77e   : > { %5666 = vmatpush3.bf16.msra.mxu1 %v6185_v39 }
 0x77f   : > { %5667 = vmatprep.subr.bf16.mxu1 %v6186_v6 }
 0x782   : > { %5668 = vmatpush3.bf16.msra.mxu1 %v6186_v6 }
 0x783   : > { %5669 = vmatprep.subr.bf16.mxu1 %v6187_v11 }
 0x786   : > { %5670 = vmatpush3.bf16.msra.mxu1 %v6187_v11 }
 0x787   : > { %5723 = vmatprep.subr.bf16.mxu1 %v6310_v24 }
 0x789   : > { %5672 = vmatmul.mubr.bf16.vlgmr.msra.gmra.mrb[148].mxu1 %v4137_v27 }
 0x78a   : > { %5739 = vmatprep.mubr.msk.bf16.mxu1 %vm6311_vm8, %v6310_v24  ;;  %5724 = vmatpush3.bf16.msra.mxu1 %v6204_v12 }
 0x78b   : > { %5725 = vmatprep.subr.bf16.mxu1 %v6310_v24 }
 0x78e   : > { %5726 = vmatpush3.bf16.msra.mxu1 %v6205_v43 }
 0x78f   : > { %5727 = vmatprep.subr.bf16.mxu1 %v6310_v24 }
 0x792   : > { %5728 = vmatpush3.bf16.msra.mxu1 %v6206_v49 }
 0x793   : > { %5729 = vmatprep.subr.bf16.mxu1 %v6310_v24 }
 0x796   : > { %5730 = vmatpush3.bf16.msra.mxu1 %v6207_v45 }
 0x797   : > { %5731 = vmatprep.subr.bf16.mxu1 %v6310_v24 }
 0x79a   : > { %5732 = vmatpush3.bf16.msra.mxu1 %v6208_v20 }
 0x79b   : > { %5733 = vmatprep.subr.bf16.mxu1 %v6310_v24 }
 0x79e   : > { %5734 = vmatpush3.bf16.msra.mxu1 %v6209_v38 }
 0x79f   : > { %5735 = vmatprep.subr.bf16.mxu1 %v6310_v24 }
 0x7a2   : > { %5736 = vmatpush3.bf16.msra.mxu1 %v6210_v60 }
 0x7a3   : > { %5737 = vmatprep.subr.bf16.mxu1 %v6310_v24 }
 0x7a6   : > { %5738 = vmatpush3.bf16.msra.mxu1 %v6211_v22 }
 0x7a7   : > { %5743 = vmatprep.subr.bf16.mxu1 %v6310_v24 }
 0x83c   : > { %v5653_v1 = vpop.f32.mrb[144].mxu1 }
 0x83d   : > { %v4236_v59 = vpop.f32.mrb[145].mxu1 }
 0x83e   : > { %v5654_v56 = vpop.f32.mrb[146].mxu1 }
 0x83f   : > { %v4239_v42 = vpop.f32.mrb[147].mxu1 }
 0x85c   : > { %v5673_v46 = vpop.f32.mrb[148].mxu1 }
 0x85d   : > { %v4367_v7 = vmax.f32 %v5653_v1, %v5673_v46  ;;  %v4350_v37 = vpop.f32.mrb[149].mxu1 }
 0x85e   : > { %v4365_v13 = vmax.f32 %v4236_v59, %v4350_v37  ;;  %v5674_v54 = vpop.f32.mrb[150].mxu1 }
 0x85f   : > { %v4368_v25 = vmax.f32 %v5654_v56, %v5674_v54  ;;  %v4353_v30 = vpop.f32.mrb[151].mxu1  ;;  %v4531_v16 = vpack.c.bf16 %v4367_v7, %v4367_v7 }
 0x860   : > { %v4370_v57 = vpack.c.bf16 %v4365_v13, %v4365_v13  ;;  %v4366_v21 = vmax.f32 %v4239_v42, %v4353_v30 }
 0x861   : > { %v4609_v36 = vpack.c.bf16 %v4368_v25, %v4368_v25 }
 0x862   : > { %5684 = vmatmul.mubr.msk.bf16.vlgmr.msra.gmra.mrb[48].mxu0 %vm2401_vm5, %v4370_v57  ;;  %v4453_v10 = vpack.c.bf16 %v4366_v21, %v4366_v21 }
 0x863   : > { %5688 = vmatpush3.bf16.msra.mxu0 %v6192_v33  ;;  %5695 = vmatprep.mubr.msk.bf16.mxu0 %vm6311_vm8, %v6310_v24 }
 0x864   : > { %5689 = vmatprep.subr.bf16.mxu0 %v6310_v24 }
 0x867   : > { %5690 = vmatpush3.bf16.msra.mxu0 %v6193_v18 }
 0x868   : > { %5691 = vmatprep.subr.bf16.mxu0 %v6310_v24 }
 0x86b   : > { %5692 = vmatpush3.bf16.msra.mxu0 %v6194_v62 }
 0x86c   : > { %5693 = vmatprep.subr.bf16.mxu0 %v6310_v24 }
 0x86f   : > { %5694 = vmatpush3.bf16.msra.mxu0 %v6195_v3 }
 0x870   : > { %5699 = vmatprep.subr.bf16.mxu0 %v6310_v24 }
 0x872   : > { %5696 = vmatmul.mubr.msk.bf16.vlgmr.msra.gmra.mrb[48].mxu0 %vm2401_vm5, %v4453_v10 }
 0x873   : > { %5700 = vmatpush3.bf16.msra.mxu0 %v6196_v41  ;;  %5707 = vmatprep.mubr.msk.bf16.mxu0 %vm6311_vm8, %v6310_v24 }
 0x874   : > { %5701 = vmatprep.subr.bf16.mxu0 %v6310_v24 }
 0x877   : > { %5702 = vmatpush3.bf16.msra.mxu0 %v6197_v48 }
 0x878   : > { %5703 = vmatprep.subr.bf16.mxu0 %v6310_v24 }
 0x87b   : > { %5704 = vmatpush3.bf16.msra.mxu0 %v6198_v17 }
 0x87c   : > { %5705 = vmatprep.subr.bf16.mxu0 %v6310_v24 }
 0x87f   : > { %5706 = vmatpush3.bf16.msra.mxu0 %v6199_v29 }
 0x880   : > { %5711 = vmatprep.subr.bf16.mxu0 %v6310_v24 }
 0x882   : > { %5708 = vmatmul.mubr.msk.bf16.vlgmr.msra.gmra.mrb[48].mxu0 %vm2401_vm5, %v4531_v16 }
 0x883   : > { %5712 = vmatpush3.bf16.msra.mxu0 %v6200_v52  ;;  %5719 = vmatprep.mubr.msk.bf16.mxu0 %vm6311_vm8, %v6310_v24 }
 0x884   : > { %5713 = vmatprep.subr.bf16.mxu0 %v6310_v24 }
 0x887   : > { %5714 = vmatpush3.bf16.msra.mxu0 %v6201_v44 }
 0x888   : > { %5715 = vmatprep.subr.bf16.mxu0 %v6310_v24 }
 0x88b   : > { %5716 = vmatpush3.bf16.msra.mxu0 %v6202_v34 }
 0x88c   : > { %5717 = vmatprep.subr.bf16.mxu0 %v6310_v24 }
 0x88f   : > { %5718 = vmatpush3.bf16.msra.mxu0 %v6203_v8 }
 0x892   : > { %5720 = vmatmul.mubr.msk.bf16.vlgmr.msra.gmra.mrb[48].mxu0 %vm2401_vm5, %v4609_v36 }
 0x965   : > { %v4680_v15 = vpop.f32.mrb[48].mxu0 }
 0x966   : > { %v5763_v51 = vadd.f32 %v5343_v50, %v4680_v15  ;;  %v5721_v14 = vpop.f32.mrb[49].mxu0 }
 0x967   : > { %v4683_v55 = vpop.f32.mrb[50].mxu0 }
 0x968   : > { %v4687_v5 = vmax.f32 %v5763_v51, 0.0  ;;  %v5722_v23 = vpop.f32.mrb[51].mxu0 }
 0x96a   : > { %v4688_v40 = vpack.c.bf16 %v4687_v5, %v4687_v5 }
 0x96c   : > { %5740 = vmatmul.mubr.bf16.vlgmr.msra.gmra.mrb[152].mxu1 %v4688_v40 }
 0x96d   : > { %5744 = vmatpush3.bf16.msra.mxu1 %v6212_v26  ;;  %5759 = vmatprep.mubr.msk.bf16.mxu1 %vm6311_vm8, %v6310_v24 }
 0x96e   : > { %5745 = vmatprep.subr.bf16.mxu1 %v6310_v24 }
 0x971   : > { %5746 = vmatpush3.bf16.msra.mxu1 %v6213_v31 }
 0x972   : > { %5747 = vmatprep.subr.bf16.mxu1 %v6310_v24 }
 0x975   : > { %5748 = vmatpush3.bf16.msra.mxu1 %v6214_v47 }
 0x976   : > { %5749 = vmatprep.subr.bf16.mxu1 %v6310_v24 }
 0x979   : > { %5750 = vmatpush3.bf16.msra.mxu1 %v6215_v19 }
 0x97a   : > { %5751 = vmatprep.subr.bf16.mxu1 %v6310_v24 }
 0x97d   : > { %5752 = vmatpush3.bf16.msra.mxu1 %v6216_v9 }
 0x97e   : > { %5753 = vmatprep.subr.bf16.mxu1 %v6310_v24 }
 0x981   : > { %5754 = vmatpush3.bf16.msra.mxu1 %v6217_v4 }
 0x982   : > { %5755 = vmatprep.subr.bf16.mxu1 %v6310_v24 }
 0x985   : > { %5756 = vmatpush3.bf16.msra.mxu1 %v6218_v53 }
 0x986   : > { %5757 = vmatprep.subr.bf16.mxu1 %v6310_v24  ;;  %v5392_v24 = vld [vmem:[%s8026_s14] ss:$0 sm:$0xff] }
 0x989   : > { %5758 = vmatpush3.bf16.msra.mxu1 %v6219_v58 }
 0xa3f   : > { %v4794_v27 = vpop.f32.mrb[152].mxu1 }
 0xa40   : > { %v4795_v61 = vadd.f32 %v5383_v35, %v4794_v27  ;;  %v5741_v32 = vpop.f32.mrb[153].mxu1 }
 0xa41   : > { %v4797_v63 = vpop.f32.mrb[154].mxu1 }
 0xa42   : > { %v4800_v2 = vmax.f32 %v4795_v61, 0.0  ;;  %v5742_v28 = vpop.f32.mrb[155].mxu1 }
 0xa44   : > { %v4801_v39 = vpack.c.bf16 %v4800_v2, %v4800_v2 }
 0xa46   : > { %5760 = vmatmul.mubr.bf16.vlgmr.msra.gmra.mrb[156].mxu1 %v4801_v39 }
 0xb19   : > { %v4907_v6 = vpop.f32.mrb[156].mxu1 }
 0xb1a   : > { %v4908_v11 = vadd.f32 %v5392_v24, %v4907_v6  ;;  %v5761_v0 = vpop.f32.mrb[157].mxu1 }
 0xb1b   : > { %v4910_v12 = vpop.f32.mrb[158].mxu1 }
 0xb1c   : > { %4913 = vst [vmem:[%s490_s27] sm:$0xff] %v4908_v11  ;;  %v5762_v43 = vpop.f32.mrb[159].mxu1 }
 0xb1d   : > { %6258 = shalt.err (!%p6255_p3)
}
 0xb1e   : > { %s6259_s16 = scalar_lea.hbm %s7970_s30, 128  ;;  %s6263_s25 = scalar_lea.hbm %s8027_s15, 256 }
 0xb1f   : > { %p6260_p4 = scmp.ne.s32.totalorder %s7970_s30, %s6259_s16  ;;  %p6264_p9 = scmp.lt.u32.totalorder %s7970_s30, %s8027_s15 }
 0xb20   : > { %p6265_p10 = scmp.lt.u32.totalorder %s6263_s25, %s6259_s16  ;;  %p6267_p12 = scmp.lt.u32.totalorder %s6259_s16, %s7970_s30 }
 0xb21   : > { %p6261_p7 = pnand %p6260_p4, %p6431_p5 }
 0xb22   : > { %p6266_p11 = por %p6265_p10, %p6264_p9 }
 0xb23   : > { %p6262_p8 = pneg %p6261_p7 }
 0xb24   : > { %p6268_p13 = por %p6267_p12, %p6266_p11 }
 0xb26   : > { %p6269_p0 = pnand %p6268_p13, %p6262_p8 }
 0xb28   : > { %6272 = shalt.err (!%p6269_p0)
}
 0xb29   : > { %6005 = dma.vmem_to_hbm [thread:$0]  (%p6431_p5), %s7972_s20, 128, %s7970_s30, %s4915_s0  }
 0xb2a PF: > { %p6011_p1 = scmp.ge.s32.totalorder %s6307_s21, 2  ;;  %s4940_s22 = sand.u32 1, %s6295_s18  }
 0xb2b   : > { %s4941_s24 = scalar_lea.sflag [#allocation3], %s4940_s22 }
 0xb2c   : > { %p6008_p2 = pnand %p6011_p1, %p6435_p6 }
 0xb2e   : > { %6290 = dma.done.wait (!%p6008_p2), %s4941_s24, 128  }
 0xb2f   : > { %6292 = vsyncadd (!%p6008_p2), %s4941_s24, 4294967168  ;;  %s8038_s21 = sld [smem:[#allocation6_spill]]  ;;  %s8039_s16 = sld [smem:[#allocation5_spill]] }
 0xb30   : > { %s8040_s20 = sld [smem:[#allocation7_spill]]  ;;  %s8041_s18 = smov %s6299_s19 }
 0xb35   : > { %p25_p3 = scmp.ge.s32.totalorder %s8038_s21, 4   ;;  %s8042_s19 = smov %s8039_s16 }
 0xb37   :  { %27 = sbr.rel (!%p25_p3) target bundleno = 5 (0x5), region = 130 }
 0xb3e   :  { %4946 = vsyncpa [#allocation3], 1 }
 0xb3f   :  { %4948 = vsyncpa [#allocation3 + $0x1], 1 }

</bundles_post_ra>
